<compile_context>
chip_gen: v7x
topology: tpu7x:2x2x1
jax: 0.10.0
libtpu: 0.0.40
codegen_flags: <defaults>
</compile_context>

<pallas_src>
import numpy as np
import jax
import jax.numpy as jnp
from jax.experimental import pallas as pl
from jax.experimental.pallas import tpu as pltpu

MAX_LIN = 4       # max number of Linear layers per candidate op
B_PAD = 8         # sublane-padded batch
NUM_SPLITS = 2    # leading "parallel" grid axis (megacore split on v7x)
LANE = 128


def _round_up(x, m):
    return ((x + m - 1) // m) * m


# ----------------------------- Pallas kernel ------------------------------------

def make_mixed_op_kernel(opb, nbps, d):
    """Kernel processing `opb` candidate ops per grid step at feature width `d`."""

    def kernel(nlay_ref, act_ref, wmix_ref, x_ref, w_ref, b_ref, o_ref):
        c = pl.program_id(0)       # core-split index ("parallel")
        blk = pl.program_id(1)     # op-block index within this split ("arbitrary")

        @pl.when(blk == 0)
        def _():
            o_ref[...] = jnp.zeros_like(o_ref)

        x = x_ref[...]                              # (B_PAD, d) f32
        base = (c * nbps + blk) * opb               # first op index of this block

        acc = jnp.zeros((B_PAD, d), jnp.float32)
        for j in range(opb):                        # static unroll over ops in block
            idx = base + j
            nlin = nlay_ref[idx]                    # number of Linear layers (1..4)
            act_id = act_ref[idx]                   # 0 = relu, 1 = tanh, 2 = sigmoid
            wm = wmix_ref[idx]                      # mixture weight

            h = x
            # Hidden stages live in slots 0..MAX_LIN-2; stage s active iff s < nlin-1.
            # Inactive stages are computed on zero weights and masked out (cheap,
            # hidden under the weight DMA).
            for s in range(MAX_LIN - 1):
                z = jnp.dot(h, w_ref[j, s], preferred_element_type=jnp.float32) \
                    + b_ref[j, s, :]
                a = jnp.where(
                    act_id == 0,
                    jnp.maximum(z, 0.0),
                    jnp.where(act_id == 1, jnp.tanh(z), jax.nn.sigmoid(z)),
                )
                h = jnp.where(s < nlin - 1, a, h)

            # Final Linear always lives in slot MAX_LIN-1 (no activation).
            out = jnp.dot(h, w_ref[j, MAX_LIN - 1], preferred_element_type=jnp.float32) \
                + b_ref[j, MAX_LIN - 1, :]
            acc = acc + wm * out

        o_ref[...] += acc[None, :, :]

    return kernel


def run_bucket(x, bucket, wmix_b):
    """One pallas_call over a hidden-size bucket.  Returns a (B_PAD, D) partial sum."""
    d = bucket["D"]
    opb = bucket["opb"]
    nbps = bucket["nbps"]
    B, in_features = x.shape

    x_pad = jnp.zeros((B_PAD, d), jnp.float32).at[:B, :in_features].set(x)

    out = pl.pallas_call(
        make_mixed_op_kernel(opb, nbps, d),
        out_shape=jax.ShapeDtypeStruct((NUM_SPLITS, B_PAD, d), jnp.float32),
        grid_spec=pltpu.PrefetchScalarGridSpec(
            num_scalar_prefetch=3,                    # nlay, act_ids, wmix -> SMEM
            grid=(NUM_SPLITS, nbps),
            in_specs=[
                pl.BlockSpec((B_PAD, d), lambda c, b, *_: (0, 0)),               # x
                pl.BlockSpec((opb, MAX_LIN, d, d),
                             lambda c, b, *_: (c * nbps + b, 0, 0, 0)),          # weights
                pl.BlockSpec((opb, MAX_LIN, d),
                             lambda c, b, *_: (c * nbps + b, 0, 0)),             # biases
            ],
            out_specs=pl.BlockSpec((1, B_PAD, d), lambda c, b, *_: (c, 0, 0)),   # per-core acc
        ),
        compiler_params=pltpu.CompilerParams(
            dimension_semantics=("parallel", "arbitrary"),
            vmem_limit_bytes=32 * 1024 * 1024,
        ),
    )(bucket["nlay"], bucket["act"], wmix_b, x_pad, bucket["w"], bucket["b"])

    return out.sum(axis=0)          # combine the two per-core partial output tiles


def mixed_op_forward(x, buckets, wmix, out_features):
    B = x.shape[0]
    total = jnp.zeros((B, out_features), jnp.float32)
    for bucket in buckets:
        wmix_b = jnp.zeros((bucket["nops_pad"],), jnp.float32)
        wmix_b = wmix_b.at[:bucket["nops"]].set(wmix[bucket["op_idx"]])
        part = run_bucket(x, bucket, wmix_b)
        total = total + part[:B, :out_features]
    return total


# ----------------------- parameter construction (plain JAX glue) ----------------

def build_ops(key, in_features, out_features):
    hidden_sizes = [32, 64, 128, 256]
    activations = ['relu', 'tanh', 'sigmoid']
    layer_numbers = [2, 3, 4]
    ops = []
    for hs in hidden_sizes:
        for act in activations:
            for L in layer_numbers:
                dims = [in_features] + [hs] * (L - 1) + [out_features]
                layers = []
                for fi, fo in zip(dims[:-1], dims[1:]):
                    key, k1, k2 = jax.random.split(key, 3)
                    bound = 1.0 / np.sqrt(fi)
                    W = jax.random.uniform(k1, (fi, fo), jnp.float32, -bound, bound)
                    b = jax.random.uniform(k2, (fo,), jnp.float32, -bound, bound)
                    layers.append((W, b))
                ops.append((layers, act))
    # final plain nn.Linear(in_features, out_features)
    key, k1, k2 = jax.random.split(key, 3)
    bound = 1.0 / np.sqrt(in_features)
    W = jax.random.uniform(k1, (in_features, out_features), jnp.float32, -bound, bound)
    b = jax.random.uniform(k2, (out_features,), jnp.float32, -bound, bound)
    ops.append(([(W, b)], 'relu'))  # activation unused for a single Linear
    return ops, key


def choose_blocking(nops, num_splits, d):
    """Pick ops-per-block so grid steps are few and VMEM stays modest."""
    slot_bytes = MAX_LIN * d * d * 4                       # one op's f32 weight slots
    max_opb = max(1, min(8, (5 * 1024 * 1024) // slot_bytes))
    best = None
    for opb in range(1, max_opb + 1):
        nbps = -(-nops // (num_splits * opb))              # blocks per split
        padded = num_splits * nbps * opb
        cand = (padded - nops, nbps, opb)                  # minimize waste, then steps
        if best is None or cand[:2] < best[:2]:
            best = cand
    _, nbps, opb = best
    return opb, nbps, num_splits * nbps * opb


def pack_bucket(op_entries, num_splits):
    """Pack a list of (layers, act) into a uniform, zero-padded slot layout."""
    act_map = {'relu': 0, 'tanh': 1, 'sigmoid': 2}
    req = max(max(W.shape[0], W.shape[1]) for layers, _ in op_entries for W, _ in layers)
    d = _round_up(req, LANE)
    nops = len(op_entries)
    opb, nbps, nops_pad = choose_blocking(nops, num_splits, d)

    w_stack = np.zeros((nops_pad, MAX_LIN, d, d), np.float32)
    b_stack = np.zeros((nops_pad, MAX_LIN, d), np.float32)
    nlay = np.ones((nops_pad,), np.int32)        # padded dummy ops: single zero Linear
    act_ids = np.zeros((nops_pad,), np.int32)

    for i, (layers, act) in enumerate(op_entries):
        nlay[i] = len(layers)
        act_ids[i] = act_map[act]
        for s, (W, b) in enumerate(layers[:-1]):           # hidden linears -> slots 0..L-2
            fi, fo = W.shape
            w_stack[i, s, :fi, :fo] = np.asarray(W)
            b_stack[i, s, :fo] = np.asarray(b)
        Wl, bl = layers[-1]                                 # output linear -> slot MAX_LIN-1
        fi, fo = Wl.shape
        w_stack[i, MAX_LIN - 1, :fi, :fo] = np.asarray(Wl)
        b_stack[i, MAX_LIN - 1, :fo] = np.asarray(bl)

    return {
        "D": d, "opb": opb, "nbps": nbps, "nops": nops, "nops_pad": nops_pad,
        "w": jnp.asarray(w_stack), "b": jnp.asarray(b_stack),
        "nlay": jnp.asarray(nlay), "act": jnp.asarray(act_ids),
    }


def bucket_ops(ops):
    """Split ops into a <=128-wide bucket and a 256-wide bucket (original indices kept)."""
    small_idx, big_idx = [], []
    for i, (layers, _) in enumerate(ops):
        req = max(max(W.shape[0], W.shape[1]) for W, _ in layers)
        (small_idx if req <= LANE else big_idx).append(i)
    buckets = []
    for idxs in (small_idx, big_idx):
        if not idxs:
            continue
        entries = [(ops[i][0], ops[i][1]) for i in idxs]
        bk = pack_bucket(entries, NUM_SPLITS)
        bk["op_idx"] = np.asarray(idxs, np.int32)
        buckets.append(bk)
    return buckets


def ref_forward(x, ops, wmix):
    """Pure-JAX reference mirroring the PyTorch MixedOp.forward."""
    total = jnp.zeros((x.shape[0], ops[0][0][-1][0].shape[1]), jnp.float32)
    for (layers, act), w in zip(ops, wmix):
        h = x
        for (W, b) in layers[:-1]:
            h = jnp.dot(h, W, precision=jax.lax.Precision.HIGHEST) + b
            if act == 'relu':
                h = jnp.maximum(h, 0.0)
            elif act == 'tanh':
                h = jnp.tanh(h)
            else:
                h = jax.nn.sigmoid(h)
        Wl, bl = layers[-1]
        total = total + w * (jnp.dot(h, Wl, precision=jax.lax.Precision.HIGHEST) + bl)
    return total


if __name__ == "__main__":
    in_features, out_features, batch = 16, 16, 2

    key = jax.random.PRNGKey(0)
    ops, key = build_ops(key, in_features, out_features)
    buckets = bucket_ops(ops)

    key, kx, kw = jax.random.split(key, 3)
    x = jax.random.normal(kx, (batch, in_features), jnp.float32)
    wmix = jax.nn.softmax(jax.random.normal(kw, (len(ops),), jnp.float32)).astype(jnp.float32)

    out = mixed_op_forward(x, buckets, wmix, out_features)
    out = jax.block_until_ready(out)

    ref = ref_forward(x, ops, wmix)
    np.testing.assert_allclose(np.asarray(out), np.asarray(ref), rtol=1e-3, atol=1e-3)

    print("KERNEL_OK")
</pallas_src>

<mosaic_0001>
module attributes {stable_mosaic.version = 11 : i64} {
  func.func @kernel(%arg0: i32, %arg1: i32, %arg2: memref<28xi32, #tpu.memory_space<smem>>, %arg3: memref<28xi32, #tpu.memory_space<smem>>, %arg4: memref<28xf32, #tpu.memory_space<smem>>, %arg5: memref<8x128xf32, #tpu.memory_space<vmem>>, %arg6: memref<7x4x128x128xf32, #tpu.memory_space<vmem>>, %arg7: memref<7x4x128xf32, #tpu.memory_space<vmem>>, %arg8: memref<1x8x128xf32, #tpu.memory_space<vmem>>) attributes {dimension_semantics = [#tpu.dimension_semantics<parallel>, #tpu.dimension_semantics<arbitrary>], iteration_bounds = array<i64: 2, 2>, scalar_prefetch = 3 : i64, scratch_operands = 0 : i64, tpu.core_type = #tpu.core_type<tc>, window_params = [{pipeline_mode = #tpu.pipeline_mode<synchronous>, transform_indices = @transform_0, window_bounds = array<i64: 8, 128>}, {transform_indices = @transform_1, window_bounds = array<i64: 7, 4, 128, 128>}, {transform_indices = @transform_2, window_bounds = array<i64: 7, 4, 128>}, {transform_indices = @transform_3, window_bounds = array<i64: 1, 8, 128>}]} {
    %c0_i32 = arith.constant 0 : i32
    %0 = arith.cmpi eq, %arg1, %c0_i32 : i32
    %1 = arith.extui %0 : i1 to i32
    %c0_i32_0 = arith.constant 0 : i32
    %2 = arith.cmpi ne, %1, %c0_i32_0 : i32
    scf.if %2 {
      %cst_354 = arith.constant 0.000000e+00 : f32
      %621 = vector.broadcast %cst_354 : f32 to vector<1x8x128xf32>
      %c0_355 = arith.constant 0 : index
      %c0_356 = arith.constant 0 : index
      %c0_357 = arith.constant 0 : index
      %622 = vector.load %arg8[%c0_355, %c0_356, %c0_357] : memref<1x8x128xf32, #tpu.memory_space<vmem>>, vector<1x8x128xf32>
      tpu.vector_store %arg8[%c0_355, %c0_356, %c0_357], %621 {strides = array<i32>} : memref<1x8x128xf32, #tpu.memory_space<vmem>>, vector<1x8x128xf32>,
    } else {
    }
    %c0 = arith.constant 0 : index
    %c0_1 = arith.constant 0 : index
    %3 = vector.load %arg5[%c0, %c0_1] : memref<8x128xf32, #tpu.memory_space<vmem>>, vector<8x128xf32>
    %c2_i32 = arith.constant 2 : i32
    %4 = arith.muli %arg0, %c2_i32 : i32
    %5 = arith.addi %4, %arg1 : i32
    %c7_i32 = arith.constant 7 : i32
    %6 = arith.muli %5, %c7_i32 : i32
    %cst = arith.constant 0.000000e+00 : f32
    %7 = vector.broadcast %cst : f32 to vector<8x128xf32>
    %c0_i32_2 = arith.constant 0 : i32
    %8 = arith.addi %6, %c0_i32_2 : i32
    %9 = arith.index_cast %8 : i32 to index
    %10 = memref.load %arg2[%9] : memref<28xi32, #tpu.memory_space<smem>>
    %11 = arith.index_cast %8 : i32 to index
    %12 = memref.load %arg3[%11] : memref<28xi32, #tpu.memory_space<smem>>
    %13 = arith.index_cast %8 : i32 to index
    %14 = memref.load %arg4[%13] : memref<28xf32, #tpu.memory_space<smem>>
    %c0_3 = arith.constant 0 : index
    %c0_4 = arith.constant 0 : index
    %c0_5 = arith.constant 0 : index
    %c0_6 = arith.constant 0 : index
    %15 = vector.load %arg6[%c0_3, %c0_4, %c0_5, %c0_6] : memref<7x4x128x128xf32, #tpu.memory_space<vmem>>, vector<1x1x128x128xf32>
    %16 = vector.shape_cast %15 : vector<1x1x128x128xf32> to vector<128x128xf32>
    %cst_7 = arith.constant dense<0.000000e+00> : vector<8x128xf32>
    %17 = tpu.matmul %3, %16, %cst_7 {dimension_numbers = #tpu.dot_dimension_numbers<[1], [0], [0], [1], [0, 0, 1, 1], [], []>} : vector<8x128xf32>, vector<128x128xf32>, vector<8x128xf32> -> vector<8x128xf32>
    %c0_8 = arith.constant 0 : index
    %c0_9 = arith.constant 0 : index
    %c0_10 = arith.constant 0 : index
    %18 = vector.load %arg7[%c0_8, %c0_9, %c0_10] : memref<7x4x128xf32, #tpu.memory_space<vmem>>, vector<1x1x128xf32>
    %19 = vector.shape_cast %18 : vector<1x1x128xf32> to vector<128xf32>
    %20 = vector.shape_cast %19 : vector<128xf32> to vector<1x128xf32>
    %21 = vector.broadcast %20 : vector<1x128xf32> to vector<8x128xf32>
    %22 = arith.addf %17, %21 : vector<8x128xf32>
    %c0_i32_11 = arith.constant 0 : i32
    %23 = arith.cmpi eq, %12, %c0_i32_11 : i32
    %cst_12 = arith.constant 0.000000e+00 : f32
    %24 = vector.broadcast %cst_12 : f32 to vector<8x128xf32>
    %25 = arith.maximumf %22, %24 : vector<8x128xf32>
    %c1_i32 = arith.constant 1 : i32
    %26 = arith.cmpi eq, %12, %c1_i32 : i32
    %27 = math.tanh %22 : vector<8x128xf32>
    %28 = arith.negf %22 : vector<8x128xf32>
    %29 = math.exp %28 : vector<8x128xf32>
    %cst_13 = arith.constant 1.000000e+00 : f32
    %30 = vector.broadcast %cst_13 : f32 to vector<8x128xf32>
    %31 = arith.addf %30, %29 : vector<8x128xf32>
    %32 = arith.divf %30, %31 : vector<8x128xf32>
    %33 = arith.select %26, %27, %32 : vector<8x128xf32>
    %34 = arith.select %23, %25, %33 : vector<8x128xf32>
    %c1_i32_14 = arith.constant 1 : i32
    %35 = arith.subi %10, %c1_i32_14 : i32
    %c0_i32_15 = arith.constant 0 : i32
    %36 = arith.cmpi sgt, %35, %c0_i32_15 : i32
    %37 = arith.select %36, %34, %3 : vector<8x128xf32>
    %c0_16 = arith.constant 0 : index
    %c1 = arith.constant 1 : index
    %c0_17 = arith.constant 0 : index
    %c0_18 = arith.constant 0 : index
    %38 = vector.load %arg6[%c0_16, %c1, %c0_17, %c0_18] : memref<7x4x128x128xf32, #tpu.memory_space<vmem>>, vector<1x1x128x128xf32>
    %39 = vector.shape_cast %38 : vector<1x1x128x128xf32> to vector<128x128xf32>
    %cst_19 = arith.constant dense<0.000000e+00> : vector<8x128xf32>
    %40 = tpu.matmul %37, %39, %cst_19 {dimension_numbers = #tpu.dot_dimension_numbers<[1], [0], [0], [1], [0, 0, 1, 1], [], []>} : vector<8x128xf32>, vector<128x128xf32>, vector<8x128xf32> -> vector<8x128xf32>
    %c0_20 = arith.constant 0 : index
    %c1_21 = arith.constant 1 : index
    %c0_22 = arith.constant 0 : index
    %41 = vector.load %arg7[%c0_20, %c1_21, %c0_22] : memref<7x4x128xf32, #tpu.memory_space<vmem>>, vector<1x1x128xf32>
    %42 = vector.shape_cast %41 : vector<1x1x128xf32> to vector<128xf32>
    %43 = vector.shape_cast %42 : vector<128xf32> to vector<1x128xf32>
    %44 = vector.broadcast %43 : vector<1x128xf32> to vector<8x128xf32>
    %45 = arith.addf %40, %44 : vector<8x128xf32>
    %c0_i32_23 = arith.constant 0 : i32
    %46 = arith.cmpi eq, %12, %c0_i32_23 : i32
    %cst_24 = arith.constant 0.000000e+00 : f32
    %47 = vector.broadcast %cst_24 : f32 to vector<8x128xf32>
    %48 = arith.maximumf %45, %47 : vector<8x128xf32>
    %c1_i32_25 = arith.constant 1 : i32
    %49 = arith.cmpi eq, %12, %c1_i32_25 : i32
    %50 = math.tanh %45 : vector<8x128xf32>
    %51 = arith.negf %45 : vector<8x128xf32>
    %52 = math.exp %51 : vector<8x128xf32>
    %cst_26 = arith.constant 1.000000e+00 : f32
    %53 = vector.broadcast %cst_26 : f32 to vector<8x128xf32>
    %54 = arith.addf %53, %52 : vector<8x128xf32>
    %55 = arith.divf %53, %54 : vector<8x128xf32>
    %56 = arith.select %49, %50, %55 : vector<8x128xf32>
    %57 = arith.select %46, %48, %56 : vector<8x128xf32>
    %c1_i32_27 = arith.constant 1 : i32
    %58 = arith.subi %10, %c1_i32_27 : i32
    %c1_i32_28 = arith.constant 1 : i32
    %59 = arith.cmpi sgt, %58, %c1_i32_28 : i32
    %60 = arith.select %59, %57, %37 : vector<8x128xf32>
    %c0_29 = arith.constant 0 : index
    %c2 = arith.constant 2 : index
    %c0_30 = arith.constant 0 : index
    %c0_31 = arith.constant 0 : index
    %61 = vector.load %arg6[%c0_29, %c2, %c0_30, %c0_31] : memref<7x4x128x128xf32, #tpu.memory_space<vmem>>, vector<1x1x128x128xf32>
    %62 = vector.shape_cast %61 : vector<1x1x128x128xf32> to vector<128x128xf32>
    %cst_32 = arith.constant dense<0.000000e+00> : vector<8x128xf32>
    %63 = tpu.matmul %60, %62, %cst_32 {dimension_numbers = #tpu.dot_dimension_numbers<[1], [0], [0], [1], [0, 0, 1, 1], [], []>} : vector<8x128xf32>, vector<128x128xf32>, vector<8x128xf32> -> vector<8x128xf32>
    %c0_33 = arith.constant 0 : index
    %c2_34 = arith.constant 2 : index
    %c0_35 = arith.constant 0 : index
    %64 = vector.load %arg7[%c0_33, %c2_34, %c0_35] : memref<7x4x128xf32, #tpu.memory_space<vmem>>, vector<1x1x128xf32>
    %65 = vector.shape_cast %64 : vector<1x1x128xf32> to vector<128xf32>
    %66 = vector.shape_cast %65 : vector<128xf32> to vector<1x128xf32>
    %67 = vector.broadcast %66 : vector<1x128xf32> to vector<8x128xf32>
    %68 = arith.addf %63, %67 : vector<8x128xf32>
    %c0_i32_36 = arith.constant 0 : i32
    %69 = arith.cmpi eq, %12, %c0_i32_36 : i32
    %cst_37 = arith.constant 0.000000e+00 : f32
    %70 = vector.broadcast %cst_37 : f32 to vector<8x128xf32>
    %71 = arith.maximumf %68, %70 : vector<8x128xf32>
    %c1_i32_38 = arith.constant 1 : i32
    %72 = arith.cmpi eq, %12, %c1_i32_38 : i32
    %73 = math.tanh %68 : vector<8x128xf32>
    %74 = arith.negf %68 : vector<8x128xf32>
    %75 = math.exp %74 : vector<8x128xf32>
    %cst_39 = arith.constant 1.000000e+00 : f32
    %76 = vector.broadcast %cst_39 : f32 to vector<8x128xf32>
    %77 = arith.addf %76, %75 : vector<8x128xf32>
    %78 = arith.divf %76, %77 : vector<8x128xf32>
    %79 = arith.select %72, %73, %78 : vector<8x128xf32>
    %80 = arith.select %69, %71, %79 : vector<8x128xf32>
    %c1_i32_40 = arith.constant 1 : i32
    %81 = arith.subi %10, %c1_i32_40 : i32
    %c2_i32_41 = arith.constant 2 : i32
    %82 = arith.cmpi sgt, %81, %c2_i32_41 : i32
    %83 = arith.select %82, %80, %60 : vector<8x128xf32>
    %c0_42 = arith.constant 0 : index
    %c3 = arith.constant 3 : index
    %c0_43 = arith.constant 0 : index
    %c0_44 = arith.constant 0 : index
    %84 = vector.load %arg6[%c0_42, %c3, %c0_43, %c0_44] : memref<7x4x128x128xf32, #tpu.memory_space<vmem>>, vector<1x1x128x128xf32>
    %85 = vector.shape_cast %84 : vector<1x1x128x128xf32> to vector<128x128xf32>
    %cst_45 = arith.constant dense<0.000000e+00> : vector<8x128xf32>
    %86 = tpu.matmul %83, %85, %cst_45 {dimension_numbers = #tpu.dot_dimension_numbers<[1], [0], [0], [1], [0, 0, 1, 1], [], []>} : vector<8x128xf32>, vector<128x128xf32>, vector<8x128xf32> -> vector<8x128xf32>
    %c0_46 = arith.constant 0 : index
    %c3_47 = arith.constant 3 : index
    %c0_48 = arith.constant 0 : index
    %87 = vector.load %arg7[%c0_46, %c3_47, %c0_48] : memref<7x4x128xf32, #tpu.memory_space<vmem>>, vector<1x1x128xf32>
    %88 = vector.shape_cast %87 : vector<1x1x128xf32> to vector<128xf32>
    %89 = vector.shape_cast %88 : vector<128xf32> to vector<1x128xf32>
    %90 = vector.broadcast %89 : vector<1x128xf32> to vector<8x128xf32>
    %91 = arith.addf %86, %90 : vector<8x128xf32>
    %92 = vector.broadcast %14 : f32 to vector<8x128xf32>
    %93 = arith.mulf %92, %91 : vector<8x128xf32>
    %94 = arith.addf %7, %93 : vector<8x128xf32>
    %c1_i32_49 = arith.constant 1 : i32
    %95 = arith.addi %6, %c1_i32_49 : i32
    %96 = arith.index_cast %95 : i32 to index
    %97 = memref.load %arg2[%96] : memref<28xi32, #tpu.memory_space<smem>>
    %98 = arith.index_cast %95 : i32 to index
    %99 = memref.load %arg3[%98] : memref<28xi32, #tpu.memory_space<smem>>
    %100 = arith.index_cast %95 : i32 to index
    %101 = memref.load %arg4[%100] : memref<28xf32, #tpu.memory_space<smem>>
    %c1_50 = arith.constant 1 : index
    %c0_51 = arith.constant 0 : index
    %c0_52 = arith.constant 0 : index
    %c0_53 = arith.constant 0 : index
    %102 = vector.load %arg6[%c1_50, %c0_51, %c0_52, %c0_53] : memref<7x4x128x128xf32, #tpu.memory_space<vmem>>, vector<1x1x128x128xf32>
    %103 = vector.shape_cast %102 : vector<1x1x128x128xf32> to vector<128x128xf32>
    %cst_54 = arith.constant dense<0.000000e+00> : vector<8x128xf32>
    %104 = tpu.matmul %3, %103, %cst_54 {dimension_numbers = #tpu.dot_dimension_numbers<[1], [0], [0], [1], [0, 0, 1, 1], [], []>} : vector<8x128xf32>, vector<128x128xf32>, vector<8x128xf32> -> vector<8x128xf32>
    %c1_55 = arith.constant 1 : index
    %c0_56 = arith.constant 0 : index
    %c0_57 = arith.constant 0 : index
    %105 = vector.load %arg7[%c1_55, %c0_56, %c0_57] : memref<7x4x128xf32, #tpu.memory_space<vmem>>, vector<1x1x128xf32>
    %106 = vector.shape_cast %105 : vector<1x1x128xf32> to vector<128xf32>
    %107 = vector.shape_cast %106 : vector<128xf32> to vector<1x128xf32>
    %108 = vector.broadcast %107 : vector<1x128xf32> to vector<8x128xf32>
    %109 = arith.addf %104, %108 : vector<8x128xf32>
    %c0_i32_58 = arith.constant 0 : i32
    %110 = arith.cmpi eq, %99, %c0_i32_58 : i32
    %cst_59 = arith.constant 0.000000e+00 : f32
    %111 = vector.broadcast %cst_59 : f32 to vector<8x128xf32>
    %112 = arith.maximumf %109, %111 : vector<8x128xf32>
    %c1_i32_60 = arith.constant 1 : i32
    %113 = arith.cmpi eq, %99, %c1_i32_60 : i32
    %114 = math.tanh %109 : vector<8x128xf32>
    %115 = arith.negf %109 : vector<8x128xf32>
    %116 = math.exp %115 : vector<8x128xf32>
    %cst_61 = arith.constant 1.000000e+00 : f32
    %117 = vector.broadcast %cst_61 : f32 to vector<8x128xf32>
    %118 = arith.addf %117, %116 : vector<8x128xf32>
    %119 = arith.divf %117, %118 : vector<8x128xf32>
    %120 = arith.select %113, %114, %119 : vector<8x128xf32>
    %121 = arith.select %110, %112, %120 : vector<8x128xf32>
    %c1_i32_62 = arith.constant 1 : i32
    %122 = arith.subi %97, %c1_i32_62 : i32
    %c0_i32_63 = arith.constant 0 : i32
    %123 = arith.cmpi sgt, %122, %c0_i32_63 : i32
    %124 = arith.select %123, %121, %3 : vector<8x128xf32>
    %c1_64 = arith.constant 1 : index
    %c1_65 = arith.constant 1 : index
    %c0_66 = arith.constant 0 : index
    %c0_67 = arith.constant 0 : index
    %125 = vector.load %arg6[%c1_64, %c1_65, %c0_66, %c0_67] : memref<7x4x128x128xf32, #tpu.memory_space<vmem>>, vector<1x1x128x128xf32>
    %126 = vector.shape_cast %125 : vector<1x1x128x128xf32> to vector<128x128xf32>
    %cst_68 = arith.constant dense<0.000000e+00> : vector<8x128xf32>
    %127 = tpu.matmul %124, %126, %cst_68 {dimension_numbers = #tpu.dot_dimension_numbers<[1], [0], [0], [1], [0, 0, 1, 1], [], []>} : vector<8x128xf32>, vector<128x128xf32>, vector<8x128xf32> -> vector<8x128xf32>
    %c1_69 = arith.constant 1 : index
    %c1_70 = arith.constant 1 : index
    %c0_71 = arith.constant 0 : index
    %128 = vector.load %arg7[%c1_69, %c1_70, %c0_71] : memref<7x4x128xf32, #tpu.memory_space<vmem>>, vector<1x1x128xf32>
    %129 = vector.shape_cast %128 : vector<1x1x128xf32> to vector<128xf32>
    %130 = vector.shape_cast %129 : vector<128xf32> to vector<1x128xf32>
    %131 = vector.broadcast %130 : vector<1x128xf32> to vector<8x128xf32>
    %132 = arith.addf %127, %131 : vector<8x128xf32>
    %c0_i32_72 = arith.constant 0 : i32
    %133 = arith.cmpi eq, %99, %c0_i32_72 : i32
    %cst_73 = arith.constant 0.000000e+00 : f32
    %134 = vector.broadcast %cst_73 : f32 to vector<8x128xf32>
    %135 = arith.maximumf %132, %134 : vector<8x128xf32>
    %c1_i32_74 = arith.constant 1 : i32
    %136 = arith.cmpi eq, %99, %c1_i32_74 : i32
    %137 = math.tanh %132 : vector<8x128xf32>
    %138 = arith.negf %132 : vector<8x128xf32>
    %139 = math.exp %138 : vector<8x128xf32>
    %cst_75 = arith.constant 1.000000e+00 : f32
    %140 = vector.broadcast %cst_75 : f32 to vector<8x128xf32>
    %141 = arith.addf %140, %139 : vector<8x128xf32>
    %142 = arith.divf %140, %141 : vector<8x128xf32>
    %143 = arith.select %136, %137, %142 : vector<8x128xf32>
    %144 = arith.select %133, %135, %143 : vector<8x128xf32>
    %c1_i32_76 = arith.constant 1 : i32
    %145 = arith.subi %97, %c1_i32_76 : i32
    %c1_i32_77 = arith.constant 1 : i32
    %146 = arith.cmpi sgt, %145, %c1_i32_77 : i32
    %147 = arith.select %146, %144, %124 : vector<8x128xf32>
    %c1_78 = arith.constant 1 : index
    %c2_79 = arith.constant 2 : index
    %c0_80 = arith.constant 0 : index
    %c0_81 = arith.constant 0 : index
    %148 = vector.load %arg6[%c1_78, %c2_79, %c0_80, %c0_81] : memref<7x4x128x128xf32, #tpu.memory_space<vmem>>, vector<1x1x128x128xf32>
    %149 = vector.shape_cast %148 : vector<1x1x128x128xf32> to vector<128x128xf32>
    %cst_82 = arith.constant dense<0.000000e+00> : vector<8x128xf32>
    %150 = tpu.matmul %147, %149, %cst_82 {dimension_numbers = #tpu.dot_dimension_numbers<[1], [0], [0], [1], [0, 0, 1, 1], [], []>} : vector<8x128xf32>, vector<128x128xf32>, vector<8x128xf32> -> vector<8x128xf32>
    %c1_83 = arith.constant 1 : index
    %c2_84 = arith.constant 2 : index
    %c0_85 = arith.constant 0 : index
    %151 = vector.load %arg7[%c1_83, %c2_84, %c0_85] : memref<7x4x128xf32, #tpu.memory_space<vmem>>, vector<1x1x128xf32>
    %152 = vector.shape_cast %151 : vector<1x1x128xf32> to vector<128xf32>
    %153 = vector.shape_cast %152 : vector<128xf32> to vector<1x128xf32>
    %154 = vector.broadcast %153 : vector<1x128xf32> to vector<8x128xf32>
    %155 = arith.addf %150, %154 : vector<8x128xf32>
    %c0_i32_86 = arith.constant 0 : i32
    %156 = arith.cmpi eq, %99, %c0_i32_86 : i32
    %cst_87 = arith.constant 0.000000e+00 : f32
    %157 = vector.broadcast %cst_87 : f32 to vector<8x128xf32>
    %158 = arith.maximumf %155, %157 : vector<8x128xf32>
    %c1_i32_88 = arith.constant 1 : i32
    %159 = arith.cmpi eq, %99, %c1_i32_88 : i32
    %160 = math.tanh %155 : vector<8x128xf32>
    %161 = arith.negf %155 : vector<8x128xf32>
    %162 = math.exp %161 : vector<8x128xf32>
    %cst_89 = arith.constant 1.000000e+00 : f32
    %163 = vector.broadcast %cst_89 : f32 to vector<8x128xf32>
    %164 = arith.addf %163, %162 : vector<8x128xf32>
    %165 = arith.divf %163, %164 : vector<8x128xf32>
    %166 = arith.select %159, %160, %165 : vector<8x128xf32>
    %167 = arith.select %156, %158, %166 : vector<8x128xf32>
    %c1_i32_90 = arith.constant 1 : i32
    %168 = arith.subi %97, %c1_i32_90 : i32
    %c2_i32_91 = arith.constant 2 : i32
    %169 = arith.cmpi sgt, %168, %c2_i32_91 : i32
    %170 = arith.select %169, %167, %147 : vector<8x128xf32>
    %c1_92 = arith.constant 1 : index
    %c3_93 = arith.constant 3 : index
    %c0_94 = arith.constant 0 : index
    %c0_95 = arith.constant 0 : index
    %171 = vector.load %arg6[%c1_92, %c3_93, %c0_94, %c0_95] : memref<7x4x128x128xf32, #tpu.memory_space<vmem>>, vector<1x1x128x128xf32>
    %172 = vector.shape_cast %171 : vector<1x1x128x128xf32> to vector<128x128xf32>
    %cst_96 = arith.constant dense<0.000000e+00> : vector<8x128xf32>
    %173 = tpu.matmul %170, %172, %cst_96 {dimension_numbers = #tpu.dot_dimension_numbers<[1], [0], [0], [1], [0, 0, 1, 1], [], []>} : vector<8x128xf32>, vector<128x128xf32>, vector<8x128xf32> -> vector<8x128xf32>
    %c1_97 = arith.constant 1 : index
    %c3_98 = arith.constant 3 : index
    %c0_99 = arith.constant 0 : index
    %174 = vector.load %arg7[%c1_97, %c3_98, %c0_99] : memref<7x4x128xf32, #tpu.memory_space<vmem>>, vector<1x1x128xf32>
    %175 = vector.shape_cast %174 : vector<1x1x128xf32> to vector<128xf32>
    %176 = vector.shape_cast %175 : vector<128xf32> to vector<1x128xf32>
    %177 = vector.broadcast %176 : vector<1x128xf32> to vector<8x128xf32>
    %178 = arith.addf %173, %177 : vector<8x128xf32>
    %179 = vector.broadcast %101 : f32 to vector<8x128xf32>
    %180 = arith.mulf %179, %178 : vector<8x128xf32>
    %181 = arith.addf %94, %180 : vector<8x128xf32>
    %c2_i32_100 = arith.constant 2 : i32
    %182 = arith.addi %6, %c2_i32_100 : i32
    %183 = arith.index_cast %182 : i32 to index
    %184 = memref.load %arg2[%183] : memref<28xi32, #tpu.memory_space<smem>>
    %185 = arith.index_cast %182 : i32 to index
    %186 = memref.load %arg3[%185] : memref<28xi32, #tpu.memory_space<smem>>
    %187 = arith.index_cast %182 : i32 to index
    %188 = memref.load %arg4[%187] : memref<28xf32, #tpu.memory_space<smem>>
    %c2_101 = arith.constant 2 : index
    %c0_102 = arith.constant 0 : index
    %c0_103 = arith.constant 0 : index
    %c0_104 = arith.constant 0 : index
    %189 = vector.load %arg6[%c2_101, %c0_102, %c0_103, %c0_104] : memref<7x4x128x128xf32, #tpu.memory_space<vmem>>, vector<1x1x128x128xf32>
    %190 = vector.shape_cast %189 : vector<1x1x128x128xf32> to vector<128x128xf32>
    %cst_105 = arith.constant dense<0.000000e+00> : vector<8x128xf32>
    %191 = tpu.matmul %3, %190, %cst_105 {dimension_numbers = #tpu.dot_dimension_numbers<[1], [0], [0], [1], [0, 0, 1, 1], [], []>} : vector<8x128xf32>, vector<128x128xf32>, vector<8x128xf32> -> vector<8x128xf32>
    %c2_106 = arith.constant 2 : index
    %c0_107 = arith.constant 0 : index
    %c0_108 = arith.constant 0 : index
    %192 = vector.load %arg7[%c2_106, %c0_107, %c0_108] : memref<7x4x128xf32, #tpu.memory_space<vmem>>, vector<1x1x128xf32>
    %193 = vector.shape_cast %192 : vector<1x1x128xf32> to vector<128xf32>
    %194 = vector.shape_cast %193 : vector<128xf32> to vector<1x128xf32>
    %195 = vector.broadcast %194 : vector<1x128xf32> to vector<8x128xf32>
    %196 = arith.addf %191, %195 : vector<8x128xf32>
    %c0_i32_109 = arith.constant 0 : i32
    %197 = arith.cmpi eq, %186, %c0_i32_109 : i32
    %cst_110 = arith.constant 0.000000e+00 : f32
    %198 = vector.broadcast %cst_110 : f32 to vector<8x128xf32>
    %199 = arith.maximumf %196, %198 : vector<8x128xf32>
    %c1_i32_111 = arith.constant 1 : i32
    %200 = arith.cmpi eq, %186, %c1_i32_111 : i32
    %201 = math.tanh %196 : vector<8x128xf32>
    %202 = arith.negf %196 : vector<8x128xf32>
    %203 = math.exp %202 : vector<8x128xf32>
    %cst_112 = arith.constant 1.000000e+00 : f32
    %204 = vector.broadcast %cst_112 : f32 to vector<8x128xf32>
    %205 = arith.addf %204, %203 : vector<8x128xf32>
    %206 = arith.divf %204, %205 : vector<8x128xf32>
    %207 = arith.select %200, %201, %206 : vector<8x128xf32>
    %208 = arith.select %197, %199, %207 : vector<8x128xf32>
    %c1_i32_113 = arith.constant 1 : i32
    %209 = arith.subi %184, %c1_i32_113 : i32
    %c0_i32_114 = arith.constant 0 : i32
    %210 = arith.cmpi sgt, %209, %c0_i32_114 : i32
    %211 = arith.select %210, %208, %3 : vector<8x128xf32>
    %c2_115 = arith.constant 2 : index
    %c1_116 = arith.constant 1 : index
    %c0_117 = arith.constant 0 : index
    %c0_118 = arith.constant 0 : index
    %212 = vector.load %arg6[%c2_115, %c1_116, %c0_117, %c0_118] : memref<7x4x128x128xf32, #tpu.memory_space<vmem>>, vector<1x1x128x128xf32>
    %213 = vector.shape_cast %212 : vector<1x1x128x128xf32> to vector<128x128xf32>
    %cst_119 = arith.constant dense<0.000000e+00> : vector<8x128xf32>
    %214 = tpu.matmul %211, %213, %cst_119 {dimension_numbers = #tpu.dot_dimension_numbers<[1], [0], [0], [1], [0, 0, 1, 1], [], []>} : vector<8x128xf32>, vector<128x128xf32>, vector<8x128xf32> -> vector<8x128xf32>
    %c2_120 = arith.constant 2 : index
    %c1_121 = arith.constant 1 : index
    %c0_122 = arith.constant 0 : index
    %215 = vector.load %arg7[%c2_120, %c1_121, %c0_122] : memref<7x4x128xf32, #tpu.memory_space<vmem>>, vector<1x1x128xf32>
    %216 = vector.shape_cast %215 : vector<1x1x128xf32> to vector<128xf32>
    %217 = vector.shape_cast %216 : vector<128xf32> to vector<1x128xf32>
    %218 = vector.broadcast %217 : vector<1x128xf32> to vector<8x128xf32>
    %219 = arith.addf %214, %218 : vector<8x128xf32>
    %c0_i32_123 = arith.constant 0 : i32
    %220 = arith.cmpi eq, %186, %c0_i32_123 : i32
    %cst_124 = arith.constant 0.000000e+00 : f32
    %221 = vector.broadcast %cst_124 : f32 to vector<8x128xf32>
    %222 = arith.maximumf %219, %221 : vector<8x128xf32>
    %c1_i32_125 = arith.constant 1 : i32
    %223 = arith.cmpi eq, %186, %c1_i32_125 : i32
    %224 = math.tanh %219 : vector<8x128xf32>
    %225 = arith.negf %219 : vector<8x128xf32>
    %226 = math.exp %225 : vector<8x128xf32>
    %cst_126 = arith.constant 1.000000e+00 : f32
    %227 = vector.broadcast %cst_126 : f32 to vector<8x128xf32>
    %228 = arith.addf %227, %226 : vector<8x128xf32>
    %229 = arith.divf %227, %228 : vector<8x128xf32>
    %230 = arith.select %223, %224, %229 : vector<8x128xf32>
    %231 = arith.select %220, %222, %230 : vector<8x128xf32>
    %c1_i32_127 = arith.constant 1 : i32
    %232 = arith.subi %184, %c1_i32_127 : i32
    %c1_i32_128 = arith.constant 1 : i32
    %233 = arith.cmpi sgt, %232, %c1_i32_128 : i32
    %234 = arith.select %233, %231, %211 : vector<8x128xf32>
    %c2_129 = arith.constant 2 : index
    %c2_130 = arith.constant 2 : index
    %c0_131 = arith.constant 0 : index
    %c0_132 = arith.constant 0 : index
    %235 = vector.load %arg6[%c2_129, %c2_130, %c0_131, %c0_132] : memref<7x4x128x128xf32, #tpu.memory_space<vmem>>, vector<1x1x128x128xf32>
    %236 = vector.shape_cast %235 : vector<1x1x128x128xf32> to vector<128x128xf32>
    %cst_133 = arith.constant dense<0.000000e+00> : vector<8x128xf32>
    %237 = tpu.matmul %234, %236, %cst_133 {dimension_numbers = #tpu.dot_dimension_numbers<[1], [0], [0], [1], [0, 0, 1, 1], [], []>} : vector<8x128xf32>, vector<128x128xf32>, vector<8x128xf32> -> vector<8x128xf32>
    %c2_134 = arith.constant 2 : index
    %c2_135 = arith.constant 2 : index
    %c0_136 = arith.constant 0 : index
    %238 = vector.load %arg7[%c2_134, %c2_135, %c0_136] : memref<7x4x128xf32, #tpu.memory_space<vmem>>, vector<1x1x128xf32>
    %239 = vector.shape_cast %238 : vector<1x1x128xf32> to vector<128xf32>
    %240 = vector.shape_cast %239 : vector<128xf32> to vector<1x128xf32>
    %241 = vector.broadcast %240 : vector<1x128xf32> to vector<8x128xf32>
    %242 = arith.addf %237, %241 : vector<8x128xf32>
    %c0_i32_137 = arith.constant 0 : i32
    %243 = arith.cmpi eq, %186, %c0_i32_137 : i32
    %cst_138 = arith.constant 0.000000e+00 : f32
    %244 = vector.broadcast %cst_138 : f32 to vector<8x128xf32>
    %245 = arith.maximumf %242, %244 : vector<8x128xf32>
    %c1_i32_139 = arith.constant 1 : i32
    %246 = arith.cmpi eq, %186, %c1_i32_139 : i32
    %247 = math.tanh %242 : vector<8x128xf32>
    %248 = arith.negf %242 : vector<8x128xf32>
    %249 = math.exp %248 : vector<8x128xf32>
    %cst_140 = arith.constant 1.000000e+00 : f32
    %250 = vector.broadcast %cst_140 : f32 to vector<8x128xf32>
    %251 = arith.addf %250, %249 : vector<8x128xf32>
    %252 = arith.divf %250, %251 : vector<8x128xf32>
    %253 = arith.select %246, %247, %252 : vector<8x128xf32>
    %254 = arith.select %243, %245, %253 : vector<8x128xf32>
    %c1_i32_141 = arith.constant 1 : i32
    %255 = arith.subi %184, %c1_i32_141 : i32
    %c2_i32_142 = arith.constant 2 : i32
    %256 = arith.cmpi sgt, %255, %c2_i32_142 : i32
    %257 = arith.select %256, %254, %234 : vector<8x128xf32>
    %c2_143 = arith.constant 2 : index
    %c3_144 = arith.constant 3 : index
    %c0_145 = arith.constant 0 : index
    %c0_146 = arith.constant 0 : index
    %258 = vector.load %arg6[%c2_143, %c3_144, %c0_145, %c0_146] : memref<7x4x128x128xf32, #tpu.memory_space<vmem>>, vector<1x1x128x128xf32>
    %259 = vector.shape_cast %258 : vector<1x1x128x128xf32> to vector<128x128xf32>
    %cst_147 = arith.constant dense<0.000000e+00> : vector<8x128xf32>
    %260 = tpu.matmul %257, %259, %cst_147 {dimension_numbers = #tpu.dot_dimension_numbers<[1], [0], [0], [1], [0, 0, 1, 1], [], []>} : vector<8x128xf32>, vector<128x128xf32>, vector<8x128xf32> -> vector<8x128xf32>
    %c2_148 = arith.constant 2 : index
    %c3_149 = arith.constant 3 : index
    %c0_150 = arith.constant 0 : index
    %261 = vector.load %arg7[%c2_148, %c3_149, %c0_150] : memref<7x4x128xf32, #tpu.memory_space<vmem>>, vector<1x1x128xf32>
    %262 = vector.shape_cast %261 : vector<1x1x128xf32> to vector<128xf32>
    %263 = vector.shape_cast %262 : vector<128xf32> to vector<1x128xf32>
    %264 = vector.broadcast %263 : vector<1x128xf32> to vector<8x128xf32>
    %265 = arith.addf %260, %264 : vector<8x128xf32>
    %266 = vector.broadcast %188 : f32 to vector<8x128xf32>
    %267 = arith.mulf %266, %265 : vector<8x128xf32>
    %268 = arith.addf %181, %267 : vector<8x128xf32>
    %c3_i32 = arith.constant 3 : i32
    %269 = arith.addi %6, %c3_i32 : i32
    %270 = arith.index_cast %269 : i32 to index
    %271 = memref.load %arg2[%270] : memref<28xi32, #tpu.memory_space<smem>>
    %272 = arith.index_cast %269 : i32 to index
    %273 = memref.load %arg3[%272] : memref<28xi32, #tpu.memory_space<smem>>
    %274 = arith.index_cast %269 : i32 to index
    %275 = memref.load %arg4[%274] : memref<28xf32, #tpu.memory_space<smem>>
    %c3_151 = arith.constant 3 : index
    %c0_152 = arith.constant 0 : index
    %c0_153 = arith.constant 0 : index
    %c0_154 = arith.constant 0 : index
    %276 = vector.load %arg6[%c3_151, %c0_152, %c0_153, %c0_154] : memref<7x4x128x128xf32, #tpu.memory_space<vmem>>, vector<1x1x128x128xf32>
    %277 = vector.shape_cast %276 : vector<1x1x128x128xf32> to vector<128x128xf32>
    %cst_155 = arith.constant dense<0.000000e+00> : vector<8x128xf32>
    %278 = tpu.matmul %3, %277, %cst_155 {dimension_numbers = #tpu.dot_dimension_numbers<[1], [0], [0], [1], [0, 0, 1, 1], [], []>} : vector<8x128xf32>, vector<128x128xf32>, vector<8x128xf32> -> vector<8x128xf32>
    %c3_156 = arith.constant 3 : index
    %c0_157 = arith.constant 0 : index
    %c0_158 = arith.constant 0 : index
    %279 = vector.load %arg7[%c3_156, %c0_157, %c0_158] : memref<7x4x128xf32, #tpu.memory_space<vmem>>, vector<1x1x128xf32>
    %280 = vector.shape_cast %279 : vector<1x1x128xf32> to vector<128xf32>
    %281 = vector.shape_cast %280 : vector<128xf32> to vector<1x128xf32>
    %282 = vector.broadcast %281 : vector<1x128xf32> to vector<8x128xf32>
    %283 = arith.addf %278, %282 : vector<8x128xf32>
    %c0_i32_159 = arith.constant 0 : i32
    %284 = arith.cmpi eq, %273, %c0_i32_159 : i32
    %cst_160 = arith.constant 0.000000e+00 : f32
    %285 = vector.broadcast %cst_160 : f32 to vector<8x128xf32>
    %286 = arith.maximumf %283, %285 : vector<8x128xf32>
    %c1_i32_161 = arith.constant 1 : i32
    %287 = arith.cmpi eq, %273, %c1_i32_161 : i32
    %288 = math.tanh %283 : vector<8x128xf32>
    %289 = arith.negf %283 : vector<8x128xf32>
    %290 = math.exp %289 : vector<8x128xf32>
    %cst_162 = arith.constant 1.000000e+00 : f32
    %291 = vector.broadcast %cst_162 : f32 to vector<8x128xf32>
    %292 = arith.addf %291, %290 : vector<8x128xf32>
    %293 = arith.divf %291, %292 : vector<8x128xf32>
    %294 = arith.select %287, %288, %293 : vector<8x128xf32>
    %295 = arith.select %284, %286, %294 : vector<8x128xf32>
    %c1_i32_163 = arith.constant 1 : i32
    %296 = arith.subi %271, %c1_i32_163 : i32
    %c0_i32_164 = arith.constant 0 : i32
    %297 = arith.cmpi sgt, %296, %c0_i32_164 : i32
    %298 = arith.select %297, %295, %3 : vector<8x128xf32>
    %c3_165 = arith.constant 3 : index
    %c1_166 = arith.constant 1 : index
    %c0_167 = arith.constant 0 : index
    %c0_168 = arith.constant 0 : index
    %299 = vector.load %arg6[%c3_165, %c1_166, %c0_167, %c0_168] : memref<7x4x128x128xf32, #tpu.memory_space<vmem>>, vector<1x1x128x128xf32>
    %300 = vector.shape_cast %299 : vector<1x1x128x128xf32> to vector<128x128xf32>
    %cst_169 = arith.constant dense<0.000000e+00> : vector<8x128xf32>
    %301 = tpu.matmul %298, %300, %cst_169 {dimension_numbers = #tpu.dot_dimension_numbers<[1], [0], [0], [1], [0, 0, 1, 1], [], []>} : vector<8x128xf32>, vector<128x128xf32>, vector<8x128xf32> -> vector<8x128xf32>
    %c3_170 = arith.constant 3 : index
    %c1_171 = arith.constant 1 : index
    %c0_172 = arith.constant 0 : index
    %302 = vector.load %arg7[%c3_170, %c1_171, %c0_172] : memref<7x4x128xf32, #tpu.memory_space<vmem>>, vector<1x1x128xf32>
    %303 = vector.shape_cast %302 : vector<1x1x128xf32> to vector<128xf32>
    %304 = vector.shape_cast %303 : vector<128xf32> to vector<1x128xf32>
    %305 = vector.broadcast %304 : vector<1x128xf32> to vector<8x128xf32>
    %306 = arith.addf %301, %305 : vector<8x128xf32>
    %c0_i32_173 = arith.constant 0 : i32
    %307 = arith.cmpi eq, %273, %c0_i32_173 : i32
    %cst_174 = arith.constant 0.000000e+00 : f32
    %308 = vector.broadcast %cst_174 : f32 to vector<8x128xf32>
    %309 = arith.maximumf %306, %308 : vector<8x128xf32>
    %c1_i32_175 = arith.constant 1 : i32
    %310 = arith.cmpi eq, %273, %c1_i32_175 : i32
    %311 = math.tanh %306 : vector<8x128xf32>
    %312 = arith.negf %306 : vector<8x128xf32>
    %313 = math.exp %312 : vector<8x128xf32>
    %cst_176 = arith.constant 1.000000e+00 : f32
    %314 = vector.broadcast %cst_176 : f32 to vector<8x128xf32>
    %315 = arith.addf %314, %313 : vector<8x128xf32>
    %316 = arith.divf %314, %315 : vector<8x128xf32>
    %317 = arith.select %310, %311, %316 : vector<8x128xf32>
    %318 = arith.select %307, %309, %317 : vector<8x128xf32>
    %c1_i32_177 = arith.constant 1 : i32
    %319 = arith.subi %271, %c1_i32_177 : i32
    %c1_i32_178 = arith.constant 1 : i32
    %320 = arith.cmpi sgt, %319, %c1_i32_178 : i32
    %321 = arith.select %320, %318, %298 : vector<8x128xf32>
    %c3_179 = arith.constant 3 : index
    %c2_180 = arith.constant 2 : index
    %c0_181 = arith.constant 0 : index
    %c0_182 = arith.constant 0 : index
    %322 = vector.load %arg6[%c3_179, %c2_180, %c0_181, %c0_182] : memref<7x4x128x128xf32, #tpu.memory_space<vmem>>, vector<1x1x128x128xf32>
    %323 = vector.shape_cast %322 : vector<1x1x128x128xf32> to vector<128x128xf32>
    %cst_183 = arith.constant dense<0.000000e+00> : vector<8x128xf32>
    %324 = tpu.matmul %321, %323, %cst_183 {dimension_numbers = #tpu.dot_dimension_numbers<[1], [0], [0], [1], [0, 0, 1, 1], [], []>} : vector<8x128xf32>, vector<128x128xf32>, vector<8x128xf32> -> vector<8x128xf32>
    %c3_184 = arith.constant 3 : index
    %c2_185 = arith.constant 2 : index
    %c0_186 = arith.constant 0 : index
    %325 = vector.load %arg7[%c3_184, %c2_185, %c0_186] : memref<7x4x128xf32, #tpu.memory_space<vmem>>, vector<1x1x128xf32>
    %326 = vector.shape_cast %325 : vector<1x1x128xf32> to vector<128xf32>
    %327 = vector.shape_cast %326 : vector<128xf32> to vector<1x128xf32>
    %328 = vector.broadcast %327 : vector<1x128xf32> to vector<8x128xf32>
    %329 = arith.addf %324, %328 : vector<8x128xf32>
    %c0_i32_187 = arith.constant 0 : i32
    %330 = arith.cmpi eq, %273, %c0_i32_187 : i32
    %cst_188 = arith.constant 0.000000e+00 : f32
    %331 = vector.broadcast %cst_188 : f32 to vector<8x128xf32>
    %332 = arith.maximumf %329, %331 : vector<8x128xf32>
    %c1_i32_189 = arith.constant 1 : i32
    %333 = arith.cmpi eq, %273, %c1_i32_189 : i32
    %334 = math.tanh %329 : vector<8x128xf32>
    %335 = arith.negf %329 : vector<8x128xf32>
    %336 = math.exp %335 : vector<8x128xf32>
    %cst_190 = arith.constant 1.000000e+00 : f32
    %337 = vector.broadcast %cst_190 : f32 to vector<8x128xf32>
    %338 = arith.addf %337, %336 : vector<8x128xf32>
    %339 = arith.divf %337, %338 : vector<8x128xf32>
    %340 = arith.select %333, %334, %339 : vector<8x128xf32>
    %341 = arith.select %330, %332, %340 : vector<8x128xf32>
    %c1_i32_191 = arith.constant 1 : i32
    %342 = arith.subi %271, %c1_i32_191 : i32
    %c2_i32_192 = arith.constant 2 : i32
    %343 = arith.cmpi sgt, %342, %c2_i32_192 : i32
    %344 = arith.select %343, %341, %321 : vector<8x128xf32>
    %c3_193 = arith.constant 3 : index
    %c3_194 = arith.constant 3 : index
    %c0_195 = arith.constant 0 : index
    %c0_196 = arith.constant 0 : index
    %345 = vector.load %arg6[%c3_193, %c3_194, %c0_195, %c0_196] : memref<7x4x128x128xf32, #tpu.memory_space<vmem>>, vector<1x1x128x128xf32>
    %346 = vector.shape_cast %345 : vector<1x1x128x128xf32> to vector<128x128xf32>
    %cst_197 = arith.constant dense<0.000000e+00> : vector<8x128xf32>
    %347 = tpu.matmul %344, %346, %cst_197 {dimension_numbers = #tpu.dot_dimension_numbers<[1], [0], [0], [1], [0, 0, 1, 1], [], []>} : vector<8x128xf32>, vector<128x128xf32>, vector<8x128xf32> -> vector<8x128xf32>
    %c3_198 = arith.constant 3 : index
    %c3_199 = arith.constant 3 : index
    %c0_200 = arith.constant 0 : index
    %348 = vector.load %arg7[%c3_198, %c3_199, %c0_200] : memref<7x4x128xf32, #tpu.memory_space<vmem>>, vector<1x1x128xf32>
    %349 = vector.shape_cast %348 : vector<1x1x128xf32> to vector<128xf32>
    %350 = vector.shape_cast %349 : vector<128xf32> to vector<1x128xf32>
    %351 = vector.broadcast %350 : vector<1x128xf32> to vector<8x128xf32>
    %352 = arith.addf %347, %351 : vector<8x128xf32>
    %353 = vector.broadcast %275 : f32 to vector<8x128xf32>
    %354 = arith.mulf %353, %352 : vector<8x128xf32>
    %355 = arith.addf %268, %354 : vector<8x128xf32>
    %c4_i32 = arith.constant 4 : i32
    %356 = arith.addi %6, %c4_i32 : i32
    %357 = arith.index_cast %356 : i32 to index
    %358 = memref.load %arg2[%357] : memref<28xi32, #tpu.memory_space<smem>>
    %359 = arith.index_cast %356 : i32 to index
    %360 = memref.load %arg3[%359] : memref<28xi32, #tpu.memory_space<smem>>
    %361 = arith.index_cast %356 : i32 to index
    %362 = memref.load %arg4[%361] : memref<28xf32, #tpu.memory_space<smem>>
    %c4 = arith.constant 4 : index
    %c0_201 = arith.constant 0 : index
    %c0_202 = arith.constant 0 : index
    %c0_203 = arith.constant 0 : index
    %363 = vector.load %arg6[%c4, %c0_201, %c0_202, %c0_203] : memref<7x4x128x128xf32, #tpu.memory_space<vmem>>, vector<1x1x128x128xf32>
    %364 = vector.shape_cast %363 : vector<1x1x128x128xf32> to vector<128x128xf32>
    %cst_204 = arith.constant dense<0.000000e+00> : vector<8x128xf32>
    %365 = tpu.matmul %3, %364, %cst_204 {dimension_numbers = #tpu.dot_dimension_numbers<[1], [0], [0], [1], [0, 0, 1, 1], [], []>} : vector<8x128xf32>, vector<128x128xf32>, vector<8x128xf32> -> vector<8x128xf32>
    %c4_205 = arith.constant 4 : index
    %c0_206 = arith.constant 0 : index
    %c0_207 = arith.constant 0 : index
    %366 = vector.load %arg7[%c4_205, %c0_206, %c0_207] : memref<7x4x128xf32, #tpu.memory_space<vmem>>, vector<1x1x128xf32>
    %367 = vector.shape_cast %366 : vector<1x1x128xf32> to vector<128xf32>
    %368 = vector.shape_cast %367 : vector<128xf32> to vector<1x128xf32>
    %369 = vector.broadcast %368 : vector<1x128xf32> to vector<8x128xf32>
    %370 = arith.addf %365, %369 : vector<8x128xf32>
    %c0_i32_208 = arith.constant 0 : i32
    %371 = arith.cmpi eq, %360, %c0_i32_208 : i32
    %cst_209 = arith.constant 0.000000e+00 : f32
    %372 = vector.broadcast %cst_209 : f32 to vector<8x128xf32>
    %373 = arith.maximumf %370, %372 : vector<8x128xf32>
    %c1_i32_210 = arith.constant 1 : i32
    %374 = arith.cmpi eq, %360, %c1_i32_210 : i32
    %375 = math.tanh %370 : vector<8x128xf32>
    %376 = arith.negf %370 : vector<8x128xf32>
    %377 = math.exp %376 : vector<8x128xf32>
    %cst_211 = arith.constant 1.000000e+00 : f32
    %378 = vector.broadcast %cst_211 : f32 to vector<8x128xf32>
    %379 = arith.addf %378, %377 : vector<8x128xf32>
    %380 = arith.divf %378, %379 : vector<8x128xf32>
    %381 = arith.select %374, %375, %380 : vector<8x128xf32>
    %382 = arith.select %371, %373, %381 : vector<8x128xf32>
    %c1_i32_212 = arith.constant 1 : i32
    %383 = arith.subi %358, %c1_i32_212 : i32
    %c0_i32_213 = arith.constant 0 : i32
    %384 = arith.cmpi sgt, %383, %c0_i32_213 : i32
    %385 = arith.select %384, %382, %3 : vector<8x128xf32>
    %c4_214 = arith.constant 4 : index
    %c1_215 = arith.constant 1 : index
    %c0_216 = arith.constant 0 : index
    %c0_217 = arith.constant 0 : index
    %386 = vector.load %arg6[%c4_214, %c1_215, %c0_216, %c0_217] : memref<7x4x128x128xf32, #tpu.memory_space<vmem>>, vector<1x1x128x128xf32>
    %387 = vector.shape_cast %386 : vector<1x1x128x128xf32> to vector<128x128xf32>
    %cst_218 = arith.constant dense<0.000000e+00> : vector<8x128xf32>
    %388 = tpu.matmul %385, %387, %cst_218 {dimension_numbers = #tpu.dot_dimension_numbers<[1], [0], [0], [1], [0, 0, 1, 1], [], []>} : vector<8x128xf32>, vector<128x128xf32>, vector<8x128xf32> -> vector<8x128xf32>
    %c4_219 = arith.constant 4 : index
    %c1_220 = arith.constant 1 : index
    %c0_221 = arith.constant 0 : index
    %389 = vector.load %arg7[%c4_219, %c1_220, %c0_221] : memref<7x4x128xf32, #tpu.memory_space<vmem>>, vector<1x1x128xf32>
    %390 = vector.shape_cast %389 : vector<1x1x128xf32> to vector<128xf32>
    %391 = vector.shape_cast %390 : vector<128xf32> to vector<1x128xf32>
    %392 = vector.broadcast %391 : vector<1x128xf32> to vector<8x128xf32>
    %393 = arith.addf %388, %392 : vector<8x128xf32>
    %c0_i32_222 = arith.constant 0 : i32
    %394 = arith.cmpi eq, %360, %c0_i32_222 : i32
    %cst_223 = arith.constant 0.000000e+00 : f32
    %395 = vector.broadcast %cst_223 : f32 to vector<8x128xf32>
    %396 = arith.maximumf %393, %395 : vector<8x128xf32>
    %c1_i32_224 = arith.constant 1 : i32
    %397 = arith.cmpi eq, %360, %c1_i32_224 : i32
    %398 = math.tanh %393 : vector<8x128xf32>
    %399 = arith.negf %393 : vector<8x128xf32>
    %400 = math.exp %399 : vector<8x128xf32>
    %cst_225 = arith.constant 1.000000e+00 : f32
    %401 = vector.broadcast %cst_225 : f32 to vector<8x128xf32>
    %402 = arith.addf %401, %400 : vector<8x128xf32>
    %403 = arith.divf %401, %402 : vector<8x128xf32>
    %404 = arith.select %397, %398, %403 : vector<8x128xf32>
    %405 = arith.select %394, %396, %404 : vector<8x128xf32>
    %c1_i32_226 = arith.constant 1 : i32
    %406 = arith.subi %358, %c1_i32_226 : i32
    %c1_i32_227 = arith.constant 1 : i32
    %407 = arith.cmpi sgt, %406, %c1_i32_227 : i32
    %408 = arith.select %407, %405, %385 : vector<8x128xf32>
    %c4_228 = arith.constant 4 : index
    %c2_229 = arith.constant 2 : index
    %c0_230 = arith.constant 0 : index
    %c0_231 = arith.constant 0 : index
    %409 = vector.load %arg6[%c4_228, %c2_229, %c0_230, %c0_231] : memref<7x4x128x128xf32, #tpu.memory_space<vmem>>, vector<1x1x128x128xf32>
    %410 = vector.shape_cast %409 : vector<1x1x128x128xf32> to vector<128x128xf32>
    %cst_232 = arith.constant dense<0.000000e+00> : vector<8x128xf32>
    %411 = tpu.matmul %408, %410, %cst_232 {dimension_numbers = #tpu.dot_dimension_numbers<[1], [0], [0], [1], [0, 0, 1, 1], [], []>} : vector<8x128xf32>, vector<128x128xf32>, vector<8x128xf32> -> vector<8x128xf32>
    %c4_233 = arith.constant 4 : index
    %c2_234 = arith.constant 2 : index
    %c0_235 = arith.constant 0 : index
    %412 = vector.load %arg7[%c4_233, %c2_234, %c0_235] : memref<7x4x128xf32, #tpu.memory_space<vmem>>, vector<1x1x128xf32>
    %413 = vector.shape_cast %412 : vector<1x1x128xf32> to vector<128xf32>
    %414 = vector.shape_cast %413 : vector<128xf32> to vector<1x128xf32>
    %415 = vector.broadcast %414 : vector<1x128xf32> to vector<8x128xf32>
    %416 = arith.addf %411, %415 : vector<8x128xf32>
    %c0_i32_236 = arith.constant 0 : i32
    %417 = arith.cmpi eq, %360, %c0_i32_236 : i32
    %cst_237 = arith.constant 0.000000e+00 : f32
    %418 = vector.broadcast %cst_237 : f32 to vector<8x128xf32>
    %419 = arith.maximumf %416, %418 : vector<8x128xf32>
    %c1_i32_238 = arith.constant 1 : i32
    %420 = arith.cmpi eq, %360, %c1_i32_238 : i32
    %421 = math.tanh %416 : vector<8x128xf32>
    %422 = arith.negf %416 : vector<8x128xf32>
    %423 = math.exp %422 : vector<8x128xf32>
    %cst_239 = arith.constant 1.000000e+00 : f32
    %424 = vector.broadcast %cst_239 : f32 to vector<8x128xf32>
    %425 = arith.addf %424, %423 : vector<8x128xf32>
    %426 = arith.divf %424, %425 : vector<8x128xf32>
    %427 = arith.select %420, %421, %426 : vector<8x128xf32>
    %428 = arith.select %417, %419, %427 : vector<8x128xf32>
    %c1_i32_240 = arith.constant 1 : i32
    %429 = arith.subi %358, %c1_i32_240 : i32
    %c2_i32_241 = arith.constant 2 : i32
    %430 = arith.cmpi sgt, %429, %c2_i32_241 : i32
    %431 = arith.select %430, %428, %408 : vector<8x128xf32>
    %c4_242 = arith.constant 4 : index
    %c3_243 = arith.constant 3 : index
    %c0_244 = arith.constant 0 : index
    %c0_245 = arith.constant 0 : index
    %432 = vector.load %arg6[%c4_242, %c3_243, %c0_244, %c0_245] : memref<7x4x128x128xf32, #tpu.memory_space<vmem>>, vector<1x1x128x128xf32>
    %433 = vector.shape_cast %432 : vector<1x1x128x128xf32> to vector<128x128xf32>
    %cst_246 = arith.constant dense<0.000000e+00> : vector<8x128xf32>
    %434 = tpu.matmul %431, %433, %cst_246 {dimension_numbers = #tpu.dot_dimension_numbers<[1], [0], [0], [1], [0, 0, 1, 1], [], []>} : vector<8x128xf32>, vector<128x128xf32>, vector<8x128xf32> -> vector<8x128xf32>
    %c4_247 = arith.constant 4 : index
    %c3_248 = arith.constant 3 : index
    %c0_249 = arith.constant 0 : index
    %435 = vector.load %arg7[%c4_247, %c3_248, %c0_249] : memref<7x4x128xf32, #tpu.memory_space<vmem>>, vector<1x1x128xf32>
    %436 = vector.shape_cast %435 : vector<1x1x128xf32> to vector<128xf32>
    %437 = vector.shape_cast %436 : vector<128xf32> to vector<1x128xf32>
    %438 = vector.broadcast %437 : vector<1x128xf32> to vector<8x128xf32>
    %439 = arith.addf %434, %438 : vector<8x128xf32>
    %440 = vector.broadcast %362 : f32 to vector<8x128xf32>
    %441 = arith.mulf %440, %439 : vector<8x128xf32>
    %442 = arith.addf %355, %441 : vector<8x128xf32>
    %c5_i32 = arith.constant 5 : i32
    %443 = arith.addi %6, %c5_i32 : i32
    %444 = arith.index_cast %443 : i32 to index
    %445 = memref.load %arg2[%444] : memref<28xi32, #tpu.memory_space<smem>>
    %446 = arith.index_cast %443 : i32 to index
    %447 = memref.load %arg3[%446] : memref<28xi32, #tpu.memory_space<smem>>
    %448 = arith.index_cast %443 : i32 to index
    %449 = memref.load %arg4[%448] : memref<28xf32, #tpu.memory_space<smem>>
    %c5 = arith.constant 5 : index
    %c0_250 = arith.constant 0 : index
    %c0_251 = arith.constant 0 : index
    %c0_252 = arith.constant 0 : index
    %450 = vector.load %arg6[%c5, %c0_250, %c0_251, %c0_252] : memref<7x4x128x128xf32, #tpu.memory_space<vmem>>, vector<1x1x128x128xf32>
    %451 = vector.shape_cast %450 : vector<1x1x128x128xf32> to vector<128x128xf32>
    %cst_253 = arith.constant dense<0.000000e+00> : vector<8x128xf32>
    %452 = tpu.matmul %3, %451, %cst_253 {dimension_numbers = #tpu.dot_dimension_numbers<[1], [0], [0], [1], [0, 0, 1, 1], [], []>} : vector<8x128xf32>, vector<128x128xf32>, vector<8x128xf32> -> vector<8x128xf32>
    %c5_254 = arith.constant 5 : index
    %c0_255 = arith.constant 0 : index
    %c0_256 = arith.constant 0 : index
    %453 = vector.load %arg7[%c5_254, %c0_255, %c0_256] : memref<7x4x128xf32, #tpu.memory_space<vmem>>, vector<1x1x128xf32>
    %454 = vector.shape_cast %453 : vector<1x1x128xf32> to vector<128xf32>
    %455 = vector.shape_cast %454 : vector<128xf32> to vector<1x128xf32>
    %456 = vector.broadcast %455 : vector<1x128xf32> to vector<8x128xf32>
    %457 = arith.addf %452, %456 : vector<8x128xf32>
    %c0_i32_257 = arith.constant 0 : i32
    %458 = arith.cmpi eq, %447, %c0_i32_257 : i32
    %cst_258 = arith.constant 0.000000e+00 : f32
    %459 = vector.broadcast %cst_258 : f32 to vector<8x128xf32>
    %460 = arith.maximumf %457, %459 : vector<8x128xf32>
    %c1_i32_259 = arith.constant 1 : i32
    %461 = arith.cmpi eq, %447, %c1_i32_259 : i32
    %462 = math.tanh %457 : vector<8x128xf32>
    %463 = arith.negf %457 : vector<8x128xf32>
    %464 = math.exp %463 : vector<8x128xf32>
    %cst_260 = arith.constant 1.000000e+00 : f32
    %465 = vector.broadcast %cst_260 : f32 to vector<8x128xf32>
    %466 = arith.addf %465, %464 : vector<8x128xf32>
    %467 = arith.divf %465, %466 : vector<8x128xf32>
    %468 = arith.select %461, %462, %467 : vector<8x128xf32>
    %469 = arith.select %458, %460, %468 : vector<8x128xf32>
    %c1_i32_261 = arith.constant 1 : i32
    %470 = arith.subi %445, %c1_i32_261 : i32
    %c0_i32_262 = arith.constant 0 : i32
    %471 = arith.cmpi sgt, %470, %c0_i32_262 : i32
    %472 = arith.select %471, %469, %3 : vector<8x128xf32>
    %c5_263 = arith.constant 5 : index
    %c1_264 = arith.constant 1 : index
    %c0_265 = arith.constant 0 : index
    %c0_266 = arith.constant 0 : index
    %473 = vector.load %arg6[%c5_263, %c1_264, %c0_265, %c0_266] : memref<7x4x128x128xf32, #tpu.memory_space<vmem>>, vector<1x1x128x128xf32>
    %474 = vector.shape_cast %473 : vector<1x1x128x128xf32> to vector<128x128xf32>
    %cst_267 = arith.constant dense<0.000000e+00> : vector<8x128xf32>
    %475 = tpu.matmul %472, %474, %cst_267 {dimension_numbers = #tpu.dot_dimension_numbers<[1], [0], [0], [1], [0, 0, 1, 1], [], []>} : vector<8x128xf32>, vector<128x128xf32>, vector<8x128xf32> -> vector<8x128xf32>
    %c5_268 = arith.constant 5 : index
    %c1_269 = arith.constant 1 : index
    %c0_270 = arith.constant 0 : index
    %476 = vector.load %arg7[%c5_268, %c1_269, %c0_270] : memref<7x4x128xf32, #tpu.memory_space<vmem>>, vector<1x1x128xf32>
    %477 = vector.shape_cast %476 : vector<1x1x128xf32> to vector<128xf32>
    %478 = vector.shape_cast %477 : vector<128xf32> to vector<1x128xf32>
    %479 = vector.broadcast %478 : vector<1x128xf32> to vector<8x128xf32>
    %480 = arith.addf %475, %479 : vector<8x128xf32>
    %c0_i32_271 = arith.constant 0 : i32
    %481 = arith.cmpi eq, %447, %c0_i32_271 : i32
    %cst_272 = arith.constant 0.000000e+00 : f32
    %482 = vector.broadcast %cst_272 : f32 to vector<8x128xf32>
    %483 = arith.maximumf %480, %482 : vector<8x128xf32>
    %c1_i32_273 = arith.constant 1 : i32
    %484 = arith.cmpi eq, %447, %c1_i32_273 : i32
    %485 = math.tanh %480 : vector<8x128xf32>
    %486 = arith.negf %480 : vector<8x128xf32>
    %487 = math.exp %486 : vector<8x128xf32>
    %cst_274 = arith.constant 1.000000e+00 : f32
    %488 = vector.broadcast %cst_274 : f32 to vector<8x128xf32>
    %489 = arith.addf %488, %487 : vector<8x128xf32>
    %490 = arith.divf %488, %489 : vector<8x128xf32>
    %491 = arith.select %484, %485, %490 : vector<8x128xf32>
    %492 = arith.select %481, %483, %491 : vector<8x128xf32>
    %c1_i32_275 = arith.constant 1 : i32
    %493 = arith.subi %445, %c1_i32_275 : i32
    %c1_i32_276 = arith.constant 1 : i32
    %494 = arith.cmpi sgt, %493, %c1_i32_276 : i32
    %495 = arith.select %494, %492, %472 : vector<8x128xf32>
    %c5_277 = arith.constant 5 : index
    %c2_278 = arith.constant 2 : index
    %c0_279 = arith.constant 0 : index
    %c0_280 = arith.constant 0 : index
    %496 = vector.load %arg6[%c5_277, %c2_278, %c0_279, %c0_280] : memref<7x4x128x128xf32, #tpu.memory_space<vmem>>, vector<1x1x128x128xf32>
    %497 = vector.shape_cast %496 : vector<1x1x128x128xf32> to vector<128x128xf32>
    %cst_281 = arith.constant dense<0.000000e+00> : vector<8x128xf32>
    %498 = tpu.matmul %495, %497, %cst_281 {dimension_numbers = #tpu.dot_dimension_numbers<[1], [0], [0], [1], [0, 0, 1, 1], [], []>} : vector<8x128xf32>, vector<128x128xf32>, vector<8x128xf32> -> vector<8x128xf32>
    %c5_282 = arith.constant 5 : index
    %c2_283 = arith.constant 2 : index
    %c0_284 = arith.constant 0 : index
    %499 = vector.load %arg7[%c5_282, %c2_283, %c0_284] : memref<7x4x128xf32, #tpu.memory_space<vmem>>, vector<1x1x128xf32>
    %500 = vector.shape_cast %499 : vector<1x1x128xf32> to vector<128xf32>
    %501 = vector.shape_cast %500 : vector<128xf32> to vector<1x128xf32>
    %502 = vector.broadcast %501 : vector<1x128xf32> to vector<8x128xf32>
    %503 = arith.addf %498, %502 : vector<8x128xf32>
    %c0_i32_285 = arith.constant 0 : i32
    %504 = arith.cmpi eq, %447, %c0_i32_285 : i32
    %cst_286 = arith.constant 0.000000e+00 : f32
    %505 = vector.broadcast %cst_286 : f32 to vector<8x128xf32>
    %506 = arith.maximumf %503, %505 : vector<8x128xf32>
    %c1_i32_287 = arith.constant 1 : i32
    %507 = arith.cmpi eq, %447, %c1_i32_287 : i32
    %508 = math.tanh %503 : vector<8x128xf32>
    %509 = arith.negf %503 : vector<8x128xf32>
    %510 = math.exp %509 : vector<8x128xf32>
    %cst_288 = arith.constant 1.000000e+00 : f32
    %511 = vector.broadcast %cst_288 : f32 to vector<8x128xf32>
    %512 = arith.addf %511, %510 : vector<8x128xf32>
    %513 = arith.divf %511, %512 : vector<8x128xf32>
    %514 = arith.select %507, %508, %513 : vector<8x128xf32>
    %515 = arith.select %504, %506, %514 : vector<8x128xf32>
    %c1_i32_289 = arith.constant 1 : i32
    %516 = arith.subi %445, %c1_i32_289 : i32
    %c2_i32_290 = arith.constant 2 : i32
    %517 = arith.cmpi sgt, %516, %c2_i32_290 : i32
    %518 = arith.select %517, %515, %495 : vector<8x128xf32>
    %c5_291 = arith.constant 5 : index
    %c3_292 = arith.constant 3 : index
    %c0_293 = arith.constant 0 : index
    %c0_294 = arith.constant 0 : index
    %519 = vector.load %arg6[%c5_291, %c3_292, %c0_293, %c0_294] : memref<7x4x128x128xf32, #tpu.memory_space<vmem>>, vector<1x1x128x128xf32>
    %520 = vector.shape_cast %519 : vector<1x1x128x128xf32> to vector<128x128xf32>
    %cst_295 = arith.constant dense<0.000000e+00> : vector<8x128xf32>
    %521 = tpu.matmul %518, %520, %cst_295 {dimension_numbers = #tpu.dot_dimension_numbers<[1], [0], [0], [1], [0, 0, 1, 1], [], []>} : vector<8x128xf32>, vector<128x128xf32>, vector<8x128xf32> -> vector<8x128xf32>
    %c5_296 = arith.constant 5 : index
    %c3_297 = arith.constant 3 : index
    %c0_298 = arith.constant 0 : index
    %522 = vector.load %arg7[%c5_296, %c3_297, %c0_298] : memref<7x4x128xf32, #tpu.memory_space<vmem>>, vector<1x1x128xf32>
    %523 = vector.shape_cast %522 : vector<1x1x128xf32> to vector<128xf32>
    %524 = vector.shape_cast %523 : vector<128xf32> to vector<1x128xf32>
    %525 = vector.broadcast %524 : vector<1x128xf32> to vector<8x128xf32>
    %526 = arith.addf %521, %525 : vector<8x128xf32>
    %527 = vector.broadcast %449 : f32 to vector<8x128xf32>
    %528 = arith.mulf %527, %526 : vector<8x128xf32>
    %529 = arith.addf %442, %528 : vector<8x128xf32>
    %c6_i32 = arith.constant 6 : i32
    %530 = arith.addi %6, %c6_i32 : i32
    %531 = arith.index_cast %530 : i32 to index
    %532 = memref.load %arg2[%531] : memref<28xi32, #tpu.memory_space<smem>>
    %533 = arith.index_cast %530 : i32 to index
    %534 = memref.load %arg3[%533] : memref<28xi32, #tpu.memory_space<smem>>
    %535 = arith.index_cast %530 : i32 to index
    %536 = memref.load %arg4[%535] : memref<28xf32, #tpu.memory_space<smem>>
    %c6 = arith.constant 6 : index
    %c0_299 = arith.constant 0 : index
    %c0_300 = arith.constant 0 : index
    %c0_301 = arith.constant 0 : index
    %537 = vector.load %arg6[%c6, %c0_299, %c0_300, %c0_301] : memref<7x4x128x128xf32, #tpu.memory_space<vmem>>, vector<1x1x128x128xf32>
    %538 = vector.shape_cast %537 : vector<1x1x128x128xf32> to vector<128x128xf32>
    %cst_302 = arith.constant dense<0.000000e+00> : vector<8x128xf32>
    %539 = tpu.matmul %3, %538, %cst_302 {dimension_numbers = #tpu.dot_dimension_numbers<[1], [0], [0], [1], [0, 0, 1, 1], [], []>} : vector<8x128xf32>, vector<128x128xf32>, vector<8x128xf32> -> vector<8x128xf32>
    %c6_303 = arith.constant 6 : index
    %c0_304 = arith.constant 0 : index
    %c0_305 = arith.constant 0 : index
    %540 = vector.load %arg7[%c6_303, %c0_304, %c0_305] : memref<7x4x128xf32, #tpu.memory_space<vmem>>, vector<1x1x128xf32>
    %541 = vector.shape_cast %540 : vector<1x1x128xf32> to vector<128xf32>
    %542 = vector.shape_cast %541 : vector<128xf32> to vector<1x128xf32>
    %543 = vector.broadcast %542 : vector<1x128xf32> to vector<8x128xf32>
    %544 = arith.addf %539, %543 : vector<8x128xf32>
    %c0_i32_306 = arith.constant 0 : i32
    %545 = arith.cmpi eq, %534, %c0_i32_306 : i32
    %cst_307 = arith.constant 0.000000e+00 : f32
    %546 = vector.broadcast %cst_307 : f32 to vector<8x128xf32>
    %547 = arith.maximumf %544, %546 : vector<8x128xf32>
    %c1_i32_308 = arith.constant 1 : i32
    %548 = arith.cmpi eq, %534, %c1_i32_308 : i32
    %549 = math.tanh %544 : vector<8x128xf32>
    %550 = arith.negf %544 : vector<8x128xf32>
    %551 = math.exp %550 : vector<8x128xf32>
    %cst_309 = arith.constant 1.000000e+00 : f32
    %552 = vector.broadcast %cst_309 : f32 to vector<8x128xf32>
    %553 = arith.addf %552, %551 : vector<8x128xf32>
    %554 = arith.divf %552, %553 : vector<8x128xf32>
    %555 = arith.select %548, %549, %554 : vector<8x128xf32>
    %556 = arith.select %545, %547, %555 : vector<8x128xf32>
    %c1_i32_310 = arith.constant 1 : i32
    %557 = arith.subi %532, %c1_i32_310 : i32
    %c0_i32_311 = arith.constant 0 : i32
    %558 = arith.cmpi sgt, %557, %c0_i32_311 : i32
    %559 = arith.select %558, %556, %3 : vector<8x128xf32>
    %c6_312 = arith.constant 6 : index
    %c1_313 = arith.constant 1 : index
    %c0_314 = arith.constant 0 : index
    %c0_315 = arith.constant 0 : index
    %560 = vector.load %arg6[%c6_312, %c1_313, %c0_314, %c0_315] : memref<7x4x128x128xf32, #tpu.memory_space<vmem>>, vector<1x1x128x128xf32>
    %561 = vector.shape_cast %560 : vector<1x1x128x128xf32> to vector<128x128xf32>
    %cst_316 = arith.constant dense<0.000000e+00> : vector<8x128xf32>
    %562 = tpu.matmul %559, %561, %cst_316 {dimension_numbers = #tpu.dot_dimension_numbers<[1], [0], [0], [1], [0, 0, 1, 1], [], []>} : vector<8x128xf32>, vector<128x128xf32>, vector<8x128xf32> -> vector<8x128xf32>
    %c6_317 = arith.constant 6 : index
    %c1_318 = arith.constant 1 : index
    %c0_319 = arith.constant 0 : index
    %563 = vector.load %arg7[%c6_317, %c1_318, %c0_319] : memref<7x4x128xf32, #tpu.memory_space<vmem>>, vector<1x1x128xf32>
    %564 = vector.shape_cast %563 : vector<1x1x128xf32> to vector<128xf32>
    %565 = vector.shape_cast %564 : vector<128xf32> to vector<1x128xf32>
    %566 = vector.broadcast %565 : vector<1x128xf32> to vector<8x128xf32>
    %567 = arith.addf %562, %566 : vector<8x128xf32>
    %c0_i32_320 = arith.constant 0 : i32
    %568 = arith.cmpi eq, %534, %c0_i32_320 : i32
    %cst_321 = arith.constant 0.000000e+00 : f32
    %569 = vector.broadcast %cst_321 : f32 to vector<8x128xf32>
    %570 = arith.maximumf %567, %569 : vector<8x128xf32>
    %c1_i32_322 = arith.constant 1 : i32
    %571 = arith.cmpi eq, %534, %c1_i32_322 : i32
    %572 = math.tanh %567 : vector<8x128xf32>
    %573 = arith.negf %567 : vector<8x128xf32>
    %574 = math.exp %573 : vector<8x128xf32>
    %cst_323 = arith.constant 1.000000e+00 : f32
    %575 = vector.broadcast %cst_323 : f32 to vector<8x128xf32>
    %576 = arith.addf %575, %574 : vector<8x128xf32>
    %577 = arith.divf %575, %576 : vector<8x128xf32>
    %578 = arith.select %571, %572, %577 : vector<8x128xf32>
    %579 = arith.select %568, %570, %578 : vector<8x128xf32>
    %c1_i32_324 = arith.constant 1 : i32
    %580 = arith.subi %532, %c1_i32_324 : i32
    %c1_i32_325 = arith.constant 1 : i32
    %581 = arith.cmpi sgt, %580, %c1_i32_325 : i32
    %582 = arith.select %581, %579, %559 : vector<8x128xf32>
    %c6_326 = arith.constant 6 : index
    %c2_327 = arith.constant 2 : index
    %c0_328 = arith.constant 0 : index
    %c0_329 = arith.constant 0 : index
    %583 = vector.load %arg6[%c6_326, %c2_327, %c0_328, %c0_329] : memref<7x4x128x128xf32, #tpu.memory_space<vmem>>, vector<1x1x128x128xf32>
    %584 = vector.shape_cast %583 : vector<1x1x128x128xf32> to vector<128x128xf32>
    %cst_330 = arith.constant dense<0.000000e+00> : vector<8x128xf32>
    %585 = tpu.matmul %582, %584, %cst_330 {dimension_numbers = #tpu.dot_dimension_numbers<[1], [0], [0], [1], [0, 0, 1, 1], [], []>} : vector<8x128xf32>, vector<128x128xf32>, vector<8x128xf32> -> vector<8x128xf32>
    %c6_331 = arith.constant 6 : index
    %c2_332 = arith.constant 2 : index
    %c0_333 = arith.constant 0 : index
    %586 = vector.load %arg7[%c6_331, %c2_332, %c0_333] : memref<7x4x128xf32, #tpu.memory_space<vmem>>, vector<1x1x128xf32>
    %587 = vector.shape_cast %586 : vector<1x1x128xf32> to vector<128xf32>
    %588 = vector.shape_cast %587 : vector<128xf32> to vector<1x128xf32>
    %589 = vector.broadcast %588 : vector<1x128xf32> to vector<8x128xf32>
    %590 = arith.addf %585, %589 : vector<8x128xf32>
    %c0_i32_334 = arith.constant 0 : i32
    %591 = arith.cmpi eq, %534, %c0_i32_334 : i32
    %cst_335 = arith.constant 0.000000e+00 : f32
    %592 = vector.broadcast %cst_335 : f32 to vector<8x128xf32>
    %593 = arith.maximumf %590, %592 : vector<8x128xf32>
    %c1_i32_336 = arith.constant 1 : i32
    %594 = arith.cmpi eq, %534, %c1_i32_336 : i32
    %595 = math.tanh %590 : vector<8x128xf32>
    %596 = arith.negf %590 : vector<8x128xf32>
    %597 = math.exp %596 : vector<8x128xf32>
    %cst_337 = arith.constant 1.000000e+00 : f32
    %598 = vector.broadcast %cst_337 : f32 to vector<8x128xf32>
    %599 = arith.addf %598, %597 : vector<8x128xf32>
    %600 = arith.divf %598, %599 : vector<8x128xf32>
    %601 = arith.select %594, %595, %600 : vector<8x128xf32>
    %602 = arith.select %591, %593, %601 : vector<8x128xf32>
    %c1_i32_338 = arith.constant 1 : i32
    %603 = arith.subi %532, %c1_i32_338 : i32
    %c2_i32_339 = arith.constant 2 : i32
    %604 = arith.cmpi sgt, %603, %c2_i32_339 : i32
    %605 = arith.select %604, %602, %582 : vector<8x128xf32>
    %c6_340 = arith.constant 6 : index
    %c3_341 = arith.constant 3 : index
    %c0_342 = arith.constant 0 : index
    %c0_343 = arith.constant 0 : index
    %606 = vector.load %arg6[%c6_340, %c3_341, %c0_342, %c0_343] : memref<7x4x128x128xf32, #tpu.memory_space<vmem>>, vector<1x1x128x128xf32>
    %607 = vector.shape_cast %606 : vector<1x1x128x128xf32> to vector<128x128xf32>
    %cst_344 = arith.constant dense<0.000000e+00> : vector<8x128xf32>
    %608 = tpu.matmul %605, %607, %cst_344 {dimension_numbers = #tpu.dot_dimension_numbers<[1], [0], [0], [1], [0, 0, 1, 1], [], []>} : vector<8x128xf32>, vector<128x128xf32>, vector<8x128xf32> -> vector<8x128xf32>
    %c6_345 = arith.constant 6 : index
    %c3_346 = arith.constant 3 : index
    %c0_347 = arith.constant 0 : index
    %609 = vector.load %arg7[%c6_345, %c3_346, %c0_347] : memref<7x4x128xf32, #tpu.memory_space<vmem>>, vector<1x1x128xf32>
    %610 = vector.shape_cast %609 : vector<1x1x128xf32> to vector<128xf32>
    %611 = vector.shape_cast %610 : vector<128xf32> to vector<1x128xf32>
    %612 = vector.broadcast %611 : vector<1x128xf32> to vector<8x128xf32>
    %613 = arith.addf %608, %612 : vector<8x128xf32>
    %614 = vector.broadcast %536 : f32 to vector<8x128xf32>
    %615 = arith.mulf %614, %613 : vector<8x128xf32>
    %616 = arith.addf %529, %615 : vector<8x128xf32>
    %c0_348 = arith.constant 0 : index
    %c0_349 = arith.constant 0 : index
    %c0_350 = arith.constant 0 : index
    %617 = vector.load %arg8[%c0_348, %c0_349, %c0_350] : memref<1x8x128xf32, #tpu.memory_space<vmem>>, vector<1x8x128xf32>
    %618 = vector.shape_cast %616 : vector<8x128xf32> to vector<1x8x128xf32>
    %619 = arith.addf %617, %618 : vector<1x8x128xf32>
    %c0_351 = arith.constant 0 : index
    %c0_352 = arith.constant 0 : index
    %c0_353 = arith.constant 0 : index
    %620 = vector.load %arg8[%c0_351, %c0_352, %c0_353] : memref<1x8x128xf32, #tpu.memory_space<vmem>>, vector<1x8x128xf32>
    tpu.vector_store %arg8[%c0_351, %c0_352, %c0_353], %619 {strides = array<i32>} : memref<1x8x128xf32, #tpu.memory_space<vmem>>, vector<1x8x128xf32>,
    return
  }
  func.func @transform_0(%arg0: i32, %arg1: i32, %arg2: memref<28xi32, #tpu.memory_space<smem>>, %arg3: memref<28xi32, #tpu.memory_space<smem>>, %arg4: memref<28xf32, #tpu.memory_space<smem>>) -> (i32, i32) {
    %c0_i32 = arith.constant 0 : i32
    %c0_i32_0 = arith.constant 0 : i32
    %c0_i32_1 = arith.constant 0 : i32
    return %c0_i32, %c0_i32_0 : i32, i32
  }
  func.func @transform_1(%arg0: i32, %arg1: i32, %arg2: memref<28xi32, #tpu.memory_space<smem>>, %arg3: memref<28xi32, #tpu.memory_space<smem>>, %arg4: memref<28xf32, #tpu.memory_space<smem>>) -> (i32, i32, i32, i32) {
    %c2_i32 = arith.constant 2 : i32
    %0 = arith.muli %arg0, %c2_i32 : i32
    %1 = arith.addi %0, %arg1 : i32
    %c0_i32 = arith.constant 0 : i32
    %c0_i32_0 = arith.constant 0 : i32
    %c0_i32_1 = arith.constant 0 : i32
    %c0_i32_2 = arith.constant 0 : i32
    return %1, %c0_i32, %c0_i32_0, %c0_i32_1 : i32, i32, i32, i32
  }
  func.func @transform_2(%arg0: i32, %arg1: i32, %arg2: memref<28xi32, #tpu.memory_space<smem>>, %arg3: memref<28xi32, #tpu.memory_space<smem>>, %arg4: memref<28xf32, #tpu.memory_space<smem>>) -> (i32, i32, i32) {
    %c2_i32 = arith.constant 2 : i32
    %0 = arith.muli %arg0, %c2_i32 : i32
    %1 = arith.addi %0, %arg1 : i32
    %c0_i32 = arith.constant 0 : i32
    %c0_i32_0 = arith.constant 0 : i32
    %c0_i32_1 = arith.constant 0 : i32
    return %1, %c0_i32, %c0_i32_0 : i32, i32, i32
  }
  func.func @transform_3(%arg0: i32, %arg1: i32, %arg2: memref<28xi32, #tpu.memory_space<smem>>, %arg3: memref<28xi32, #tpu.memory_space<smem>>, %arg4: memref<28xf32, #tpu.memory_space<smem>>) -> (i32, i32, i32) {
    %c0_i32 = arith.constant 0 : i32
    %c0_i32_0 = arith.constant 0 : i32
    %c0_i32_1 = arith.constant 0 : i32
    return %arg0, %c0_i32, %c0_i32_0 : i32, i32, i32
  }
}

</mosaic_0001>

<bundles_post_ra>
// kernel: tpu_custom_call.1
= control target key start
LH: loop header
LB: loop body
LE: loop exit
PB: predicated region body
PF: predicated region fallthrough
CT: control target
= control target key end

     0   :  { %s8109_s0 = inlined_call_operand.hbm [shape: s32[28], index: 0, kind: input, shape index: {}]   ;;  %s8110_s3 = inlined_call_operand.hbm [shape: f32[8,128], index: 3, kind: input, shape index: {}]   ;;  %s8111_s4 = inlined_call_operand.hbm [shape: f32[28,4,128,128], index: 4, kind: input, shape index: {}]   ;;  %s8112_s5 = inlined_call_operand.hbm [shape: f32[28,4,128], index: 5, kind: input, shape index: {}]   ;;  %s8113_s6 = inlined_call_operand.hbm [shape: f32[2,8,128], index: 6, kind: output, shape index: {}]   ;;  %s8114_s1 = inlined_call_operand.hbm [shape: s32[28], index: 1, kind: input, shape index: {}]   ;;  %s8115_s2 = inlined_call_operand.hbm [shape: f32[28], index: 2, kind: input, shape index: {}]  }
   0x1   :  { %8128 = sst [smem:[#allocation24_spill]] %s8111_s4  ;;  %s6359_s23 = scalar_lea.hbm %s8109_s0, 16 }
   0x2   :  { %p6360_p0 = scmp.ne.s32.totalorder %s8109_s0, %s6359_s23  ;;  %p6363_p1 = scmp.lt.u32.totalorder %s6359_s23, %s8109_s0 }
   0x4   :  { %p6365_p2 = pnand %p6363_p1, %p6360_p0 }
   0x6   :  { %6368 = shalt.err (!%p6365_p2)  }
   0x7   :  { %s6607_s28 = smov [#allocation3]   ;;  %s6369_s9 = scalar_lea.hbm %s8114_s1, 16 }
   0x8   :  { %12 = dma.hbm_to_smem %s8109_s0, 16, %s6607_s28, [#allocation2] }
   0x9   :  { %p6370_p3 = scmp.ne.s32.totalorder %s8114_s1, %s6369_s9  ;;  %p6373_p4 = scmp.lt.u32.totalorder %s6369_s9, %s8114_s1 }
   0xb   :  { %p6375_p5 = pnand %p6373_p4, %p6370_p3 }
   0xd   :  { %6378 = shalt.err (!%p6375_p5)  }
   0xe   :  { %s6608_s14 = smov [#allocation4]   ;;  %s6379_s18 = scalar_lea.hbm %s8115_s2, 16 }
   0xf   :  { %14 = dma.hbm_to_smem %s8114_s1, 16, %s6608_s14, [#allocation2] }
  0x10   :  { %p6380_p6 = scmp.ne.s32.totalorder %s8115_s2, %s6379_s18  ;;  %p6383_p7 = scmp.lt.u32.totalorder %s6379_s18, %s8115_s2 }
  0x12   :  { %p6385_p8 = pnand %p6383_p7, %p6380_p6 }
  0x14   :  { %6388 = shalt.err (!%p6385_p8)  }
  0x15   :  { %s6609_s23 = smov [#allocation5]  }
  0x16   :  { %16 = dma.hbm_to_smem %s8115_s2, 16, %s6609_s23, [#allocation2] }
  0x17   :  { %6549 = dma.done.wait [#allocation2], 48 }
  0x18   :  { %6550 = vsyncadd [#allocation2], 4294967248 }
  0x19   :  { %18 = sfence }
  0x1a   :  { %19 = vsyncpa [#allocation7], 0 }
  0x1b   :  { %20 = vsyncpa [#allocation10], 0 }
  0x1c   :  { %22 = vsyncpa [#allocation10 + $0x1], 0 }
  0x1d   :  { %23 = vsyncpa [#allocation8], 0 }
  0x1e   :  { %25 = vsyncpa [#allocation8 + $0x1], 0  ;;  %s6693_s1 = smov 0   ;;  %s6695_s26 = smov 0  }
  0x1f   :  { %s6697_s27 = smov 0   ;;  %s6699_s28 = smov 0  }
  0x20   :  { %s6701_s29 = smov 0   ;;  %s6703_s30 = smov 0  }
  0x21   :  { %s6705_s2 = smov 0   ;;  %s6707_s7 = smov 0  }
  0x22   :  { %s6709_s8 = smov 0   ;;  %s6711_s9 = smov 0  }
  0x23   :  { %s6713_s10 = smov 0  }
  0x24 LB: > { %8129 = sst [smem:[#allocation17_spill]] %s6585_s30  ;;  %s40_s11 = sadd.s32 1, %s6597_s8  ;;  %s6605_s10 = sphi %s6713_s10, %s31_s10   ;;  %s6601_s9 = sphi %s6711_s9, %s8188_s9   ;;  %s6597_s8 = sphi %s6709_s8, %s8187_s8   ;;  %s6593_s7 = sphi %s6707_s7, %s8186_s7   ;;  %s6589_s2 = sphi %s6705_s2, %s8185_s2   ;;  %s6585_s30 = sphi %s6703_s30, %s8184_s30   ;;  %s6581_s29 = sphi %s6701_s29, %s8193_s29   ;;  %s6577_s28 = sphi %s6699_s28, %s8192_s28   ;;  %s6573_s27 = sphi %s6697_s27, %s8191_s27   ;;  %s6569_s26 = sphi %s6695_s26, %s8190_s26   ;;  %s6565_s1 = sphi %s6693_s1, %s8189_s1  }
  0x25   : > { %8130 = sst [smem:[#allocation18_spill]] %s6597_s8  ;;  %s43_s12 = sadd.s32 1, %s6601_s9 }
  0x26   : > { %8131 = sst [smem:[#allocation19_spill]] %s6601_s9  ;;  %p41_p9 = scmp.ge.s32.totalorder %s40_s11, 2 }
  0x27   : > { %s3433_s13 = sshll.u32 %s6601_s9, 1  ;;  %s75_s15 = sadd.s32 1, %s6585_s30 }
  0x28   : > { %s6752_s14 = sadd.s32 %s6597_s8, %s3433_s13  ;;  %s8195_s11 = smov (%p41_p9, %s40_s11), 0 }
  0x29   : > { %8132 = sst [smem:[#allocation20_spill]] %s8195_s11  ;;  %s8197_s12 = smov (!%p41_p9, %s43_s12), %s6601_s9 }
  0x2a   : > { %p82_p10 = scmp.ne.s32.totalorder %s6585_s30, %s6581_s29  ;;  %p83_p11 = scmp.eq.s32.totalorder %s6605_s10, 0 }
  0x2b   : > { %p45_p12 = scmp.ge.s32.totalorder %s8197_s12, 2  ;;  %p6128_p0 = scmp.lt.s32.totalorder %s6605_s10, 4 }
  0x2c   : > { %p6761_p13 = por %p83_p11, %p82_p10  ;;  %s179_s0 = sand.u32 1, %s6605_s10  }
  0x2d   : > { %s8199_s12 = smov (%p45_p12, %s8197_s12), 0  ;;  %s181_s17 = sand.u32 1, %s6585_s30  }
  0x2e   : > { %8134 = sst [smem:[#allocation21_spill]] %s8199_s12  ;;  %s3434_s18 = sshll.u32 %s8199_s12, 1 }
  0x2f   : > { %s128_s19 = ssub.s32 %s6601_s9, %s8199_s12  ;;  %s71_s20 = sadd.s32 %s3434_s18, %s8195_s11 }
  0x30   : > { %p6774_p1 = scmp.eq.s32.totalorder %s128_s19, 0  ;;  %s72_s22 = ssub.s32 %s6752_s14, %s71_s20 }
  0x31   : > { %p73_p2 = scmp.eq.s32.totalorder %s72_s22, 0  ;;  %s6098_s23 = smul.u32 3584, %s181_s17 }
  0x32   : > { %s3969_s24 = smul.u32 57344, %s6752_s14  ;;  %p6782_p3 = pnand %p6128_p0, %p6761_p13 }
  0x33   : > { %s6787_s13 = scalar_select %p73_p2, %s6585_s30, %s75_s15  }
  0x34   : > { %s8136_s25 = scalar_select %p6782_p3, 1, 0 }
  0x35   : > { %8137 = sst [smem:[#allocation22_spill]] %s6787_s13  ;;  %s8138_s4 = sld [smem:[#allocation24_spill]] }
  0x36   : > { %s183_s19 = scalar_lea.vmem [#allocation9], %s6098_s23  ;;  %s6796_s16 = smul.u32 28, %s181_s17 }
  0x37   : > { %s193_s20 = sshll.u32 %s183_s19, 4  ;;  %s6798_s22 = scalar_lea.sflag [#allocation10], %s179_s0  ;;  %s6794_s20 = int_to_ptr.vmem [resolvable:$true] %s193_s20 }
  0x38   : > { %p8122_p5 = pneg %p6782_p3 }
  0x3b   : > { %s6792_s18 = scalar_lea.hbm %s8138_s4, %s3969_s24  ;;  %s6394_s15 = scalar_lea.hbm %s8138_s4, 229376 }
  0x3c   : > { %s6389_s11 = scalar_lea.hbm %s6792_s18, 57344  ;;  %p6395_p8 = scmp.lt.u32.totalorder %s6792_s18, %s8138_s4 }
  0x3d   : > { %p6390_p4 = scmp.ne.s32.totalorder %s6792_s18, %s6389_s11  ;;  %p6396_p9 = scmp.lt.u32.totalorder %s6394_s15, %s6389_s11 }
  0x3e   : > { %p6398_p11 = scmp.lt.u32.totalorder %s6389_s11, %s6792_s18 }
  0x3f   : > { %p6392_p6 = pnand %p8122_p5, %p6390_p4  ;;  %p6397_p10 = por %p6396_p9, %p6395_p8 }
  0x41   : > { %p6393_p7 = pneg %p6392_p6  ;;  %p6399_p12 = por %p6398_p11, %p6397_p10 }
  0x43   : > { %p6400_p13 = pnand %p6399_p12, %p6393_p7 }
  0x45   : > { %6403 = shalt.err (!%p6400_p13)
}
  0x46   : > { %s6404_s0 = scalar_lea.vmem %s6794_s20, 57344  ;;  %s6610_s17 = smov [#allocation9]  }
  0x47   : > { %p6405_p0 = scmp.ne.s32.totalorder %s6794_s20, %s6404_s0  ;;  %s6409_s19 = sshll.u32 %s6610_s17, 4  ;;  %s6410_s19 = int_to_ptr.vmem [resolvable:$false] %s6409_s19 }
  0x48   : > { %s6411_s8 = scalar_lea.vmem %s6410_s19, 114688  ;;  %p6412_p6 = scmp.lt.s32.totalorder %s6794_s20, %s6410_s19 }
  0x49   : > { %p6407_p2 = pnand %p6405_p0, %p8122_p5  ;;  %p6413_p8 = scmp.lt.s32.totalorder %s6411_s8, %s6404_s0 }
  0x4b   : > { %p6408_p4 = pneg %p6407_p2  ;;  %p6414_p9 = por %p6413_p8, %p6412_p6 }
  0x4d   : > { %p6415_p10 = pnand %p6414_p9, %p6408_p4 }
  0x4f   : > { %6418 = shalt.err (!%p6415_p10)
}
  0x50   : > { %s6611_s11 = smov 128   ;;  %s6612_s12 = smov 8  }
  0x51   : > { %6119 = dma.hbm_to_vmem [thread:$0]  (!%p6782_p3), %s6792_s18, 57344, %s6794_s20, %s6798_s22, %s6611_s11, %s6611_s11, %s6612_s12  }
  0x52   : > { %s6827_s15 = sadd.s32 4294967295, %s6605_s10   ;;  %s3432_s23 = sadd.s32 4294967294, %s6605_s10  }
  0x53   : > { %p88_p7 = scmp.ne.s32.totalorder %s6581_s29, %s6577_s28  ;;  %p8121_p11 = scmp.eq.s32.totalorder %s6827_s15, 0 }
  0x54   : > { %s131_s24 = sadd.s32 1, %s6573_s27  ;;  %p141_p13 = scmp.ne.s32.totalorder %s6573_s27, %s6569_s26 }
  0x55   : > { %s6837_s0 = scalar_select %p6774_p1, %s6573_s27, %s131_s24  }
  0x56   : > { %p6841_p12 = por %p8121_p11, %p88_p7  ;;  %p142_p0 = scmp.eq.s32.totalorder %s6827_s15, 3 }
  0x57   : > { %8139 = sst [smem:[#allocation23_spill]] %s6837_s0  ;;  %p147_p2 = scmp.ne.s32.totalorder %s6569_s26, %s6565_s1 }
  0x58   : > { %s8140_s17 = scalar_select %p6841_p12, 1, 0 }
  0x59   : > { %p148_p4 = scmp.eq.s32.totalorder %s3432_s23, 3  ;;  %p3437_p6 = scmp.ge.s32.totalorder %s6605_s10, 1 }
  0x5a   : > { %p6851_p8 = por %p142_p0, %p141_p13  ;;  %p155_p9 = scmp.lt.s32.totalorder %s6605_s10, 5 }
  0x5b   : > { %p6856_p10 = por %p148_p4, %p147_p2  ;;  %s6613_s20 = smov [#allocation6]  }
  0x5c   : > { %s8141_s28 = scalar_select %p6851_p8, 1, 0 }
  0x5d   : > { %s8142_s21 = scalar_select %p6856_p10, 1, 0 }
  0x5e   : > { %p6860_p1 = pnand %p3437_p6, %p155_p9  ;;  %s168_s19 = sshll.u32 %s6613_s20, 4  ;;  %s169_s19 = int_to_ptr.vmem [resolvable:$true] %s168_s19 }
  0x5f   : > { %s3968_s8 = smul.u32 448, %s6752_s14  ;;  %s207_s24 = scalar_lea.vmem [#allocation11], %s6796_s16 }
  0x60   : > { %s8143_s18 = scalar_select %p6860_p1, 1, 0 }
  0x61   : > { %p6112_p7 = pneg %p6860_p1  ;;  %s6870_s23 = scalar_lea.hbm %s8112_s5, %s3968_s8 }
  0x62   : > { %s216_s4 = sshll.u32 %s207_s24, 4  ;;  %s6419_s13 = scalar_lea.hbm %s8110_s3, 128  ;;  %s6879_s4 = int_to_ptr.vmem [resolvable:$true] %s216_s4 }
  0x63   : > { %p6875_p13 = pnand %p6112_p7, %p8121_p11  ;;  %p6420_p0 = scmp.ne.s32.totalorder %s8110_s3, %s6419_s13 }
  0x64   : > { %p6426_p9 = scmp.lt.u32.totalorder %s6419_s13, %s8110_s3 }
  0x65   : > { %p6421_p2 = pneg %p6875_p13 }
  0x67   : > { %p6422_p4 = pnand %p6421_p2, %p6420_p0 }
  0x69   : > { %p6423_p6 = pneg %p6422_p4 }
  0x6b   : > { %p6428_p7 = pnand %p6426_p9, %p6423_p6 }
  0x6d   : > { %6431 = shalt.err (!%p6428_p7)
}
  0x6e   : > { %s6432_s11 = scalar_lea.vmem %s169_s19, 128  ;;  %p6440_p8 = scmp.lt.s32.totalorder %s169_s19, %s169_s19 }
  0x6f   : > { %p6433_p11 = scmp.ne.s32.totalorder %s169_s19, %s6432_s11  ;;  %p6441_p12 = scmp.lt.s32.totalorder %s6432_s11, %s6432_s11 }
  0x71   : > { %p6435_p5 = pnand %p6433_p11, %p6421_p2  ;;  %p6442_p1 = por %p6441_p12, %p6440_p8 }
  0x73   : > { %p6436_p10 = pneg %p6435_p5 }
  0x75   : > { %p6443_p3 = pnand %p6442_p1, %p6436_p10 }
  0x77   : > { %6446 = shalt.err (!%p6443_p3)
}
  0x78   : > { %6115 = dma.hbm_to_vmem [thread:$0]  (!%p6875_p13), %s8110_s3, 128, %s169_s19, [#allocation7]  }
  0x79   : > { %s6447_s13 = scalar_lea.hbm %s6870_s23, 448  ;;  %p8145_p11 = scmp.ne.s32.totalorder %s8136_s25, 0 }
  0x7a   : > { %p6448_p0 = scmp.ne.s32.totalorder %s6870_s23, %s6447_s13  ;;  %s6452_s20 = scalar_lea.hbm %s8112_s5, 1792 }
  0x7b   : > { %p8146_p5 = pneg %p8145_p11  ;;  %p6453_p3 = scmp.lt.u32.totalorder %s6870_s23, %s8112_s5 }
  0x7c   : > { %p6454_p12 = scmp.lt.u32.totalorder %s6452_s20, %s6447_s13  ;;  %p6456_p10 = scmp.lt.u32.totalorder %s6447_s13, %s6870_s23 }
  0x7d   : > { %p6450_p2 = pnand %p6448_p0, %p8146_p5 }
  0x7e   : > { %p6455_p8 = por %p6454_p12, %p6453_p3 }
  0x7f   : > { %p6451_p4 = pneg %p6450_p2 }
  0x80   : > { %p6457_p1 = por %p6456_p10, %p6455_p8 }
  0x82   : > { %p6458_p6 = pnand %p6457_p1, %p6451_p4 }
  0x84   : > { %6461 = shalt.err (!%p6458_p6)
}
  0x85   : > { %s6462_s19 = scalar_lea.vmem %s6879_s4, 448  ;;  %p8147_p9 = pmov %p8146_p5 }
  0x86   : > { %p6463_p13 = scmp.ne.s32.totalorder %s6879_s4, %s6462_s19  ;;  %s6614_s16 = smov [#allocation11]  }
  0x87   : > { %s6467_s8 = sshll.u32 %s6614_s16, 4  ;;  %s6468_s8 = int_to_ptr.vmem [resolvable:$false] %s6467_s8 }
  0x88   : > { %p6465_p7 = pnand %p6463_p13, %p8147_p9  ;;  %s6469_s11 = scalar_lea.vmem %s6468_s8, 896 }
  0x89   : > { %p6470_p5 = scmp.lt.s32.totalorder %s6879_s4, %s6468_s8  ;;  %p6471_p2 = scmp.lt.s32.totalorder %s6469_s11, %s6462_s19 }
  0x8a   : > { %p6466_p0 = pneg %p6465_p7 }
  0x8b   : > { %p6472_p3 = por %p6471_p2, %p6470_p5 }
  0x8d   : > { %p6473_p12 = pnand %p6472_p3, %p6466_p0 }
  0x8f   : > { %6476 = shalt.err (!%p6473_p12)
}
  0x90   : > { %s6615_s30 = smov 64   ;;  %s6616_s0 = smov 4  }
  0x91   : > { %6122 = dma.hbm_to_vmem [thread:$0]  (!%p8145_p11), %s6870_s23, 448, %s6879_s4, %s6798_s22, %s6615_s30, %s6615_s30, %s6616_s0  }
  0x92   : > { %p8148_p4 = scmp.ne.s32.totalorder %s8143_s18, 0 }
  0x93   : > { %p8149_p8 = scmp.eq.s32.totalorder (!%p8148_p4), %s6827_s15, 0 }
  0x94   : > { %228 = sbr.rel (%p8148_p4) target bundleno = 4276 (0x10b4), region = 32 }
  0x9b   : > { %6552 = dma.done.wait (%p8149_p8), [#allocation7], 128   ;;  %p8150_p10 = pmov %p8149_p8 }
  0x9c   : > { %s234_s13 = sand.u32 1, %s6827_s15   ;;  %s236_s12 = sand.u32 1, %s6581_s29  }
  0x9d   : > { %6554 = vsyncadd (%p8150_p10), [#allocation7], 4294967168  ;;  %s6100_s24 = smul.u32 3584, %s236_s12  ;;  %s235_s20 = scalar_lea.sflag [#allocation10], %s234_s13 }
  0x9e   : > { %p8151_p1 = scmp.ne.s32.totalorder %s8140_s17, 0 }
  0x9f   : > { %s6929_s9 = scalar_lea.vmem [#allocation9], %s6100_s24 }
  0xa0   : > { %6556 = dma.done.wait (%p8151_p1), %s235_s20, 57792  }
  0xa1   : > { %6558 = vsyncadd (%p8151_p1), %s235_s20, 4294909504  ;;  %s6101_s4 = smul.u32 28, %s236_s12  ;;  %s272_s25 = sand.u32 1, %s6569_s26  }
  0xa2   : > { %s3447_s22 = sshll.u32 %s272_s25, 3  ;;  %p3448_p11 = scmp.ne.s32.totalorder %s6589_s2, 0 }
  0xa3   : > { %s6938_s18 = scalar_lea.vmem [#allocation11], %s6101_s4  ;;  %s6940_s23 = scalar_lea.vmem [#allocation12], %s3447_s22  ;;  %v6617_v0 = vmov (!%p3448_p11), 0.0  }
  0xa4   : > { %284 = sbr.rel (%p3448_p11) target bundleno = 171 (0xab), region = 48  ;;  %285 = vst [vmem:[%s6940_s23] sm:$0xff] (!%p3448_p11), %v6617_v0 }
  0xab PF: > { %v293_v1 = vld [vmem:[%s6929_s9] sm:$0xff]  ;;  %v294_v2 = vld [vmem:[%s6929_s9 + $0x8] sm:$0xff]  ;;  %v295_v3 = vld [vmem:[%s6929_s9 + $0x10] sm:$0xff]  ;;  %v6618_v4 = vmov 0.0|0.0   ;;  %vm6619_vm0 = vmmov 0   ;;  %v6620_v7 = vmov 0.0  }
  0xac   : > { %5426 = vmatprep.subr.bf16.mxu0 %v6618_v4  ;;  %v5427_v5 = vpack.c.bf16 %v294_v2, %v293_v1  ;;  %v296_v6 = vld [vmem:[%s6929_s9 + $0x18] sm:$0xff]  ;;  %4478 = vmatprep.mubr.msk.f32.mxu0 %vm6619_vm0, %v6620_v7  ;;  %v297_v9 = vld [vmem:[%s6929_s9 + $0x20] sm:$0xff]  ;;  %v298_v10 = vld [vmem:[%s6929_s9 + $0x28] sm:$0xff]  ;;  %s3449_s15 = sshll.u32 %s6593_s7, 1 }
  0xad   : > { %5450 = vmatprep.subr.bf16.mxu1 %v6618_v4  ;;  %4513 = vmatprep.mubr.msk.f32.mxu1 %vm6619_vm0, %v6620_v7  ;;  %v5430_v8 = vpack.c.bf16 %v296_v6, %v295_v3  ;;  %v5433_v11 = vpack.c.bf16 %v298_v10, %v297_v9  ;;  %v299_v12 = vld [vmem:[%s6929_s9 + $0x30] sm:$0xff]  ;;  %v300_v13 = vld [vmem:[%s6929_s9 + $0x38] sm:$0xff]  ;;  %v301_v15 = vld [vmem:[%s6929_s9 + $0x40] sm:$0xff]  ;;  %s288_s17 = sadd.s32 %s6589_s2, %s3449_s15 }
  0xae   : > { %5428 = vmatpush3.bf16.msra.mxu0 %v5427_v5  ;;  %v5436_v14 = vpack.c.bf16 %v300_v13, %v299_v12  ;;  %v302_v16 = vld [vmem:[%s6929_s9 + $0x48] sm:$0xff]  ;;  %v303_v18 = vld [vmem:[%s6929_s9 + $0x50] sm:$0xff]  ;;  %v304_v19 = vld [vmem:[%s6929_s9 + $0x58] sm:$0xff]  ;;  %s7006_s14 = smul.u32 7, %s288_s17 }
  0xaf   : > { %5429 = vmatprep.subr.bf16.mxu0 %v6618_v4  ;;  %v5439_v17 = vpack.c.bf16 %v302_v16, %v301_v15  ;;  %v5442_v20 = vpack.c.bf16 %v304_v19, %v303_v18  ;;  %v305_v21 = vld [vmem:[%s6929_s9 + $0x60] sm:$0xff]  ;;  %v306_v22 = vld [vmem:[%s6929_s9 + $0x68] sm:$0xff]  ;;  %v307_v24 = vld [vmem:[%s6929_s9 + $0x70] sm:$0xff] }
  0xb0   : > { %v5445_v23 = vpack.c.bf16 %v306_v22, %v305_v21  ;;  %v308_v25 = vld [vmem:[%s6929_s9 + $0x78] sm:$0xff]  ;;  %v3453_v28 = vld [vmem:[%s6929_s9 + $0x80] sm:$0xff]  ;;  %v3454_v29 = vld [vmem:[%s6929_s9 + $0x88] sm:$0xff]  ;;  %s290_s19 = sld [smem:[#allocation3 + %s7006_s14]]  ;;  %s7139_s12 = sadd.s32 1, %s7006_s14 }
  0xb1   : > { %v5448_v26 = vpack.c.bf16 %v308_v25, %v307_v24  ;;  %v6973_v27 = vld [vmem:[#allocation6] sm:$0xff]  ;;  %v5451_v30 = vpack.c.bf16 %v3454_v29, %v3453_v28  ;;  %v3455_v31 = vld [vmem:[%s6929_s9 + $0x90] sm:$0xff]  ;;  %v3457_v34 = vld [vmem:[%s6929_s9 + $0xa0] sm:$0xff]  ;;  %s291_s16 = sld [smem:[#allocation4 + %s7006_s14]] }
  0xb2   : > { %5431 = vmatpush3.bf16.msra.mxu0 %v5430_v8  ;;  %v3456_v32 = vld [vmem:[%s6929_s9 + $0x98] sm:$0xff]  ;;  %v3458_v35 = vld [vmem:[%s6929_s9 + $0xa8] sm:$0xff]  ;;  %v3459_v37 = vld [vmem:[%s6929_s9 + $0xb0] sm:$0xff]  ;;  %s718_s24 = sld [smem:[#allocation3 + %s7139_s12]] }
  0xb3   : > { %5432 = vmatprep.subr.bf16.mxu0 %v6618_v4  ;;  %5452 = vmatpush3.bf16.msra.mxu1 %v5451_v30  ;;  %v5454_v33 = vpack.c.bf16 %v3456_v32, %v3455_v31  ;;  %v5457_v36 = vpack.c.bf16 %v3458_v35, %v3457_v34  ;;  %v3460_v38 = vld [vmem:[%s6929_s9 + $0xb8] sm:$0xff]  ;;  %v3461_v40 = vld [vmem:[%s6929_s9 + $0xc0] sm:$0xff]  ;;  %v3462_v41 = vld [vmem:[%s6929_s9 + $0xc8] sm:$0xff]  ;;  %s719_s20 = sld [smem:[#allocation4 + %s7139_s12]] }
  0xb4   : > { %5453 = vmatprep.subr.bf16.mxu1 %v6618_v4  ;;  %v5460_v39 = vpack.c.bf16 %v3460_v38, %v3459_v37  ;;  %v5463_v42 = vpack.c.bf16 %v3462_v41, %v3461_v40  ;;  %v3463_v43 = vld [vmem:[%s6929_s9 + $0xd0] sm:$0xff]  ;;  %v3464_v44 = vld [vmem:[%s6929_s9 + $0xd8] sm:$0xff]  ;;  %v3465_v45 = vld [vmem:[%s6929_s9 + $0xe0] sm:$0xff] }
  0xb5   : > { %v5466_v46 = vpack.c.bf16 %v3464_v44, %v3463_v43  ;;  %v3466_v47 = vld [vmem:[%s6929_s9 + $0xe8] sm:$0xff]  ;;  %v3467_v49 = vld [vmem:[%s6929_s9 + $0xf0] sm:$0xff]  ;;  %v3468_v50 = vld [vmem:[%s6929_s9 + $0xf8] sm:$0xff] }
  0xb6   : > { %5434 = vmatpush3.bf16.msra.mxu0 %v5433_v11  ;;  %v5469_v48 = vpack.c.bf16 %v3466_v47, %v3465_v45  ;;  %v5472_v51 = vpack.c.bf16 %v3468_v50, %v3467_v49  ;;  %v3450_v52 = vld [vmem:[%s6938_s18] ss:$0 sm:$0xff]  ;;  %s7010_s8 = sadd.s32 4294967295, %s290_s19  ;;  %v3472_v9 = vld [vmem:[%s6929_s9 + $0x108] sm:$0xff]  ;;  %v3473_v11 = vld [vmem:[%s6929_s9 + $0x110] sm:$0xff] }
  0xb7   : > { %5435 = vmatprep.subr.bf16.mxu0 %v6618_v4  ;;  %5455 = vmatpush3.bf16.msra.mxu1 %v5454_v33  ;;  %p386_p6 = scmp.eq.s32.totalorder %s291_s16, 1  ;;  %p384_p13 = scmp.eq.s32.totalorder %s291_s16, 0  ;;  %v3471_v8 = vld [vmem:[%s6929_s9 + $0x100] sm:$0xff]  ;;  %v3474_v12 = vld [vmem:[%s6929_s9 + $0x118] sm:$0xff]  ;;  %v3476_v15 = vld [vmem:[%s6929_s9 + $0x128] sm:$0xff] }
  0xb8   : > { %5456 = vmatprep.subr.bf16.mxu1 %v6618_v4  ;;  %p403_p9 = scmp.gt.s32.totalorder %s7010_s8, 0  ;;  %v5475_v10 = vpack.c.bf16 %v3472_v9, %v3471_v8  ;;  %v5478_v13 = vpack.c.bf16 %v3474_v12, %v3473_v11  ;;  %v3478_v18 = vld [vmem:[%s6929_s9 + $0x138] sm:$0xff]  ;;  %v3480_v21 = vld [vmem:[%s6929_s9 + $0x148] sm:$0xff]  ;;  %v3485_v30 = vld [vmem:[%s6929_s9 + $0x170] sm:$0xff]  ;;  %p510_p7 = scmp.gt.s32.totalorder %s7010_s8, 1 }
  0xb9   : > { %s394_s2 = scalar_select %p386_p6, 1, 0  ;;  %v3482_v24 = vld [vmem:[%s6929_s9 + $0x158] sm:$0xff]  ;;  %v3484_v28 = vld [vmem:[%s6929_s9 + $0x168] sm:$0xff]  ;;  %v3506_v41 = vld [vmem:[%s6929_s9 + $0x200] sm:$0xff] }
  0xba   : > { %5437 = vmatpush3.bf16.msra.mxu0 %v5436_v14  ;;  %s398_s11 = scalar_select %p384_p13, 1, 0  ;;  %v3475_v14 = vld [vmem:[%s6929_s9 + $0x120] sm:$0xff]  ;;  %v3486_v31 = vld [vmem:[%s6929_s9 + $0x178] sm:$0xff]  ;;  %v3508_v49 = vld [vmem:[%s6929_s9 + $0x210] sm:$0xff] }
  0xbb   : > { %5438 = vmatprep.subr.bf16.mxu0 %v6618_v4  ;;  %5458 = vmatpush3.bf16.msra.mxu1 %v5457_v36  ;;  %s404_s30 = scalar_select %p403_p9, 1, 0  ;;  %v395_v59 = vstv %s394_s2  ;;  %v5481_v16 = vpack.c.bf16 %v3476_v15, %v3475_v14  ;;  %v5496_v32 = vpack.c.bf16 %v3486_v31, %v3485_v30  ;;  %v3469_v33 = vld [vmem:[%s6938_s18 + $0x1] ss:$0 sm:$0xff]  ;;  %v3520_v8 = vld [vmem:[%s6929_s9 + $0x270] sm:$0xff]  ;;  %v3490_v12 = vld [vmem:[%s6929_s9 + $0x188] sm:$0xff] }
  0xbc   : > { %5459 = vmatprep.subr.bf16.mxu1 %v6618_v4  ;;  %v399_v60 = vstv %s398_s11  ;;  %vm7013_vm1 = vcmp.eq.s32.totalorder %v395_v59, 1  ;;  %s511_s0 = scalar_select %p510_p7, 1, 0  ;;  %v3509_v50 = vld [vmem:[%s6929_s9 + $0x218] sm:$0xff]  ;;  %v3514_v59 = vld [vmem:[%s6929_s9 + $0x240] sm:$0xff]  ;;  %v3491_v14 = vld [vmem:[%s6929_s9 + $0x190] sm:$0xff] }
  0xbd   : > { %v405_v61 = vstv %s404_s30  ;;  %vm7017_vm2 = vcmp.eq.s32.totalorder %v399_v60, 1  ;;  %v3515_v60 = vld [vmem:[%s6929_s9 + $0x248] sm:$0xff]  ;;  %v3521_v9 = vld [vmem:[%s6929_s9 + $0x278] sm:$0xff]  ;;  %v3489_v11 = vld [vmem:[%s6929_s9 + $0x180] sm:$0xff]  ;;  %p617_p0 = scmp.gt.s32.totalorder %s7010_s8, 2  ;;  %s7152_s4 = sadd.s32 4294967295, %s718_s24 }
  0xbe   : > { %5440 = vmatpush3.bf16.msra.mxu0 %v5439_v17  ;;  %vm406_vm3 = vcmp.eq.s32.totalorder %v405_v61, 1  ;;  %v3477_v17 = vld [vmem:[%s6929_s9 + $0x130] sm:$0xff]  ;;  %v512_v40 = vstv %s511_s0  ;;  %v5535_v61 = vpack.c.bf16 %v3515_v60, %v3514_v59  ;;  %v3492_v15 = vld [vmem:[%s6929_s9 + $0x198] sm:$0xff]  ;;  %v3502_v31 = vld [vmem:[%s6929_s9 + $0x1e8] sm:$0xff]  ;;  %p816_p5 = scmp.eq.s32.totalorder %s719_s20, 1  ;;  %p814_p2 = scmp.eq.s32.totalorder %s719_s20, 0 }
  0xbf   : > { %5441 = vmatprep.subr.bf16.mxu0 %v6618_v4  ;;  %5461 = vmatpush3.bf16.msra.mxu1 %v5460_v39  ;;  %v5484_v19 = vpack.c.bf16 %v3478_v18, %v3477_v17  ;;  %vm513_vm4 = vcmp.eq.s32.totalorder %v512_v40, 1  ;;  %v3493_v17 = vld [vmem:[%s6929_s9 + $0x1a0] sm:$0xff]  ;;  %v3494_v18 = vld [vmem:[%s6929_s9 + $0x1a8] sm:$0xff]  ;;  %s618_s13 = scalar_select %p617_p0, 1, 0 }
  0xc0   : > { %5462 = vmatprep.subr.bf16.mxu1 %v6618_v4  ;;  %v3530_v0 = vld [vmem:[%s6929_s9 + $0x2a0] sm:$0xff]  ;;  %v3531_v60 = vld [vmem:[%s6929_s9 + $0x2a8] sm:$0xff]  ;;  %p833_p3 = scmp.gt.s32.totalorder %s7152_s4, 0  ;;  %p940_p12 = scmp.gt.s32.totalorder %s7152_s4, 1 }
  0xc1   : > { %s824_s22 = scalar_select %p816_p5, 1, 0 }
  0xc2   : > { %5443 = vmatpush3.bf16.msra.mxu0 %v5442_v20  ;;  %v3479_v20 = vld [vmem:[%s6929_s9 + $0x140] sm:$0xff]  ;;  %s828_s15 = scalar_select %p814_p2, 1, 0 }
  0xc3   : > { %5444 = vmatprep.subr.bf16.mxu0 %v6618_v4  ;;  %5464 = vmatpush3.bf16.msra.mxu1 %v5463_v42  ;;  %v5487_v22 = vpack.c.bf16 %v3480_v21, %v3479_v20  ;;  %v3507_v42 = vld [vmem:[%s6929_s9 + $0x208] sm:$0xff]  ;;  %v3495_v20 = vld [vmem:[%s6929_s9 + $0x1b0] sm:$0xff]  ;;  %v3496_v21 = vld [vmem:[%s6929_s9 + $0x1b8] sm:$0xff]  ;;  %s834_s17 = scalar_select %p833_p3, 1, 0 }
  0xc4   : > { %5465 = vmatprep.subr.bf16.mxu1 %v6618_v4  ;;  %v5523_v47 = vpack.c.bf16 %v3507_v42, %v3506_v41  ;;  %s941_s19 = scalar_select %p940_p12, 1, 0 }
  0xc5   : > { %p1047_p4 = scmp.gt.s32.totalorder %s7152_s4, 2  ;;  %s7293_s8 = sadd.s32 2, %s7006_s14 }
  0xc6   : > { %5446 = vmatpush3.bf16.msra.mxu0 %v5445_v23  ;;  %v3481_v23 = vld [vmem:[%s6929_s9 + $0x150] sm:$0xff]  ;;  %s1148_s2 = sld [smem:[#allocation3 + %s7293_s8]] }
  0xc7   : > { %5447 = vmatprep.subr.bf16.mxu0 %v6618_v4  ;;  %5467 = vmatpush3.bf16.msra.mxu1 %v5466_v46  ;;  %v5490_v25 = vpack.c.bf16 %v3482_v24, %v3481_v23  ;;  %v3497_v23 = vld [vmem:[%s6929_s9 + $0x1c0] sm:$0xff]  ;;  %v3498_v24 = vld [vmem:[%s6929_s9 + $0x1c8] sm:$0xff]  ;;  %s1048_s16 = scalar_select %p1047_p4, 1, 0 }
  0xc8   : > { %5468 = vmatprep.subr.bf16.mxu1 %v6618_v4  ;;  %s1149_s11 = sld [smem:[#allocation4 + %s7293_s8]] }
  0xc9   : > { %s292_s20 = sld [smem:[#allocation5 + %s7006_s14]] }
  0xca   : > { %5449 = vmatpush3.bf16.msra.mxu0 %v5448_v26  ;;  %v3483_v26 = vld [vmem:[%s6929_s9 + $0x160] sm:$0xff]  ;;  %s720_s4 = sld [smem:[#allocation5 + %s7139_s12]] }
  0xcb   : > { %5474 = vmatprep.subr.bf16.mxu0 %v6618_v4  ;;  %5470 = vmatpush3.bf16.msra.mxu1 %v5469_v48  ;;  %v5493_v29 = vpack.c.bf16 %v3484_v28, %v3483_v26  ;;  %v3499_v26 = vld [vmem:[%s6929_s9 + $0x1d0] sm:$0xff]  ;;  %v3500_v28 = vld [vmem:[%s6929_s9 + $0x1d8] sm:$0xff] }
  0xcc   : > { %5471 = vmatprep.subr.bf16.mxu1 %v6618_v4  ;;  %v5514_v30 = vpack.c.bf16 %v3500_v28, %v3499_v26  ;;  %s7306_s30 = sadd.s32 4294967295, %s1148_s2 }
  0xcd   : > { %4479 = vmatmul.mubr.f32.vlgmr.msra.gmra.mrb[0].mxu0 %v6973_v27  ;;  %p1263_p1 = scmp.gt.s32.totalorder %s7306_s30, 0  ;;  %p1370_p11 = scmp.gt.s32.totalorder %s7306_s30, 1 }
  0xce   : > { %4548 = vmatprep.mubr.msk.f32.mxu0 %vm6619_vm0, %v6620_v7  ;;  %5476 = vmatpush3.bf16.msra.mxu0 %v5475_v10  ;;  %v5544_v10 = vpack.c.bf16 %v3521_v9, %v3520_v8  ;;  %v3536_v8 = vld [vmem:[%s6929_s9 + $0x2d0] sm:$0xff]  ;;  %v3537_v9 = vld [vmem:[%s6929_s9 + $0x2d8] sm:$0xff]  ;;  %p1246_p8 = scmp.eq.s32.totalorder %s1149_s11, 1  ;;  %p1244_p10 = scmp.eq.s32.totalorder %s1149_s11, 0 }
  0xcf   : > { %5473 = vmatpush3.bf16.msra.mxu1 %v5472_v51  ;;  %5477 = vmatprep.subr.bf16.mxu0 %v6618_v4  ;;  %s1264_s24 = scalar_select %p1263_p1, 1, 0 }
  0xd0   : > { %5498 = vmatprep.subr.bf16.mxu1 %v6618_v4  ;;  %s1254_s0 = scalar_select %p1246_p8, 1, 0 }
  0xd1   : > { %s1371_s12 = scalar_select %p1370_p11, 1, 0 }
  0xd2   : > { %5479 = vmatpush3.bf16.msra.mxu0 %v5478_v13  ;;  %v5499_v13 = vpack.c.bf16 %v3490_v12, %v3489_v11  ;;  %v5562_v12 = vpack.c.bf16 %v3537_v9, %v3536_v8  ;;  %p1477_p6 = scmp.gt.s32.totalorder %s7306_s30, 2 }
  0xd3   : > { %5480 = vmatprep.subr.bf16.mxu0 %v6618_v4 }
  0xd6   : > { %5482 = vmatpush3.bf16.msra.mxu0 %v5481_v16  ;;  %v5502_v16 = vpack.c.bf16 %v3492_v15, %v3491_v14  ;;  %v3539_v14 = vld [vmem:[%s6929_s9 + $0x2e8] sm:$0xff] }
  0xd7   : > { %5483 = vmatprep.subr.bf16.mxu0 %v6618_v4 }
  0xda   : > { %5485 = vmatpush3.bf16.msra.mxu0 %v5484_v19  ;;  %v5505_v19 = vpack.c.bf16 %v3494_v18, %v3493_v17  ;;  %v3541_v17 = vld [vmem:[%s6929_s9 + $0x2f8] sm:$0xff]  ;;  %v825_v18 = vstv %s824_s22  ;;  %s1478_s22 = scalar_select %p1477_p6, 1, 0 }
  0xdb   : > { %5486 = vmatprep.subr.bf16.mxu0 %v6618_v4  ;;  %vm7163_vm6 = vcmp.eq.s32.totalorder %v825_v18, 1  ;;  %v3588_v18 = vld [vmem:[%s6929_s9 + $0x430] sm:$0xff] }
  0xde   : > { %5488 = vmatpush3.bf16.msra.mxu0 %v5487_v22  ;;  %v5508_v22 = vpack.c.bf16 %v3496_v21, %v3495_v20  ;;  %v835_v21 = vstv %s834_s17 }
  0xdf   : > { %5489 = vmatprep.subr.bf16.mxu0 %v6618_v4  ;;  %vm836_vm8 = vcmp.eq.s32.totalorder %v835_v21, 1  ;;  %v3590_v21 = vld [vmem:[%s6929_s9 + $0x440] sm:$0xff] }
  0xe2   : > { %5491 = vmatpush3.bf16.msra.mxu0 %v5490_v25  ;;  %v5511_v25 = vpack.c.bf16 %v3498_v24, %v3497_v23  ;;  %v3606_v24 = vld [vmem:[%s6929_s9 + $0x4a0] sm:$0xff] }
  0xe3   : > { %5492 = vmatprep.subr.bf16.mxu0 %v6618_v4 }
  0xe6   : > { %5494 = vmatpush3.bf16.msra.mxu0 %v5493_v29  ;;  %v3501_v29 = vld [vmem:[%s6929_s9 + $0x1e0] sm:$0xff] }
  0xe7   : > { %5495 = vmatprep.subr.bf16.mxu0 %v6618_v4 }
  0xea   : > { %5497 = vmatpush3.bf16.msra.mxu0 %v5496_v32  ;;  %v5517_v32 = vpack.c.bf16 %v3502_v31, %v3501_v29  ;;  %v3545_v31 = vld [vmem:[%s6929_s9 + $0x300] sm:$0xff] }
  0xeb   : > { %5522 = vmatprep.subr.bf16.mxu0 %v6618_v4 }
 0x1a0   : > { %v380_v53 = vpop.f32.mrb[0].mxu0 }
 0x1a1   : > { %v381_v54 = vadd.f32 %v3450_v52, %v380_v53  ;;  %v4480_v55 = vpop.f32.mrb[1].mxu0  ;;  %v5526_v52 = vpack.c.bf16 %v3509_v50, %v3508_v49  ;;  %v3510_v53 = vld [vmem:[%s6929_s9 + $0x220] sm:$0xff] }
 0x1a3   : > { %v3451_v56 = vmul.f32 -1.442695, %v381_v54  ;;  %v385_v2 = vmax.f32 %v381_v54, 0.0 }
 0x1a5   : > { %6231 = vpow2.f32 %v3451_v56  ;;  %v3512_v56 = vld [vmem:[%s6929_s9 + $0x230] sm:$0xff] }
 0x1a6   : > { %6233 = vtanh.f32 %v381_v54  ;;  %v3511_v54 = vld [vmem:[%s6929_s9 + $0x228] sm:$0xff] }
 0x1a7   : > { %v5529_v55 = vpack.c.bf16 %v3511_v54, %v3510_v53  ;;  %v3528_v54 = vld [vmem:[%s6929_s9 + $0x290] sm:$0xff] }
 0x1af   : > { %v6232_v57 = vpop.eup %6231 }
 0x1b0   : > { %v391_v58 = vadd.f32 1.0, %v6232_v57  ;;  %v6234_v63 = vpop.eup %6233  ;;  %v3513_v57 = vld [vmem:[%s6929_s9 + $0x238] sm:$0xff] }
 0x1b2   : > { %6235 = vrcp.f32 %v391_v58  ;;  %v5532_v58 = vpack.c.bf16 %v3513_v57, %v3512_v56 }
 0x1bc   : > { %v6236_v1 = vpop.eup %6235 }
 0x1bd   : > { %v397_v3 = vsel %vm7013_vm1, %v6234_v63, %v6236_v1  ;;  %v3516_v63 = vld [vmem:[%s6929_s9 + $0x250] sm:$0xff]  ;;  %v3517_v1 = vld [vmem:[%s6929_s9 + $0x258] sm:$0xff] }
 0x1be   : > { %v401_v5 = vsel %vm7017_vm2, %v385_v2, %v397_v3  ;;  %v5538_v2 = vpack.c.bf16 %v3517_v1, %v3516_v63  ;;  %v3518_v3 = vld [vmem:[%s6929_s9 + $0x260] sm:$0xff]  ;;  %v3532_v63 = vld [vmem:[%s6929_s9 + $0x2b0] sm:$0xff]  ;;  %v3533_v1 = vld [vmem:[%s6929_s9 + $0x2b8] sm:$0xff] }
 0x1bf   : > { %v7026_v6 = vsel %vm406_vm3, %v401_v5, %v6973_v27  ;;  %v3519_v5 = vld [vmem:[%s6929_s9 + $0x268] sm:$0xff] }
 0x1c0   : > { %4514 = vmatmul.mubr.f32.vlgmr.msra.gmra.mrb[0].mxu1 %v7026_v6 }
 0x1c1   : > { %4583 = vmatprep.mubr.msk.f32.mxu1 %vm6619_vm0, %v6620_v7  ;;  %5500 = vmatpush3.bf16.msra.mxu1 %v5499_v13  ;;  %v3538_v13 = vld [vmem:[%s6929_s9 + $0x2e0] sm:$0xff] }
 0x1c2   : > { %5501 = vmatprep.subr.bf16.mxu1 %v6618_v4  ;;  %v5565_v15 = vpack.c.bf16 %v3539_v14, %v3538_v13 }
 0x1c5   : > { %5503 = vmatpush3.bf16.msra.mxu1 %v5502_v16  ;;  %v3540_v16 = vld [vmem:[%s6929_s9 + $0x2f0] sm:$0xff] }
 0x1c6   : > { %5504 = vmatprep.subr.bf16.mxu1 %v6618_v4  ;;  %v5568_v20 = vpack.c.bf16 %v3541_v17, %v3540_v16  ;;  %v3587_v16 = vld [vmem:[%s6929_s9 + $0x428] sm:$0xff] }
 0x1c9   : > { %5506 = vmatpush3.bf16.msra.mxu1 %v5505_v19  ;;  %v829_v19 = vstv %s828_s15  ;;  %s7454_s15 = sadd.s32 3, %s7006_s14 }
 0x1ca   : > { %5507 = vmatprep.subr.bf16.mxu1 %v6618_v4  ;;  %vm7167_vm7 = vcmp.eq.s32.totalorder %v829_v19, 1  ;;  %v3589_v19 = vld [vmem:[%s6929_s9 + $0x438] sm:$0xff]  ;;  %s1578_s17 = sld [smem:[#allocation3 + %s7454_s15]] }
 0x1cd   : > { %5509 = vmatpush3.bf16.msra.mxu1 %v5508_v22 }
 0x1ce   : > { %5510 = vmatprep.subr.bf16.mxu1 %v6618_v4 }
 0x1d1   : > { %5512 = vmatpush3.bf16.msra.mxu1 %v5511_v25 }
 0x1d2   : > { %5513 = vmatprep.subr.bf16.mxu1 %v6618_v4 }
 0x1d5   : > { %5515 = vmatpush3.bf16.msra.mxu1 %v5514_v30 }
 0x1d6   : > { %5516 = vmatprep.subr.bf16.mxu1 %v6618_v4 }
 0x1d9   : > { %5518 = vmatpush3.bf16.msra.mxu1 %v5517_v32  ;;  %v3546_v32 = vld [vmem:[%s6929_s9 + $0x308] sm:$0xff] }
 0x1da   : > { %5519 = vmatprep.subr.bf16.mxu1 %v6618_v4 }
 0x293   : > { %v496_v34 = vpop.f32.mrb[0].mxu1 }
 0x294   : > { %v497_v35 = vadd.f32 %v3469_v33, %v496_v34  ;;  %v4515_v36 = vpop.f32.mrb[1].mxu1  ;;  %v3503_v33 = vld [vmem:[%s6929_s9 + $0x1f0] sm:$0xff]  ;;  %v3504_v34 = vld [vmem:[%s6929_s9 + $0x1f8] sm:$0xff] }
 0x295   : > { %v3487_v36 = vld [vmem:[%s6938_s18 + $0x2] ss:$0 sm:$0xff] }
 0x296   : > { %v3470_v37 = vmul.f32 -1.442695, %v497_v35  ;;  %v500_v45 = vmax.f32 %v497_v35, 0.0 }
 0x298   : > { %6237 = vpow2.f32 %v3470_v37 }
 0x299   : > { %6239 = vtanh.f32 %v497_v35  ;;  %v5520_v35 = vpack.c.bf16 %v3504_v34, %v3503_v33  ;;  %v5571_v33 = vpack.c.bf16 %v3546_v32, %v3545_v31  ;;  %v3547_v34 = vld [vmem:[%s6929_s9 + $0x310] sm:$0xff]  ;;  %v3595_v31 = vld [vmem:[%s6929_s9 + $0x468] sm:$0xff] }
 0x29b   : > { %5521 = vmatpush3.bf16.msra.mxu1 %v5520_v35  ;;  %v3548_v35 = vld [vmem:[%s6929_s9 + $0x318] sm:$0xff] }
 0x29c   : > { %5546 = vmatprep.subr.bf16.mxu1 %v6618_v4 }
 0x2a2   : > { %v6238_v38 = vpop.eup %6237 }
 0x2a3   : > { %v505_v39 = vadd.f32 1.0, %v6238_v38  ;;  %v6240_v43 = vpop.eup %6239 }
 0x2a5   : > { %6241 = vrcp.f32 %v505_v39 }
 0x2af   : > { %v6242_v44 = vpop.eup %6241 }
 0x2b0   : > { %v508_v46 = vsel %vm7013_vm1, %v6240_v43, %v6242_v44  ;;  %v619_v43 = vstv %s618_s13  ;;  %v3526_v44 = vld [vmem:[%s6929_s9 + $0x280] sm:$0xff]  ;;  %s1258_s13 = scalar_select %p1244_p10, 1, 0 }
 0x2b1   : > { %v509_v48 = vsel %vm7017_vm2, %v500_v45, %v508_v46  ;;  %v3527_v45 = vld [vmem:[%s6929_s9 + $0x288] sm:$0xff]  ;;  %vm620_vm5 = vcmp.eq.s32.totalorder %v619_v43, 1  ;;  %v3553_v43 = vld [vmem:[%s6929_s9 + $0x340] sm:$0xff] }
 0x2b2   : > { %v7066_v51 = vsel %vm513_vm4, %v509_v48, %v7026_v6  ;;  %v5541_v6 = vpack.c.bf16 %v3519_v5, %v3518_v3  ;;  %v5547_v50 = vpack.c.bf16 %v3527_v45, %v3526_v44  ;;  %v3534_v3 = vld [vmem:[%s6929_s9 + $0x2c0] sm:$0xff]  ;;  %v3535_v5 = vld [vmem:[%s6929_s9 + $0x2c8] sm:$0xff] }
 0x2b3   : > { %4549 = vmatmul.mubr.f32.vlgmr.msra.gmra.mrb[2].mxu0 %v7066_v51  ;;  %v3554_v44 = vld [vmem:[%s6929_s9 + $0x348] sm:$0xff] }
 0x2b4   : > { %5524 = vmatpush3.bf16.msra.mxu0 %v5523_v47  ;;  %4618 = vmatprep.mubr.msk.f32.mxu0 %vm6619_vm0, %v6620_v7  ;;  %v5583_v45 = vpack.c.bf16 %v3554_v44, %v3553_v43  ;;  %v3570_v44 = vld [vmem:[%s6929_s9 + $0x3b0] sm:$0xff] }
 0x2b5   : > { %5525 = vmatprep.subr.bf16.mxu0 %v6618_v4 }
 0x2b8   : > { %5527 = vmatpush3.bf16.msra.mxu0 %v5526_v52  ;;  %v3523_v52 = vld [vmem:[%s6938_s18 + $0x4] ss:$0 sm:$0xff] }
 0x2b9   : > { %5528 = vmatprep.subr.bf16.mxu0 %v6618_v4 }
 0x2bc   : > { %5530 = vmatpush3.bf16.msra.mxu0 %v5529_v55  ;;  %v3529_v55 = vld [vmem:[%s6929_s9 + $0x298] sm:$0xff] }
 0x2bd   : > { %5531 = vmatprep.subr.bf16.mxu0 %v6618_v4  ;;  %v5550_v59 = vpack.c.bf16 %v3529_v55, %v3528_v54  ;;  %v3560_v54 = vld [vmem:[%s6929_s9 + $0x378] sm:$0xff] }
 0x2c0   : > { %5533 = vmatpush3.bf16.msra.mxu0 %v5532_v58 }
 0x2c1   : > { %5534 = vmatprep.subr.bf16.mxu0 %v6618_v4 }
 0x2c4   : > { %5536 = vmatpush3.bf16.msra.mxu0 %v5535_v61  ;;  %v5553_v61 = vpack.c.bf16 %v3531_v60, %v3530_v0 }
 0x2c5   : > { %5537 = vmatprep.subr.bf16.mxu0 %v6618_v4 }
 0x2c8   : > { %5539 = vmatpush3.bf16.msra.mxu0 %v5538_v2  ;;  %v5556_v2 = vpack.c.bf16 %v3533_v1, %v3532_v63  ;;  %v942_v63 = vstv %s941_s19  ;;  %v3582_v1 = vld [vmem:[%s6929_s9 + $0x400] sm:$0xff]  ;;  %s1579_s19 = sld [smem:[#allocation4 + %s7454_s15]] }
 0x2c9   : > { %5540 = vmatprep.subr.bf16.mxu0 %v6618_v4  ;;  %vm943_vm9 = vcmp.eq.s32.totalorder %v942_v63, 1 }
 0x2cc   : > { %5542 = vmatpush3.bf16.msra.mxu0 %v5541_v6  ;;  %v5559_v6 = vpack.c.bf16 %v3535_v5, %v3534_v3 }
 0x2cd   : > { %5543 = vmatprep.subr.bf16.mxu0 %v6618_v4 }
 0x2ce   : > { %p1676_p13 = scmp.eq.s32.totalorder %s1579_s19, 1  ;;  %p1674_p9 = scmp.eq.s32.totalorder %s1579_s19, 0 }
 0x2d0   : > { %5545 = vmatpush3.bf16.msra.mxu0 %v5544_v10  ;;  %s1684_s2 = scalar_select %p1676_p13, 1, 0 }
 0x2d1   : > { %5570 = vmatprep.subr.bf16.mxu0 %v6618_v4  ;;  %s1688_s11 = scalar_select %p1674_p9, 1, 0 }
 0x2d3   : > { %4619 = vmatmul.mubr.f32.vlgmr.msra.gmra.mrb[4].mxu0 %v6973_v27 }
 0x2d4   : > { %4688 = vmatprep.mubr.msk.f32.mxu0 %vm6619_vm0, %v6620_v7  ;;  %5572 = vmatpush3.bf16.msra.mxu0 %v5571_v33  ;;  %v3596_v33 = vld [vmem:[%s6929_s9 + $0x470] sm:$0xff] }
 0x2d5   : > { %5573 = vmatprep.subr.bf16.mxu0 %v6618_v4 }
 0x386   : > { %v603_v37 = vpop.f32.mrb[2].mxu0 }
 0x387   : > { %v604_v38 = vadd.f32 %v3487_v36, %v603_v37  ;;  %v4550_v39 = vpop.f32.mrb[3].mxu0  ;;  %v5574_v36 = vpack.c.bf16 %v3548_v35, %v3547_v34  ;;  %v3549_v37 = vld [vmem:[%s6929_s9 + $0x320] sm:$0xff]  ;;  %v3597_v34 = vld [vmem:[%s6929_s9 + $0x478] sm:$0xff] }
 0x388   : > { %v5640_v35 = vpack.c.bf16 %v3597_v34, %v3596_v33  ;;  %v3612_v33 = vld [vmem:[%s6929_s9 + $0x4d0] sm:$0xff]  ;;  %v3613_v34 = vld [vmem:[%s6929_s9 + $0x4d8] sm:$0xff] }
 0x389   : > { %v3488_v40 = vmul.f32 -1.442695, %v604_v38  ;;  %v607_v48 = vmax.f32 %v604_v38, 0.0  ;;  %5575 = vmatpush3.bf16.msra.mxu0 %v5574_v36  ;;  %v3564_v36 = vld [vmem:[%s6929_s9 + $0x380] sm:$0xff] }
 0x38a   : > { %5576 = vmatprep.subr.bf16.mxu0 %v6618_v4 }
 0x38b   : > { %6243 = vpow2.f32 %v3488_v40  ;;  %v3551_v40 = vld [vmem:[%s6929_s9 + $0x330] sm:$0xff] }
 0x38c   : > { %6245 = vtanh.f32 %v604_v38  ;;  %v3550_v38 = vld [vmem:[%s6929_s9 + $0x328] sm:$0xff] }
 0x38d   : > { %v5577_v39 = vpack.c.bf16 %v3550_v38, %v3549_v37  ;;  %v3565_v37 = vld [vmem:[%s6929_s9 + $0x388] sm:$0xff] }
 0x38e   : > { %v5595_v38 = vpack.c.bf16 %v3565_v37, %v3564_v36  ;;  %v5658_v37 = vpack.c.bf16 %v3613_v34, %v3612_v33 }
 0x38f   : > { %5578 = vmatpush3.bf16.msra.mxu0 %v5577_v39  ;;  %v3566_v39 = vld [vmem:[%s6929_s9 + $0x390] sm:$0xff] }
 0x390   : > { %5579 = vmatprep.subr.bf16.mxu0 %v6618_v4 }
 0x395   : > { %v6244_v41 = vpop.eup %6243 }
 0x396   : > { %v612_v42 = vadd.f32 1.0, %v6244_v41  ;;  %v6246_v46 = vpop.eup %6245  ;;  %v3552_v41 = vld [vmem:[%s6929_s9 + $0x338] sm:$0xff] }
 0x398   : > { %6247 = vrcp.f32 %v612_v42  ;;  %v5580_v42 = vpack.c.bf16 %v3552_v41, %v3551_v40  ;;  %v3567_v40 = vld [vmem:[%s6929_s9 + $0x398] sm:$0xff] }
 0x399   : > { %v5598_v41 = vpack.c.bf16 %v3567_v40, %v3566_v39  ;;  %v3615_v39 = vld [vmem:[%s6929_s9 + $0x4e8] sm:$0xff] }
 0x39a   : > { %5581 = vmatpush3.bf16.msra.mxu0 %v5580_v42  ;;  %v3569_v42 = vld [vmem:[%s6929_s9 + $0x3a8] sm:$0xff] }
 0x39b   : > { %5582 = vmatprep.subr.bf16.mxu0 %v6618_v4 }
 0x39e   : > { %5584 = vmatpush3.bf16.msra.mxu0 %v5583_v45  ;;  %v3571_v45 = vld [vmem:[%s6929_s9 + $0x3b8] sm:$0xff] }
 0x39f   : > { %5585 = vmatprep.subr.bf16.mxu0 %v6618_v4 }
 0x3a2   : > { %v6248_v47 = vpop.eup %6247 }
 0x3a3   : > { %v615_v49 = vsel %vm7013_vm1, %v6246_v46, %v6248_v47  ;;  %v3555_v46 = vld [vmem:[%s6929_s9 + $0x350] sm:$0xff]  ;;  %v3556_v47 = vld [vmem:[%s6929_s9 + $0x358] sm:$0xff] }
 0x3a4   : > { %v616_v53 = vsel %vm7017_vm2, %v607_v48, %v615_v49  ;;  %v5586_v48 = vpack.c.bf16 %v3556_v47, %v3555_v46  ;;  %v3557_v49 = vld [vmem:[%s6929_s9 + $0x360] sm:$0xff]  ;;  %v5604_v46 = vpack.c.bf16 %v3571_v45, %v3570_v44  ;;  %v1265_v45 = vstv %s1264_s24  ;;  %s7611_s24 = sadd.s32 4, %s7006_s14 }
 0x3a5   : > { %v621_v56 = vsel %vm620_vm5, %v616_v53, %v7066_v51  ;;  %v3559_v53 = vld [vmem:[%s6929_s9 + $0x370] sm:$0xff]  ;;  %v3572_v47 = vld [vmem:[%s6929_s9 + $0x3c0] sm:$0xff]  ;;  %vm1266_vm13 = vcmp.eq.s32.totalorder %v1265_v45, 1  ;;  %v3661_v45 = vld [vmem:[%s6929_s9 + $0x618] sm:$0xff] }
 0x3a6   : > { %v810_v57 = vpop.f32.mrb[4].mxu0  ;;  %4584 = vmatmul.mubr.f32.vlgmr.msra.gmra.mrb[2].mxu1 %v621_v56  ;;  %5587 = vmatpush3.bf16.msra.mxu0 %v5586_v48  ;;  %v5592_v55 = vpack.c.bf16 %v3560_v54, %v3559_v53  ;;  %v3573_v48 = vld [vmem:[%s6929_s9 + $0x3c8] sm:$0xff]  ;;  %v3576_v53 = vld [vmem:[%s6929_s9 + $0x3e0] sm:$0xff] }
 0x3a7   : > { %v7130_v58 = vadd.f32 %v3523_v52, %v810_v57  ;;  %v4620_v62 = vpop.f32.mrb[5].mxu0  ;;  %5548 = vmatpush3.bf16.msra.mxu1 %v5547_v50  ;;  %4653 = vmatprep.mubr.msk.f32.mxu1 %vm6619_vm0, %v6620_v7  ;;  %v3558_v50 = vld [vmem:[%s6929_s9 + $0x368] sm:$0xff] }
 0x3a8   : > { %5549 = vmatprep.subr.bf16.mxu1 %v6618_v4  ;;  %v5589_v52 = vpack.c.bf16 %v3558_v50, %v3557_v49  ;;  %5588 = vmatprep.subr.bf16.mxu0 %v6618_v4  ;;  %v5607_v49 = vpack.c.bf16 %v3573_v48, %v3572_v47  ;;  %v3574_v50 = vld [vmem:[%s6929_s9 + $0x3d0] sm:$0xff]  ;;  %v3682_v48 = vld [vmem:[%s6929_s9 + $0x6a0] sm:$0xff] }
 0x3a9   : > { %v3524_v51 = vmul.f32 -1.442695, %v7130_v58  ;;  %v815_v26 = vmax.f32 %v7130_v58, 0.0 }
 0x3aa   : > { %5590 = vmatpush3.bf16.msra.mxu0 %v5589_v52  ;;  %v3575_v52 = vld [vmem:[%s6929_s9 + $0x3d8] sm:$0xff] }
 0x3ab   : > { %6249 = vpow2.f32 %v3524_v51  ;;  %5551 = vmatpush3.bf16.msra.mxu1 %v5550_v59  ;;  %5591 = vmatprep.subr.bf16.mxu0 %v6618_v4  ;;  %v5610_v54 = vpack.c.bf16 %v3575_v52, %v3574_v50 }
 0x3ac   : > { %5552 = vmatprep.subr.bf16.mxu1 %v6618_v4  ;;  %6251 = vtanh.f32 %v7130_v58  ;;  %v3543_v58 = vld [vmem:[%s6938_s18 + $0x5] ss:$0 sm:$0xff] }
 0x3ae   : > { %5593 = vmatpush3.bf16.msra.mxu0 %v5592_v55  ;;  %v3577_v55 = vld [vmem:[%s6929_s9 + $0x3e8] sm:$0xff] }
 0x3af   : > { %5554 = vmatpush3.bf16.msra.mxu1 %v5553_v61  ;;  %5618 = vmatprep.subr.bf16.mxu0 %v6618_v4 }
 0x3b0   : > { %5555 = vmatprep.subr.bf16.mxu1 %v6618_v4 }
 0x3b3   : > { %5557 = vmatpush3.bf16.msra.mxu1 %v5556_v2  ;;  %v3583_v2 = vld [vmem:[%s6929_s9 + $0x408] sm:$0xff] }
 0x3b4   : > { %5558 = vmatprep.subr.bf16.mxu1 %v6618_v4  ;;  %v5619_v9 = vpack.c.bf16 %v3583_v2, %v3582_v1 }
 0x3b5   : > { %v6250_v10 = vpop.eup %6249 }
 0x3b6   : > { %v821_v11 = vadd.f32 1.0, %v6250_v10  ;;  %v6252_v23 = vpop.eup %6251 }
 0x3b7   : > { %5560 = vmatpush3.bf16.msra.mxu1 %v5559_v6 }
 0x3b8   : > { %6253 = vrcp.f32 %v821_v11  ;;  %5561 = vmatprep.subr.bf16.mxu1 %v6618_v4  ;;  %v3584_v11 = vld [vmem:[%s6929_s9 + $0x410] sm:$0xff] }
 0x3bb   : > { %5563 = vmatpush3.bf16.msra.mxu1 %v5562_v12  ;;  %v3585_v12 = vld [vmem:[%s6929_s9 + $0x418] sm:$0xff] }
 0x3bc   : > { %5564 = vmatprep.subr.bf16.mxu1 %v6618_v4  ;;  %v5622_v14 = vpack.c.bf16 %v3585_v12, %v3584_v11 }
 0x3bf   : > { %5566 = vmatpush3.bf16.msra.mxu1 %v5565_v15  ;;  %v3586_v15 = vld [vmem:[%s6929_s9 + $0x420] sm:$0xff] }
 0x3c0   : > { %5567 = vmatprep.subr.bf16.mxu1 %v6618_v4  ;;  %v5625_v17 = vpack.c.bf16 %v3587_v16, %v3586_v15  ;;  %v3604_v16 = vld [vmem:[%s6929_s9 + $0x490] sm:$0xff] }
 0x3c2   : > { %v6254_v25 = vpop.eup %6253 }
 0x3c3   : > { %5569 = vmatpush3.bf16.msra.mxu1 %v5568_v20  ;;  %v827_v28 = vsel %vm7163_vm6, %v6252_v23, %v6254_v25  ;;  %v5628_v20 = vpack.c.bf16 %v3589_v19, %v3588_v18  ;;  %v3591_v23 = vld [vmem:[%s6929_s9 + $0x448] sm:$0xff] }
 0x3c4   : > { %v831_v29 = vsel %vm7167_vm7, %v815_v26, %v827_v28  ;;  %5594 = vmatprep.subr.bf16.mxu1 %v6618_v4  ;;  %v5631_v25 = vpack.c.bf16 %v3591_v23, %v3590_v21  ;;  %v3592_v26 = vld [vmem:[%s6929_s9 + $0x450] sm:$0xff]  ;;  %v3593_v28 = vld [vmem:[%s6929_s9 + $0x458] sm:$0xff]  ;;  %v3607_v23 = vld [vmem:[%s6929_s9 + $0x4a8] sm:$0xff] }
 0x3c5   : > { %v7178_v30 = vsel %vm836_vm8, %v831_v29, %v6973_v27  ;;  %v5634_v29 = vpack.c.bf16 %v3593_v28, %v3592_v26  ;;  %v3608_v26 = vld [vmem:[%s6929_s9 + $0x4b0] sm:$0xff]  ;;  %v3609_v28 = vld [vmem:[%s6929_s9 + $0x4b8] sm:$0xff] }
 0x3c6   : > { %4654 = vmatmul.mubr.f32.vlgmr.msra.gmra.mrb[4].mxu1 %v7178_v30 }
 0x3c7   : > { %4723 = vmatprep.mubr.msk.f32.mxu1 %vm6619_vm0, %v6620_v7  ;;  %5596 = vmatpush3.bf16.msra.mxu1 %v5595_v38  ;;  %v3614_v38 = vld [vmem:[%s6929_s9 + $0x4e0] sm:$0xff] }
 0x3c8   : > { %5597 = vmatprep.subr.bf16.mxu1 %v6618_v4  ;;  %v5661_v40 = vpack.c.bf16 %v3615_v39, %v3614_v38  ;;  %v3659_v38 = vld [vmem:[%s6929_s9 + $0x608] sm:$0xff] }
 0x3cb   : > { %5599 = vmatpush3.bf16.msra.mxu1 %v5598_v41  ;;  %v3616_v41 = vld [vmem:[%s6929_s9 + $0x4f0] sm:$0xff] }
 0x3cc   : > { %5600 = vmatprep.subr.bf16.mxu1 %v6618_v4 }
 0x479   : > { %v7207_v56 = vpop.f32.mrb[2].mxu1 }
 0x47a   : > { %v4585_v57 = vpop.f32.mrb[3].mxu1 }
 0x47b   : > { %v5613_v57 = vpack.c.bf16 %v3577_v55, %v3576_v53 }
 0x499   : > { %v926_v62 = vpop.f32.mrb[4].mxu1 }
 0x49a   : > { %v927_v59 = vadd.f32 %v3543_v58, %v926_v62  ;;  %v4655_v0 = vpop.f32.mrb[5].mxu1  ;;  %v3578_v58 = vld [vmem:[%s6929_s9 + $0x3f0] sm:$0xff]  ;;  %v3579_v62 = vld [vmem:[%s6929_s9 + $0x3f8] sm:$0xff] }
 0x49b   : > { %v3562_v0 = vld [vmem:[%s6938_s18 + $0x6] ss:$0 sm:$0xff] }
 0x49c   : > { %v3544_v60 = vmul.f32 -1.442695, %v927_v59  ;;  %v930_v6 = vmax.f32 %v927_v59, 0.0 }
 0x49e   : > { %6255 = vpow2.f32 %v3544_v60 }
 0x49f   : > { %6257 = vtanh.f32 %v927_v59  ;;  %v5616_v59 = vpack.c.bf16 %v3579_v62, %v3578_v58  ;;  %v3622_v58 = vld [vmem:[%s6929_s9 + $0x508] sm:$0xff] }
 0x4a8   : > { %v6256_v51 = vpop.eup %6255 }
 0x4a9   : > { %v935_v61 = vadd.f32 1.0, %v6256_v51  ;;  %v6258_v3 = vpop.eup %6257 }
 0x4ab   : > { %6259 = vrcp.f32 %v935_v61 }
 0x4b5   : > { %v6260_v5 = vpop.eup %6259 }
 0x4b6   : > { %v938_v8 = vsel %vm7163_vm6, %v6258_v3, %v6260_v5  ;;  %v1049_v3 = vstv %s1048_s16  ;;  %v3602_v5 = vld [vmem:[%s6929_s9 + $0x480] sm:$0xff]  ;;  %s7467_s16 = sadd.s32 4294967295, %s1578_s17 }
 0x4b7   : > { %v939_v10 = vsel %vm7167_vm7, %v930_v6, %v938_v8  ;;  %v3603_v6 = vld [vmem:[%s6929_s9 + $0x488] sm:$0xff]  ;;  %vm1050_vm10 = vcmp.eq.s32.totalorder %v1049_v3, 1  ;;  %p1693_p7 = scmp.gt.s32.totalorder %s7467_s16, 0  ;;  %p1800_p0 = scmp.gt.s32.totalorder %s7467_s16, 1 }
 0x4b8   : > { %v7220_v13 = vsel %vm943_vm9, %v939_v10, %v7178_v30  ;;  %v3594_v30 = vld [vmem:[%s6929_s9 + $0x460] sm:$0xff]  ;;  %v5643_v12 = vpack.c.bf16 %v3603_v6, %v3602_v5  ;;  %v3630_v6 = vld [vmem:[%s6929_s9 + $0x548] sm:$0xff]  ;;  %p1907_p5 = scmp.gt.s32.totalorder %s7467_s16, 2  ;;  %s1580_s16 = sld [smem:[#allocation5 + %s7454_s15]] }
 0x4b9   : > { %4689 = vmatmul.mubr.f32.vlgmr.msra.gmra.mrb[6].mxu0 %v7220_v13  ;;  %v5637_v32 = vpack.c.bf16 %v3595_v31, %v3594_v30  ;;  %v3610_v30 = vld [vmem:[%s6929_s9 + $0x4c0] sm:$0xff]  ;;  %v3611_v31 = vld [vmem:[%s6929_s9 + $0x4c8] sm:$0xff]  ;;  %s1694_s30 = scalar_select %p1693_p7, 1, 0 }
 0x4ba   : > { %5620 = vmatpush3.bf16.msra.mxu0 %v5619_v9  ;;  %4758 = vmatprep.mubr.msk.f32.mxu0 %vm6619_vm0, %v6620_v7  ;;  %v3629_v5 = vld [vmem:[%s6929_s9 + $0x540] sm:$0xff] }
 0x4bb   : > { %5621 = vmatprep.subr.bf16.mxu0 %v6618_v4 }
 0x4be   : > { %5623 = vmatpush3.bf16.msra.mxu0 %v5622_v14  ;;  %v3599_v14 = vld [vmem:[%s6938_s18 + $0x8] ss:$0 sm:$0xff] }
 0x4bf   : > { %5624 = vmatprep.subr.bf16.mxu0 %v6618_v4 }
 0x4c2   : > { %5626 = vmatpush3.bf16.msra.mxu0 %v5625_v17  ;;  %v3605_v17 = vld [vmem:[%s6929_s9 + $0x498] sm:$0xff] }
 0x4c3   : > { %5627 = vmatprep.subr.bf16.mxu0 %v6618_v4  ;;  %v5646_v21 = vpack.c.bf16 %v3605_v17, %v3604_v16  ;;  %v3635_v16 = vld [vmem:[%s6929_s9 + $0x570] sm:$0xff]  ;;  %v3636_v17 = vld [vmem:[%s6929_s9 + $0x578] sm:$0xff] }
 0x4c6   : > { %5629 = vmatpush3.bf16.msra.mxu0 %v5628_v20 }
 0x4c7   : > { %5630 = vmatprep.subr.bf16.mxu0 %v6618_v4 }
 0x4ca   : > { %5632 = vmatpush3.bf16.msra.mxu0 %v5631_v25  ;;  %v5649_v25 = vpack.c.bf16 %v3607_v23, %v3606_v24  ;;  %v1144_v23 = vstv %s720_s4  ;;  %s2009_s4 = sld [smem:[#allocation4 + %s7611_s24]] }
 0x4cb   : > { %5633 = vmatprep.subr.bf16.mxu0 %v6618_v4 }
 0x4ce   : > { %5635 = vmatpush3.bf16.msra.mxu0 %v5634_v29  ;;  %v5652_v29 = vpack.c.bf16 %v3609_v28, %v3608_v26 }
 0x4cf   : > { %5636 = vmatprep.subr.bf16.mxu0 %v6618_v4 }
 0x4d0   : > { %p2106_p2 = scmp.eq.s32.totalorder %s2009_s4, 1  ;;  %p2104_p3 = scmp.eq.s32.totalorder %s2009_s4, 0 }
 0x4d2   : > { %5638 = vmatpush3.bf16.msra.mxu0 %v5637_v32  ;;  %v5655_v32 = vpack.c.bf16 %v3611_v31, %v3610_v30  ;;  %v3619_v30 = vld [vmem:[%s6938_s18 + $0x9] ss:$0 sm:$0xff]  ;;  %s2118_s17 = scalar_select %p2104_p3, 1, 0 }
 0x4d3   : > { %5639 = vmatprep.subr.bf16.mxu0 %v6618_v4 }
 0x4d6   : > { %5641 = vmatpush3.bf16.msra.mxu0 %v5640_v35 }
 0x4d7   : > { %5666 = vmatprep.subr.bf16.mxu0 %v6618_v4 }
 0x4d9   : > { %4759 = vmatmul.mubr.f32.vlgmr.msra.gmra.mrb[8].mxu0 %v6973_v27  ;;  %v3568_v27 = vld [vmem:[%s6929_s9 + $0x3a0] sm:$0xff] }
 0x4da   : > { %4828 = vmatprep.mubr.msk.f32.mxu0 %vm6619_vm0, %v6620_v7  ;;  %v5601_v43 = vpack.c.bf16 %v3569_v42, %v3568_v27  ;;  %v3617_v27 = vld [vmem:[%s6929_s9 + $0x4f8] sm:$0xff]  ;;  %v1255_v42 = vstv %s1254_s0  ;;  %s1150_s0 = sld [smem:[#allocation5 + %s7293_s8]] }
 0x4db   : > { %v5664_v44 = vpack.c.bf16 %v3617_v27, %v3616_v41  ;;  %vm7317_vm11 = vcmp.eq.s32.totalorder %v1255_v42, 1  ;;  %s1801_s8 = scalar_select %p1800_p0, 1, 0 }
 0x4dc   : > { %5602 = vmatpush3.bf16.msra.mxu1 %v5601_v43  ;;  %v1259_v43 = vstv %s1258_s13  ;;  %s1908_s13 = scalar_select %p1907_p5, 1, 0 }
 0x4dd   : > { %5603 = vmatprep.subr.bf16.mxu1 %v6618_v4  ;;  %vm7321_vm12 = vcmp.eq.s32.totalorder %v1259_v43, 1 }
 0x4e0   : > { %5605 = vmatpush3.bf16.msra.mxu1 %v5604_v46 }
 0x4e1   : > { %5606 = vmatprep.subr.bf16.mxu1 %v6618_v4 }
 0x4e4   : > { %5608 = vmatpush3.bf16.msra.mxu1 %v5607_v49 }
 0x4e5   : > { %5609 = vmatprep.subr.bf16.mxu1 %v6618_v4 }
 0x4e8   : > { %5611 = vmatpush3.bf16.msra.mxu1 %v5610_v54  ;;  %v7331_v54 = vld [vmem:[#allocation6] sm:$0xff] }
 0x4e9   : > { %5612 = vmatprep.subr.bf16.mxu1 %v6618_v4 }
 0x4ec   : > { %5614 = vmatpush3.bf16.msra.mxu1 %v5613_v57  ;;  %v3621_v57 = vld [vmem:[%s6929_s9 + $0x500] sm:$0xff] }
 0x4ed   : > { %5615 = vmatprep.subr.bf16.mxu1 %v6618_v4  ;;  %v5667_v62 = vpack.c.bf16 %v3622_v58, %v3621_v57  ;;  %v3665_v57 = vld [vmem:[%s6929_s9 + $0x638] sm:$0xff] }
 0x4ef   : > { %5668 = vmatpush3.bf16.msra.mxu0 %v5667_v62  ;;  %v3666_v62 = vld [vmem:[%s6929_s9 + $0x640] sm:$0xff] }
 0x4f0   : > { %5617 = vmatpush3.bf16.msra.mxu1 %v5616_v59  ;;  %5669 = vmatprep.subr.bf16.mxu0 %v6618_v4  ;;  %v3623_v59 = vld [vmem:[%s6929_s9 + $0x510] sm:$0xff] }
 0x4f1   : > { %5642 = vmatprep.subr.bf16.mxu1 %v6618_v4 }
 0x58c   : > { %v1033_v60 = vpop.f32.mrb[6].mxu0 }
 0x58d   : > { %v1034_v51 = vadd.f32 %v3562_v0, %v1033_v60  ;;  %v4690_v61 = vpop.f32.mrb[7].mxu0  ;;  %v3624_v0 = vld [vmem:[%s6929_s9 + $0x518] sm:$0xff] }
 0x58e   : > { %v5670_v60 = vpack.c.bf16 %v3624_v0, %v3623_v59  ;;  %v3626_v61 = vld [vmem:[%s6929_s9 + $0x528] sm:$0xff] }
 0x58f   : > { %v3563_v63 = vmul.f32 -1.442695, %v1034_v51  ;;  %v1037_v10 = vmax.f32 %v1034_v51, 0.0  ;;  %v3667_v59 = vld [vmem:[%s6929_s9 + $0x648] sm:$0xff] }
 0x590   : > { %5671 = vmatpush3.bf16.msra.mxu0 %v5670_v60  ;;  %v5727_v0 = vpack.c.bf16 %v3667_v59, %v3666_v62  ;;  %v3668_v60 = vld [vmem:[%s6929_s9 + $0x650] sm:$0xff] }
 0x591   : > { %6261 = vpow2.f32 %v3563_v63  ;;  %5672 = vmatprep.subr.bf16.mxu0 %v6618_v4 }
 0x592   : > { %6263 = vtanh.f32 %v1034_v51  ;;  %v3625_v51 = vld [vmem:[%s6929_s9 + $0x520] sm:$0xff] }
 0x593   : > { %v5673_v63 = vpack.c.bf16 %v3626_v61, %v3625_v51  ;;  %v3669_v51 = vld [vmem:[%s6929_s9 + $0x658] sm:$0xff] }
 0x594   : > { %v5730_v61 = vpack.c.bf16 %v3669_v51, %v3668_v60  ;;  %v3684_v51 = vld [vmem:[%s6929_s9 + $0x6b0] sm:$0xff] }
 0x595   : > { %5674 = vmatpush3.bf16.msra.mxu0 %v5673_v63  ;;  %v3670_v63 = vld [vmem:[%s6929_s9 + $0x660] sm:$0xff] }
 0x596   : > { %5675 = vmatprep.subr.bf16.mxu0 %v6618_v4 }
 0x59b   : > { %v6262_v1 = vpop.eup %6261 }
 0x59c   : > { %v1042_v2 = vadd.f32 1.0, %v6262_v1  ;;  %v6264_v8 = vpop.eup %6263  ;;  %v3627_v1 = vld [vmem:[%s6929_s9 + $0x530] sm:$0xff] }
 0x59e   : > { %6265 = vrcp.f32 %v1042_v2  ;;  %v3628_v2 = vld [vmem:[%s6929_s9 + $0x538] sm:$0xff] }
 0x59f   : > { %v5676_v3 = vpack.c.bf16 %v3628_v2, %v3627_v1  ;;  %v3671_v1 = vld [vmem:[%s6929_s9 + $0x668] sm:$0xff] }
 0x5a0   : > { %v5733_v2 = vpack.c.bf16 %v3671_v1, %v3670_v63  ;;  %v3686_v1 = vld [vmem:[%s6929_s9 + $0x6c0] sm:$0xff] }
 0x5a1   : > { %5677 = vmatpush3.bf16.msra.mxu0 %v5676_v3  ;;  %v3672_v3 = vld [vmem:[%s6929_s9 + $0x670] sm:$0xff] }
 0x5a2   : > { %5678 = vmatprep.subr.bf16.mxu0 %v6618_v4 }
 0x5a8   : > { %v6266_v9 = vpop.eup %6265 }
 0x5a9   : > { %v1045_v11 = vsel %vm7163_vm6, %v6264_v8, %v6266_v9  ;;  %v5679_v8 = vpack.c.bf16 %v3630_v6, %v3629_v5  ;;  %v3631_v9 = vld [vmem:[%s6929_s9 + $0x550] sm:$0xff]  ;;  %v3673_v5 = vld [vmem:[%s6929_s9 + $0x678] sm:$0xff] }
 0x5aa   : > { %v1046_v15 = vsel %vm7167_vm7, %v1037_v10, %v1045_v11  ;;  %v3632_v10 = vld [vmem:[%s6929_s9 + $0x558] sm:$0xff]  ;;  %v5736_v6 = vpack.c.bf16 %v3673_v5, %v3672_v3  ;;  %v3688_v5 = vld [vmem:[%s6929_s9 + $0x6d0] sm:$0xff] }
 0x5ab   : > { %v1051_v18 = vsel %vm1050_vm10, %v1046_v15, %v7220_v13  ;;  %5680 = vmatpush3.bf16.msra.mxu0 %v5679_v8  ;;  %v5682_v11 = vpack.c.bf16 %v3632_v10, %v3631_v9  ;;  %v3640_v8 = vld [vmem:[%s6929_s9 + $0x580] sm:$0xff]  ;;  %v3641_v9 = vld [vmem:[%s6929_s9 + $0x588] sm:$0xff] }
 0x5ac   : > { %v1240_v19 = vpop.f32.mrb[8].mxu0  ;;  %4724 = vmatmul.mubr.f32.vlgmr.msra.gmra.mrb[6].mxu1 %v1051_v18  ;;  %5681 = vmatprep.subr.bf16.mxu0 %v6618_v4  ;;  %v5688_v18 = vpack.c.bf16 %v3636_v17, %v3635_v16  ;;  %v5691_v10 = vpack.c.bf16 %v3641_v9, %v3640_v8  ;;  %v3645_v16 = vld [vmem:[%s6929_s9 + $0x5a8] sm:$0xff] }
 0x5ad   : > { %v7284_v20 = vadd.f32 %v3599_v14, %v1240_v19  ;;  %v4760_v22 = vpop.f32.mrb[9].mxu0  ;;  %5644 = vmatpush3.bf16.msra.mxu1 %v5643_v12  ;;  %4793 = vmatprep.mubr.msk.f32.mxu1 %vm6619_vm0, %v6620_v7  ;;  %v3633_v12 = vld [vmem:[%s6929_s9 + $0x560] sm:$0xff]  ;;  %v3634_v14 = vld [vmem:[%s6929_s9 + $0x568] sm:$0xff] }
 0x5ae   : > { %5645 = vmatprep.subr.bf16.mxu1 %v6618_v4  ;;  %v5685_v15 = vpack.c.bf16 %v3634_v14, %v3633_v12  ;;  %v3505_v19 = vld [vmem:[%s6938_s18 + $0x3] ss:$0 sm:$0xff] }
 0x5af   : > { %v3600_v13 = vmul.f32 -1.442695, %v7284_v20  ;;  %v1245_v50 = vmax.f32 %v7284_v20, 0.0  ;;  %5683 = vmatpush3.bf16.msra.mxu0 %v5682_v11  ;;  %v711_v22 = vadd.f32 %v3505_v19, %v7207_v56  ;;  %v3642_v11 = vld [vmem:[%s6929_s9 + $0x590] sm:$0xff]  ;;  %v3643_v12 = vld [vmem:[%s6929_s9 + $0x598] sm:$0xff] }
 0x5b0   : > { %5684 = vmatprep.subr.bf16.mxu0 %v6618_v4  ;;  %v5694_v14 = vpack.c.bf16 %v3643_v12, %v3642_v11  ;;  %v3647_v19 = vld [vmem:[%s6929_s9 + $0x5b8] sm:$0xff]  ;;  %v3690_v11 = vld [vmem:[%s6929_s9 + $0x6e0] sm:$0xff]  ;;  %v3691_v12 = vld [vmem:[%s6929_s9 + $0x6e8] sm:$0xff] }
 0x5b1   : > { %6267 = vpow2.f32 %v3600_v13  ;;  %5647 = vmatpush3.bf16.msra.mxu1 %v5646_v21  ;;  %v714_v21 = vstv %s292_s20  ;;  %s2008_s20 = sld [smem:[#allocation3 + %s7611_s24]] }
 0x5b2   : > { %5648 = vmatprep.subr.bf16.mxu1 %v6618_v4  ;;  %6269 = vtanh.f32 %v7284_v20  ;;  %v3581_v20 = vld [vmem:[%s6938_s18 + $0x7] ss:$0 sm:$0xff]  ;;  %v715_v26 = vmul.f32 %v714_v21, %v711_v22  ;;  %v3649_v21 = vld [vmem:[%s6929_s9 + $0x5c8] sm:$0xff] }
 0x5b3   : > { %5686 = vmatpush3.bf16.msra.mxu0 %v5685_v15  ;;  %v3644_v15 = vld [vmem:[%s6929_s9 + $0x5a0] sm:$0xff] }
 0x5b4   : > { %5687 = vmatprep.subr.bf16.mxu0 %v6618_v4  ;;  %v5697_v17 = vpack.c.bf16 %v3645_v16, %v3644_v15  ;;  %v3648_v22 = vld [vmem:[%s6929_s9 + $0x5c0] sm:$0xff]  ;;  %v3692_v15 = vld [vmem:[%s6929_s9 + $0x6f0] sm:$0xff]  ;;  %v3693_v16 = vld [vmem:[%s6929_s9 + $0x6f8] sm:$0xff] }
 0x5b5   : > { %5650 = vmatpush3.bf16.msra.mxu1 %v5649_v25 }
 0x5b6   : > { %5651 = vmatprep.subr.bf16.mxu1 %v6618_v4 }
 0x5b7   : > { %5689 = vmatpush3.bf16.msra.mxu0 %v5688_v18  ;;  %v3646_v18 = vld [vmem:[%s6929_s9 + $0x5b0] sm:$0xff] }
 0x5b8   : > { %5714 = vmatprep.subr.bf16.mxu0 %v6618_v4 }
 0x5b9   : > { %5653 = vmatpush3.bf16.msra.mxu1 %v5652_v29 }
 0x5ba   : > { %5654 = vmatprep.subr.bf16.mxu1 %v6618_v4 }
 0x5bb   : > { %v6268_v35 = vpop.eup %6267 }
 0x5bc   : > { %v1251_v36 = vadd.f32 1.0, %v6268_v35  ;;  %v6270_v47 = vpop.eup %6269 }
 0x5bd   : > { %5656 = vmatpush3.bf16.msra.mxu1 %v5655_v32 }
 0x5be   : > { %6271 = vrcp.f32 %v1251_v36  ;;  %5657 = vmatprep.subr.bf16.mxu1 %v6618_v4  ;;  %v1372_v36 = vstv %s1371_s12  ;;  %s7624_s12 = sadd.s32 4294967295, %s2008_s20 }
 0x5bf   : > { %vm1373_vm14 = vcmp.eq.s32.totalorder %v1372_v36, 1  ;;  %p2123_p12 = scmp.gt.s32.totalorder %s7624_s12, 0  ;;  %p2230_p4 = scmp.gt.s32.totalorder %s7624_s12, 1 }
 0x5c0   : > { %p2337_p8 = scmp.gt.s32.totalorder %s7624_s12, 2  ;;  %s2010_s12 = sld [smem:[#allocation5 + %s7611_s24]] }
 0x5c1   : > { %5659 = vmatpush3.bf16.msra.mxu1 %v5658_v37  ;;  %v3658_v37 = vld [vmem:[%s6929_s9 + $0x600] sm:$0xff]  ;;  %s2124_s19 = scalar_select %p2123_p12, 1, 0 }
 0x5c2   : > { %5660 = vmatprep.subr.bf16.mxu1 %v6618_v4  ;;  %v5715_v42 = vpack.c.bf16 %v3659_v38, %v3658_v37  ;;  %s2231_s15 = scalar_select %p2230_p4, 1, 0 }
 0x5c3   : > { %p8180_p12 = scmp.ne.s32.totalorder %s8141_s28, 0 }
 0x5c5   : > { %5662 = vmatpush3.bf16.msra.mxu1 %v5661_v40 }
 0x5c6   : > { %5663 = vmatprep.subr.bf16.mxu1 %v6618_v4 }
 0x5c8   : > { %v6272_v49 = vpop.eup %6271 }
 0x5c9   : > { %5665 = vmatpush3.bf16.msra.mxu1 %v5664_v44  ;;  %v1257_v52 = vsel %vm7317_vm11, %v6270_v47, %v6272_v49  ;;  %v3660_v44 = vld [vmem:[%s6929_s9 + $0x610] sm:$0xff] }
 0x5ca   : > { %v1261_v53 = vsel %vm7321_vm12, %v1245_v50, %v1257_v52  ;;  %5690 = vmatprep.subr.bf16.mxu1 %v6618_v4  ;;  %v5718_v49 = vpack.c.bf16 %v3661_v45, %v3660_v44  ;;  %v3662_v50 = vld [vmem:[%s6929_s9 + $0x620] sm:$0xff]  ;;  %v3663_v52 = vld [vmem:[%s6929_s9 + $0x628] sm:$0xff] }
 0x5cb   : > { %v7334_v55 = vsel %vm1266_vm13, %v1261_v53, %v7331_v54  ;;  %v5721_v53 = vpack.c.bf16 %v3663_v52, %v3662_v50  ;;  %v3675_v50 = vld [vmem:[%s6938_s18 + $0xc] ss:$0 sm:$0xff] }
 0x5cc   : > { %4794 = vmatmul.mubr.f32.vlgmr.msra.gmra.mrb[8].mxu1 %v7334_v55 }
 0x5cd   : > { %4863 = vmatprep.mubr.msk.f32.mxu1 %vm6619_vm0, %v6620_v7  ;;  %5692 = vmatpush3.bf16.msra.mxu1 %v5691_v10 }
 0x5ce   : > { %5693 = vmatprep.subr.bf16.mxu1 %v6618_v4 }
 0x5d1   : > { %5695 = vmatpush3.bf16.msra.mxu1 %v5694_v14  ;;  %v5757_v14 = vpack.c.bf16 %v3691_v12, %v3690_v11 }
 0x5d2   : > { %5696 = vmatprep.subr.bf16.mxu1 %v6618_v4 }
 0x5d5   : > { %5698 = vmatpush3.bf16.msra.mxu1 %v5697_v17  ;;  %v1685_v17 = vstv %s1684_s2  ;;  %s2338_s2 = scalar_select %p2337_p8, 1, 0 }
 0x5d6   : > { %5699 = vmatprep.subr.bf16.mxu1 %v6618_v4  ;;  %vm7478_vm1 = vcmp.eq.s32.totalorder %v1685_v17, 1 }
 0x67f   : > { %v1140_v24 = vpop.f32.mrb[6].mxu1 }
 0x680   : > { %v1141_v13 = vadd.f32 %v3581_v20, %v1140_v24  ;;  %v4725_v25 = vpop.f32.mrb[7].mxu1  ;;  %v5700_v20 = vpack.c.bf16 %v3647_v19, %v3646_v18  ;;  %v5703_v24 = vpack.c.bf16 %v3649_v21, %v3648_v22  ;;  %v1689_v18 = vstv %s1688_s11  ;;  %s7770_s11 = sadd.s32 5, %s7006_s14 }
 0x681   : > { %v3652_v25 = vld [vmem:[%s6929_s9 + $0x5e0] sm:$0xff]  ;;  %v5760_v19 = vpack.c.bf16 %v3693_v16, %v3692_v15  ;;  %vm7482_vm2 = vcmp.eq.s32.totalorder %v1689_v18, 1  ;;  %v3736_v15 = vld [vmem:[%s6929_s9 + $0x810] sm:$0xff]  ;;  %v3737_v16 = vld [vmem:[%s6929_s9 + $0x818] sm:$0xff] }
 0x682   : > { %v1145_v28 = vmul.f32 %v1144_v23, %v1141_v13  ;;  %5701 = vmatpush3.bf16.msra.mxu1 %v5700_v20  ;;  %v3650_v23 = vld [vmem:[%s6929_s9 + $0x5d0] sm:$0xff]  ;;  %v3651_v13 = vld [vmem:[%s6929_s9 + $0x5d8] sm:$0xff]  ;;  %v1695_v20 = vstv %s1694_s30  ;;  %v5814_v18 = vpack.c.bf16 %v3737_v16, %v3736_v15  ;;  %s2438_s30 = sld [smem:[#allocation3 + %s7770_s11]] }
 0x683   : > { %5702 = vmatprep.subr.bf16.mxu1 %v6618_v4  ;;  %vm1696_vm3 = vcmp.eq.s32.totalorder %v1695_v20, 1  ;;  %v3739_v20 = vld [vmem:[%s6929_s9 + $0x828] sm:$0xff] }
 0x684   : > { %v7368_v29 = vadd.f32 %v1145_v28, %v715_v26  ;;  %v5706_v26 = vpack.c.bf16 %v3651_v13, %v3650_v23  ;;  %v3653_v28 = vld [vmem:[%s6929_s9 + $0x5e8] sm:$0xff] }
 0x686   : > { %5704 = vmatpush3.bf16.msra.mxu1 %v5703_v24  ;;  %v3758_v24 = vld [vmem:[%s6929_s9 + $0x8a0] sm:$0xff] }
 0x687   : > { %5705 = vmatprep.subr.bf16.mxu1 %v6618_v4 }
 0x68a   : > { %5707 = vmatpush3.bf16.msra.mxu1 %v5706_v26 }
 0x68b   : > { %5708 = vmatprep.subr.bf16.mxu1 %v6618_v4 }
 0x69f   : > { %v1356_v31 = vpop.f32.mrb[8].mxu1 }
 0x6a0   : > { %v1357_v32 = vadd.f32 %v3619_v30, %v1356_v31  ;;  %v4795_v33 = vpop.f32.mrb[9].mxu1  ;;  %v5709_v30 = vpack.c.bf16 %v3653_v28, %v3652_v25  ;;  %v3654_v31 = vld [vmem:[%s6929_s9 + $0x5f0] sm:$0xff] }
 0x6a2   : > { %v3620_v34 = vmul.f32 -1.442695, %v1357_v32  ;;  %v1360_v41 = vmax.f32 %v1357_v32, 0.0  ;;  %5710 = vmatpush3.bf16.msra.mxu1 %v5709_v30  ;;  %v3697_v30 = vld [vmem:[%s6929_s9 + $0x700] sm:$0xff] }
 0x6a3   : > { %5711 = vmatprep.subr.bf16.mxu1 %v6618_v4 }
 0x6a4   : > { %6273 = vpow2.f32 %v3620_v34  ;;  %v3638_v34 = vld [vmem:[%s6938_s18 + $0xa] ss:$0 sm:$0xff] }
 0x6a5   : > { %6275 = vtanh.f32 %v1357_v32  ;;  %v3655_v32 = vld [vmem:[%s6929_s9 + $0x5f8] sm:$0xff] }
 0x6a6   : > { %v5712_v33 = vpack.c.bf16 %v3655_v32, %v3654_v31  ;;  %v3698_v31 = vld [vmem:[%s6929_s9 + $0x708] sm:$0xff] }
 0x6a7   : > { %v5763_v32 = vpack.c.bf16 %v3698_v31, %v3697_v30  ;;  %v3744_v31 = vld [vmem:[%s6929_s9 + $0x850] sm:$0xff] }
 0x6a8   : > { %5713 = vmatpush3.bf16.msra.mxu1 %v5712_v33  ;;  %v3699_v33 = vld [vmem:[%s6929_s9 + $0x710] sm:$0xff] }
 0x6a9   : > { %5738 = vmatprep.subr.bf16.mxu1 %v6618_v4 }
 0x6ae   : > { %v6274_v35 = vpop.eup %6273 }
 0x6af   : > { %v1365_v56 = vadd.f32 1.0, %v6274_v35  ;;  %v6276_v39 = vpop.eup %6275 }
 0x6b1   : > { %6277 = vrcp.f32 %v1365_v56 }
 0x6bb   : > { %v6278_v40 = vpop.eup %6277 }
 0x6bc   : > { %v1368_v27 = vsel %vm7317_vm11, %v6276_v39, %v6278_v40  ;;  %v1479_v40 = vstv %s1478_s22  ;;  %s2114_s22 = scalar_select %p2106_p2, 1, 0 }
 0x6bd   : > { %v1369_v43 = vsel %vm7321_vm12, %v1360_v41, %v1368_v27  ;;  %v3678_v41 = vld [vmem:[%s6929_s9 + $0x680] sm:$0xff]  ;;  %v3679_v27 = vld [vmem:[%s6929_s9 + $0x688] sm:$0xff]  ;;  %vm1480_vm15 = vcmp.eq.s32.totalorder %v1479_v40, 1 }
 0x6be   : > { %v7381_v47 = vsel %vm1373_vm14, %v1369_v43, %v7334_v55  ;;  %v3664_v55 = vld [vmem:[%s6929_s9 + $0x630] sm:$0xff] }
 0x6bf   : > { %4829 = vmatmul.mubr.f32.vlgmr.msra.gmra.mrb[10].mxu0 %v7381_v47  ;;  %v5724_v58 = vpack.c.bf16 %v3665_v57, %v3664_v55  ;;  %v3681_v55 = vld [vmem:[%s6929_s9 + $0x698] sm:$0xff] }
 0x6c0   : > { %5716 = vmatpush3.bf16.msra.mxu0 %v5715_v42  ;;  %4898 = vmatprep.mubr.msk.f32.mxu0 %vm6619_vm0, %v6620_v7 }
 0x6c1   : > { %5717 = vmatprep.subr.bf16.mxu0 %v6618_v4 }
 0x6c4   : > { %5719 = vmatpush3.bf16.msra.mxu0 %v5718_v49  ;;  %v5739_v49 = vpack.c.bf16 %v3679_v27, %v3678_v41  ;;  %v3705_v41 = vld [vmem:[%s6929_s9 + $0x740] sm:$0xff]  ;;  %v3706_v27 = vld [vmem:[%s6929_s9 + $0x748] sm:$0xff] }
 0x6c5   : > { %5720 = vmatprep.subr.bf16.mxu0 %v6618_v4 }
 0x6c8   : > { %5722 = vmatpush3.bf16.msra.mxu0 %v5721_v53  ;;  %v3680_v53 = vld [vmem:[%s6929_s9 + $0x690] sm:$0xff] }
 0x6c9   : > { %5723 = vmatprep.subr.bf16.mxu0 %v6618_v4  ;;  %v5742_v59 = vpack.c.bf16 %v3681_v55, %v3680_v53  ;;  %v3711_v53 = vld [vmem:[%s6929_s9 + $0x770] sm:$0xff]  ;;  %v3712_v55 = vld [vmem:[%s6929_s9 + $0x778] sm:$0xff] }
 0x6cc   : > { %5725 = vmatpush3.bf16.msra.mxu0 %v5724_v58 }
 0x6cd   : > { %5726 = vmatprep.subr.bf16.mxu0 %v6618_v4 }
 0x6d0   : > { %5728 = vmatpush3.bf16.msra.mxu0 %v5727_v0  ;;  %v3683_v0 = vld [vmem:[%s6929_s9 + $0x6a8] sm:$0xff] }
 0x6d1   : > { %5729 = vmatprep.subr.bf16.mxu0 %v6618_v4  ;;  %v5745_v60 = vpack.c.bf16 %v3683_v0, %v3682_v48 }
 0x6d4   : > { %5731 = vmatpush3.bf16.msra.mxu0 %v5730_v61  ;;  %v3685_v61 = vld [vmem:[%s6929_s9 + $0x6b8] sm:$0xff] }
 0x6d5   : > { %5732 = vmatprep.subr.bf16.mxu0 %v6618_v4  ;;  %v5748_v63 = vpack.c.bf16 %v3685_v61, %v3684_v51 }
 0x6d8   : > { %5734 = vmatpush3.bf16.msra.mxu0 %v5733_v2  ;;  %v3687_v2 = vld [vmem:[%s6929_s9 + $0x6c8] sm:$0xff] }
 0x6d9   : > { %5735 = vmatprep.subr.bf16.mxu0 %v6618_v4  ;;  %v5751_v3 = vpack.c.bf16 %v3687_v2, %v3686_v1 }
 0x6dc   : > { %5737 = vmatpush3.bf16.msra.mxu0 %v5736_v6  ;;  %v3689_v6 = vld [vmem:[%s6929_s9 + $0x6d8] sm:$0xff] }
 0x6dd   : > { %5762 = vmatprep.subr.bf16.mxu0 %v6618_v4  ;;  %v5754_v10 = vpack.c.bf16 %v3689_v6, %v3688_v5  ;;  %v1802_v5 = vstv %s1801_s8  ;;  %v3734_v6 = vld [vmem:[%s6929_s9 + $0x800] sm:$0xff]  ;;  %s7783_s8 = sadd.s32 4294967295, %s2438_s30 }
 0x6de   : > { %vm1803_vm4 = vcmp.eq.s32.totalorder %v1802_v5, 1  ;;  %p2553_p11 = scmp.gt.s32.totalorder %s7783_s8, 0  ;;  %p2660_p6 = scmp.gt.s32.totalorder %s7783_s8, 1 }
 0x6df   : > { %4899 = vmatmul.mubr.f32.vlgmr.msra.gmra.mrb[12].mxu0 %v7331_v54  ;;  %p2767_p13 = scmp.gt.s32.totalorder %s7783_s8, 2 }
 0x6e0   : > { %4968 = vmatprep.mubr.msk.f32.mxu0 %vm6619_vm0, %v6620_v7  ;;  %5764 = vmatpush3.bf16.msra.mxu0 %v5763_v32  ;;  %v3745_v32 = vld [vmem:[%s6929_s9 + $0x858] sm:$0xff]  ;;  %s2554_s4 = scalar_select %p2553_p11, 1, 0 }
 0x6e1   : > { %5765 = vmatprep.subr.bf16.mxu0 %v6618_v4  ;;  %s2661_s24 = scalar_select %p2660_p6, 1, 0 }
 0x792   : > { %v1463_v35 = vpop.f32.mrb[10].mxu0 }
 0x793   : > { %v1464_v56 = vadd.f32 %v3638_v34, %v1463_v35  ;;  %v4830_v36 = vpop.f32.mrb[11].mxu0  ;;  %v3700_v34 = vld [vmem:[%s6929_s9 + $0x718] sm:$0xff] }
 0x794   : > { %v5766_v35 = vpack.c.bf16 %v3700_v34, %v3699_v33  ;;  %v3702_v36 = vld [vmem:[%s6929_s9 + $0x728] sm:$0xff]  ;;  %v5826_v33 = vpack.c.bf16 %v3745_v32, %v3744_v31  ;;  %v3746_v34 = vld [vmem:[%s6929_s9 + $0x860] sm:$0xff]  ;;  %v3760_v32 = vld [vmem:[%s6929_s9 + $0x8b0] sm:$0xff] }
 0x795   : > { %v3639_v37 = vmul.f32 -1.442695, %v1464_v56  ;;  %v1467_v44 = vmax.f32 %v1464_v56, 0.0 }
 0x796   : > { %5767 = vmatpush3.bf16.msra.mxu0 %v5766_v35  ;;  %v3747_v35 = vld [vmem:[%s6929_s9 + $0x868] sm:$0xff] }
 0x797   : > { %6279 = vpow2.f32 %v3639_v37  ;;  %5768 = vmatprep.subr.bf16.mxu0 %v6618_v4 }
 0x798   : > { %6281 = vtanh.f32 %v1464_v56  ;;  %v3701_v56 = vld [vmem:[%s6929_s9 + $0x720] sm:$0xff] }
 0x799   : > { %v5769_v37 = vpack.c.bf16 %v3702_v36, %v3701_v56  ;;  %v5829_v56 = vpack.c.bf16 %v3747_v35, %v3746_v34  ;;  %v3748_v36 = vld [vmem:[%s6929_s9 + $0x870] sm:$0xff]  ;;  %v3762_v35 = vld [vmem:[%s6929_s9 + $0x8c0] sm:$0xff] }
 0x79b   : > { %5770 = vmatpush3.bf16.msra.mxu0 %v5769_v37  ;;  %v3749_v37 = vld [vmem:[%s6929_s9 + $0x878] sm:$0xff] }
 0x79c   : > { %5771 = vmatprep.subr.bf16.mxu0 %v6618_v4 }
 0x7a1   : > { %v6280_v38 = vpop.eup %6279 }
 0x7a2   : > { %v1472_v39 = vadd.f32 1.0, %v6280_v38  ;;  %v6282_v42 = vpop.eup %6281  ;;  %v3703_v38 = vld [vmem:[%s6929_s9 + $0x730] sm:$0xff] }
 0x7a4   : > { %6283 = vrcp.f32 %v1472_v39  ;;  %v3704_v39 = vld [vmem:[%s6929_s9 + $0x738] sm:$0xff] }
 0x7a5   : > { %v5772_v40 = vpack.c.bf16 %v3704_v39, %v3703_v38  ;;  %v5832_v38 = vpack.c.bf16 %v3749_v37, %v3748_v36  ;;  %v3716_v39 = vld [vmem:[%s6929_s9 + $0x780] sm:$0xff]  ;;  %v3764_v37 = vld [vmem:[%s6929_s9 + $0x8d0] sm:$0xff] }
 0x7a7   : > { %5773 = vmatpush3.bf16.msra.mxu0 %v5772_v40  ;;  %v3717_v40 = vld [vmem:[%s6929_s9 + $0x788] sm:$0xff] }
 0x7a8   : > { %5774 = vmatprep.subr.bf16.mxu0 %v6618_v4 }
 0x7ae   : > { %v6284_v43 = vpop.eup %6283 }
 0x7af   : > { %v1475_v45 = vsel %vm7317_vm11, %v6282_v42, %v6284_v43  ;;  %v5775_v42 = vpack.c.bf16 %v3706_v27, %v3705_v41  ;;  %v3707_v43 = vld [vmem:[%s6929_s9 + $0x750] sm:$0xff]  ;;  %v5787_v41 = vpack.c.bf16 %v3717_v40, %v3716_v39 }
 0x7b0   : > { %v1476_v52 = vsel %vm7321_vm12, %v1467_v44, %v1475_v45  ;;  %v3708_v44 = vld [vmem:[%s6929_s9 + $0x758] sm:$0xff]  ;;  %v3718_v27 = vld [vmem:[%s6929_s9 + $0x790] sm:$0xff] }
 0x7b1   : > { %v1481_v57 = vsel %vm1480_vm15, %v1476_v52, %v7381_v47  ;;  %5776 = vmatpush3.bf16.msra.mxu0 %v5775_v42  ;;  %v5778_v45 = vpack.c.bf16 %v3708_v44, %v3707_v43  ;;  %v3719_v42 = vld [vmem:[%s6929_s9 + $0x798] sm:$0xff]  ;;  %v3720_v44 = vld [vmem:[%s6929_s9 + $0x7a0] sm:$0xff] }
 0x7b2   : > { %v1670_v58 = vpop.f32.mrb[12].mxu0  ;;  %4864 = vmatmul.mubr.f32.vlgmr.msra.gmra.mrb[10].mxu1 %v1481_v57  ;;  %5777 = vmatprep.subr.bf16.mxu0 %v6618_v4  ;;  %v5784_v57 = vpack.c.bf16 %v3712_v55, %v3711_v53  ;;  %v5790_v43 = vpack.c.bf16 %v3719_v42, %v3718_v27  ;;  %v3724_v55 = vld [vmem:[%s6929_s9 + $0x7c0] sm:$0xff]  ;;  %v3767_v42 = vld [vmem:[%s6929_s9 + $0x8e8] sm:$0xff] }
 0x7b3   : > { %v7445_v62 = vadd.f32 %v3675_v50, %v1670_v58  ;;  %v4900_v46 = vpop.f32.mrb[13].mxu0  ;;  %5740 = vmatpush3.bf16.msra.mxu1 %v5739_v49  ;;  %4933 = vmatprep.mubr.msk.f32.mxu1 %vm6619_vm0, %v6620_v7  ;;  %v3709_v49 = vld [vmem:[%s6929_s9 + $0x760] sm:$0xff]  ;;  %v3710_v50 = vld [vmem:[%s6929_s9 + $0x768] sm:$0xff] }
 0x7b4   : > { %5741 = vmatprep.subr.bf16.mxu1 %v6618_v4  ;;  %v5781_v52 = vpack.c.bf16 %v3710_v50, %v3709_v49  ;;  %v3657_v58 = vld [vmem:[%s6938_s18 + $0xb] ss:$0 sm:$0xff]  ;;  %v1574_v46 = vstv %s1150_s0  ;;  %v3722_v50 = vld [vmem:[%s6929_s9 + $0x7b0] sm:$0xff]  ;;  %s2439_s0 = sld [smem:[#allocation4 + %s7770_s11]] }
 0x7b5   : > { %v3676_v47 = vmul.f32 -1.442695, %v7445_v62  ;;  %v1675_v13 = vmax.f32 %v7445_v62, 0.0  ;;  %5779 = vmatpush3.bf16.msra.mxu0 %v5778_v45  ;;  %v3721_v45 = vld [vmem:[%s6929_s9 + $0x7a8] sm:$0xff]  ;;  %v3766_v27 = vld [vmem:[%s6929_s9 + $0x8e0] sm:$0xff] }
 0x7b6   : > { %5780 = vmatprep.subr.bf16.mxu0 %v6618_v4  ;;  %v5793_v49 = vpack.c.bf16 %v3721_v45, %v3720_v44  ;;  %v3768_v44 = vld [vmem:[%s6929_s9 + $0x8f0] sm:$0xff]  ;;  %v3769_v45 = vld [vmem:[%s6929_s9 + $0x8f8] sm:$0xff] }
 0x7b7   : > { %6285 = vpow2.f32 %v3676_v47  ;;  %5743 = vmatpush3.bf16.msra.mxu1 %v5742_v59 }
 0x7b8   : > { %5744 = vmatprep.subr.bf16.mxu1 %v6618_v4  ;;  %6287 = vtanh.f32 %v7445_v62 }
 0x7b9   : > { %5782 = vmatpush3.bf16.msra.mxu0 %v5781_v52  ;;  %v3723_v52 = vld [vmem:[%s6929_s9 + $0x7b8] sm:$0xff] }
 0x7ba   : > { %5783 = vmatprep.subr.bf16.mxu0 %v6618_v4  ;;  %v5796_v53 = vpack.c.bf16 %v3723_v52, %v3722_v50  ;;  %v2119_v50 = vstv %s2118_s17  ;;  %v5856_v52 = vpack.c.bf16 %v3769_v45, %v3768_v44  ;;  %v3813_v44 = vld [vmem:[%s6929_s9 + $0xa18] sm:$0xff]  ;;  %p2536_p10 = scmp.eq.s32.totalorder %s2439_s0, 1  ;;  %p2534_p1 = scmp.eq.s32.totalorder %s2439_s0, 0 }
 0x7bb   : > { %5746 = vmatpush3.bf16.msra.mxu1 %v5745_v60  ;;  %v3695_v60 = vld [vmem:[%s6938_s18 + $0xd] ss:$0 sm:$0xff]  ;;  %vm7639_vm7 = vcmp.eq.s32.totalorder %v2119_v50, 1  ;;  %v3814_v50 = vld [vmem:[%s6929_s9 + $0xa20] sm:$0xff]  ;;  %s7927_s17 = sadd.s32 6, %s7006_s14  ;;  %s2440_s0 = sld [smem:[#allocation5 + %s7770_s11]] }
 0x7bc   : > { %5747 = vmatprep.subr.bf16.mxu1 %v6618_v4  ;;  %s2548_s20 = scalar_select %p2534_p1, 1, 0 }
 0x7bd   : > { %5785 = vmatpush3.bf16.msra.mxu0 %v5784_v57  ;;  %v3725_v57 = vld [vmem:[%s6929_s9 + $0x7c8] sm:$0xff] }
 0x7be   : > { %5810 = vmatprep.subr.bf16.mxu0 %v6618_v4 }
 0x7bf   : > { %5749 = vmatpush3.bf16.msra.mxu1 %v5748_v63 }
 0x7c0   : > { %5750 = vmatprep.subr.bf16.mxu1 %v6618_v4 }
 0x7c1   : > { %v6286_v8 = vpop.eup %6285 }
 0x7c2   : > { %v1681_v9 = vadd.f32 1.0, %v6286_v8  ;;  %v6288_v21 = vpop.eup %6287  ;;  %v3735_v8 = vld [vmem:[%s6929_s9 + $0x808] sm:$0xff] }
 0x7c3   : > { %5752 = vmatpush3.bf16.msra.mxu1 %v5751_v3  ;;  %v5811_v12 = vpack.c.bf16 %v3735_v8, %v3734_v6 }
 0x7c4   : > { %6289 = vrcp.f32 %v1681_v9  ;;  %5753 = vmatprep.subr.bf16.mxu1 %v6618_v4 }
 0x7c7   : > { %5755 = vmatpush3.bf16.msra.mxu1 %v5754_v10 }
 0x7c8   : > { %5756 = vmatprep.subr.bf16.mxu1 %v6618_v4 }
 0x7cb   : > { %5758 = vmatpush3.bf16.msra.mxu1 %v5757_v14 }
 0x7cc   : > { %5759 = vmatprep.subr.bf16.mxu1 %v6618_v4 }
 0x7ce   : > { %v6290_v23 = vpop.eup %6289 }
 0x7cf   : > { %5761 = vmatpush3.bf16.msra.mxu1 %v5760_v19  ;;  %v1687_v25 = vsel %vm7478_vm1, %v6288_v21, %v6290_v23  ;;  %v3738_v19 = vld [vmem:[%s6929_s9 + $0x820] sm:$0xff]  ;;  %v3740_v23 = vld [vmem:[%s6929_s9 + $0x830] sm:$0xff] }
 0x7d0   : > { %v1691_v26 = vsel %vm7482_vm2, %v1675_v13, %v1687_v25  ;;  %5786 = vmatprep.subr.bf16.mxu1 %v6618_v4  ;;  %v5817_v21 = vpack.c.bf16 %v3739_v20, %v3738_v19  ;;  %v3741_v13 = vld [vmem:[%s6929_s9 + $0x838] sm:$0xff]  ;;  %v3751_v19 = vld [vmem:[%s6938_s18 + $0x10] ss:$0 sm:$0xff] }
 0x7d1   : > { %v7493_v28 = vsel %vm1696_vm3, %v1691_v26, %v7331_v54  ;;  %v5820_v25 = vpack.c.bf16 %v3741_v13, %v3740_v23  ;;  %v3742_v26 = vld [vmem:[%s6929_s9 + $0x840] sm:$0xff]  ;;  %v3757_v23 = vld [vmem:[%s6929_s9 + $0x898] sm:$0xff] }
 0x7d2   : > { %4934 = vmatmul.mubr.f32.vlgmr.msra.gmra.mrb[12].mxu1 %v7493_v28 }
 0x7d3   : > { %5003 = vmatprep.mubr.msk.f32.mxu1 %vm6619_vm0, %v6620_v7  ;;  %5788 = vmatpush3.bf16.msra.mxu1 %v5787_v41 }
 0x7d4   : > { %5789 = vmatprep.subr.bf16.mxu1 %v6618_v4 }
 0x7d7   : > { %5791 = vmatpush3.bf16.msra.mxu1 %v5790_v43  ;;  %v5853_v43 = vpack.c.bf16 %v3767_v42, %v3766_v27 }
 0x7d8   : > { %5792 = vmatprep.subr.bf16.mxu1 %v6618_v4 }
 0x7db   : > { %5794 = vmatpush3.bf16.msra.mxu1 %v5793_v49  ;;  %v2115_v49 = vstv %s2114_s22  ;;  %s2768_s22 = scalar_select %p2767_p13, 1, 0 }
 0x7dc   : > { %5795 = vmatprep.subr.bf16.mxu1 %v6618_v4  ;;  %vm7635_vm6 = vcmp.eq.s32.totalorder %v2115_v49, 1 }
 0x7df   : > { %5797 = vmatpush3.bf16.msra.mxu1 %v5796_v53  ;;  %v2125_v53 = vstv %s2124_s19  ;;  %s2868_s19 = sld [smem:[#allocation3 + %s7927_s17]] }
 0x7e0   : > { %5798 = vmatprep.subr.bf16.mxu1 %v6618_v4  ;;  %vm2126_vm8 = vcmp.eq.s32.totalorder %v2125_v53, 1 }
 0x7e5   : > { %s7940_s14 = sadd.s32 4294967295, %s2868_s19 }
 0x7e6   : > { %p2983_p0 = scmp.gt.s32.totalorder %s7940_s14, 0  ;;  %p3090_p5 = scmp.gt.s32.totalorder %s7940_s14, 1 }
 0x7e7   : > { %p3197_p2 = scmp.gt.s32.totalorder %s7940_s14, 2 }
 0x7e8   : > { %s2984_s30 = scalar_select %p2983_p0, 1, 0 }
 0x7e9   : > { %s3091_s11 = scalar_select %p3090_p5, 1, 0 }
 0x7ea   : > { %s3198_s8 = scalar_select %p3197_p2, 1, 0 }
 0x885   : > { %v1570_v62 = vpop.f32.mrb[10].mxu1 }
 0x886   : > { %v1571_v59 = vadd.f32 %v3657_v58, %v1570_v62  ;;  %v4865_v48 = vpop.f32.mrb[11].mxu1  ;;  %v5799_v58 = vpack.c.bf16 %v3725_v57, %v3724_v55  ;;  %v3726_v62 = vld [vmem:[%s6929_s9 + $0x7d0] sm:$0xff] }
 0x888   : > { %v1575_v0 = vmul.f32 %v1574_v46, %v1571_v59  ;;  %5800 = vmatpush3.bf16.msra.mxu1 %v5799_v58  ;;  %v3727_v46 = vld [vmem:[%s6929_s9 + $0x7d8] sm:$0xff]  ;;  %v3728_v59 = vld [vmem:[%s6929_s9 + $0x7e0] sm:$0xff] }
 0x889   : > { %5801 = vmatprep.subr.bf16.mxu1 %v6618_v4  ;;  %v5802_v48 = vpack.c.bf16 %v3727_v46, %v3726_v62  ;;  %v3834_v58 = vld [vmem:[%s6929_s9 + $0xaa0] sm:$0xff] }
 0x88a   : > { %v7525_v47 = vadd.f32 %v1575_v0, %v7368_v29  ;;  %v3729_v0 = vld [vmem:[%s6929_s9 + $0x7e8] sm:$0xff] }
 0x88c   : > { %5803 = vmatpush3.bf16.msra.mxu1 %v5802_v48 }
 0x88d   : > { %5804 = vmatprep.subr.bf16.mxu1 %v6618_v4 }
 0x8a5   : > { %v1786_v51 = vpop.f32.mrb[12].mxu1 }
 0x8a6   : > { %v1787_v61 = vadd.f32 %v3695_v60, %v1786_v51  ;;  %v4935_v63 = vpop.f32.mrb[13].mxu1  ;;  %v5805_v60 = vpack.c.bf16 %v3729_v0, %v3728_v59  ;;  %v3730_v51 = vld [vmem:[%s6929_s9 + $0x7f0] sm:$0xff] }
 0x8a8   : > { %v3696_v1 = vmul.f32 -1.442695, %v1787_v61  ;;  %v1790_v10 = vmax.f32 %v1787_v61, 0.0  ;;  %5806 = vmatpush3.bf16.msra.mxu1 %v5805_v60  ;;  %v3773_v60 = vld [vmem:[%s6929_s9 + $0x900] sm:$0xff] }
 0x8a9   : > { %5807 = vmatprep.subr.bf16.mxu1 %v6618_v4 }
 0x8aa   : > { %6291 = vpow2.f32 %v3696_v1  ;;  %v3714_v1 = vld [vmem:[%s6938_s18 + $0xe] ss:$0 sm:$0xff] }
 0x8ab   : > { %6293 = vtanh.f32 %v1787_v61  ;;  %v3731_v61 = vld [vmem:[%s6929_s9 + $0x7f8] sm:$0xff] }
 0x8ac   : > { %v5808_v63 = vpack.c.bf16 %v3731_v61, %v3730_v51  ;;  %v3774_v51 = vld [vmem:[%s6929_s9 + $0x908] sm:$0xff] }
 0x8ad   : > { %v5859_v61 = vpack.c.bf16 %v3774_v51, %v3773_v60  ;;  %v3820_v60 = vld [vmem:[%s6929_s9 + $0xa50] sm:$0xff]  ;;  %v3821_v51 = vld [vmem:[%s6929_s9 + $0xa58] sm:$0xff] }
 0x8ae   : > { %5809 = vmatpush3.bf16.msra.mxu1 %v5808_v63  ;;  %v3775_v63 = vld [vmem:[%s6929_s9 + $0x910] sm:$0xff] }
 0x8af   : > { %5834 = vmatprep.subr.bf16.mxu1 %v6618_v4 }
 0x8b4   : > { %v6292_v2 = vpop.eup %6291 }
 0x8b5   : > { %v1795_v3 = vadd.f32 1.0, %v6292_v2  ;;  %v6294_v29 = vpop.eup %6293 }
 0x8b7   : > { %6295 = vrcp.f32 %v1795_v3 }
 0x8c1   : > { %v6296_v9 = vpop.eup %6295 }
 0x8c2   : > { %v1798_v11 = vsel %vm7478_vm1, %v6294_v29, %v6296_v9  ;;  %v1909_v9 = vstv %s1908_s13  ;;  %s2544_s13 = scalar_select %p2536_p10, 1, 0 }
 0x8c3   : > { %v1799_v14 = vsel %vm7482_vm2, %v1790_v10, %v1798_v11  ;;  %v3754_v10 = vld [vmem:[%s6929_s9 + $0x880] sm:$0xff]  ;;  %v3755_v11 = vld [vmem:[%s6929_s9 + $0x888] sm:$0xff]  ;;  %vm1910_vm5 = vcmp.eq.s32.totalorder %v1909_v9, 1 }
 0x8c4   : > { %v7538_v17 = vsel %vm1803_vm4, %v1799_v14, %v7493_v28  ;;  %v3743_v28 = vld [vmem:[%s6929_s9 + $0x848] sm:$0xff]  ;;  %v3781_v9 = vld [vmem:[%s6929_s9 + $0x940] sm:$0xff] }
 0x8c5   : > { %4969 = vmatmul.mubr.f32.vlgmr.msra.gmra.mrb[14].mxu0 %v7538_v17  ;;  %v5823_v30 = vpack.c.bf16 %v3743_v28, %v3742_v26 }
 0x8c6   : > { %5812 = vmatpush3.bf16.msra.mxu0 %v5811_v12  ;;  %5038 = vmatprep.mubr.msk.f32.mxu0 %vm6619_vm0, %v6620_v7 }
 0x8c7   : > { %5813 = vmatprep.subr.bf16.mxu0 %v6618_v4 }
 0x8ca   : > { %5815 = vmatpush3.bf16.msra.mxu0 %v5814_v18  ;;  %v5835_v18 = vpack.c.bf16 %v3755_v11, %v3754_v10  ;;  %v3782_v10 = vld [vmem:[%s6929_s9 + $0x948] sm:$0xff] }
 0x8cb   : > { %5816 = vmatprep.subr.bf16.mxu0 %v6618_v4  ;;  %v5871_v11 = vpack.c.bf16 %v3782_v10, %v3781_v9  ;;  %v3794_v10 = vld [vmem:[%s6929_s9 + $0x990] sm:$0xff] }
 0x8ce   : > { %5818 = vmatpush3.bf16.msra.mxu0 %v5817_v21  ;;  %v3756_v21 = vld [vmem:[%s6929_s9 + $0x890] sm:$0xff] }
 0x8cf   : > { %5819 = vmatprep.subr.bf16.mxu0 %v6618_v4  ;;  %v5838_v28 = vpack.c.bf16 %v3757_v23, %v3756_v21  ;;  %v3788_v21 = vld [vmem:[%s6929_s9 + $0x978] sm:$0xff] }
 0x8d2   : > { %5821 = vmatpush3.bf16.msra.mxu0 %v5820_v25 }
 0x8d3   : > { %5822 = vmatprep.subr.bf16.mxu0 %v6618_v4 }
 0x8d6   : > { %5824 = vmatpush3.bf16.msra.mxu0 %v5823_v30  ;;  %v3759_v30 = vld [vmem:[%s6929_s9 + $0x8a8] sm:$0xff] }
 0x8d7   : > { %5825 = vmatprep.subr.bf16.mxu0 %v6618_v4  ;;  %v5841_v31 = vpack.c.bf16 %v3759_v30, %v3758_v24 }
 0x8da   : > { %5827 = vmatpush3.bf16.msra.mxu0 %v5826_v33  ;;  %v3761_v33 = vld [vmem:[%s6929_s9 + $0x8b8] sm:$0xff] }
 0x8db   : > { %5828 = vmatprep.subr.bf16.mxu0 %v6618_v4  ;;  %v5844_v34 = vpack.c.bf16 %v3761_v33, %v3760_v32 }
 0x8de   : > { %5830 = vmatpush3.bf16.msra.mxu0 %v5829_v56  ;;  %v3763_v56 = vld [vmem:[%s6929_s9 + $0x8c8] sm:$0xff] }
 0x8df   : > { %5831 = vmatprep.subr.bf16.mxu0 %v6618_v4  ;;  %v5847_v36 = vpack.c.bf16 %v3763_v56, %v3762_v35 }
 0x8e2   : > { %5833 = vmatpush3.bf16.msra.mxu0 %v5832_v38  ;;  %v3765_v38 = vld [vmem:[%s6929_s9 + $0x8d8] sm:$0xff] }
 0x8e3   : > { %5858 = vmatprep.subr.bf16.mxu0 %v6618_v4  ;;  %v5850_v41 = vpack.c.bf16 %v3765_v38, %v3764_v37  ;;  %v3810_v37 = vld [vmem:[%s6929_s9 + $0xa00] sm:$0xff]  ;;  %v3811_v38 = vld [vmem:[%s6929_s9 + $0xa08] sm:$0xff] }
 0x8e4   : > { %v5907_v27 = vpack.c.bf16 %v3811_v38, %v3810_v37 }
 0x8e5   : > { %5039 = vmatmul.mubr.f32.vlgmr.msra.gmra.mrb[16].mxu0 %v7331_v54 }
 0x8e6   : > { %5108 = vmatprep.mubr.msk.f32.mxu0 %vm6619_vm0, %v6620_v7  ;;  %5860 = vmatpush3.bf16.msra.mxu0 %v5859_v61  ;;  %v5922_v61 = vpack.c.bf16 %v3821_v51, %v3820_v60  ;;  %v3836_v51 = vld [vmem:[%s6929_s9 + $0xab0] sm:$0xff] }
 0x8e7   : > { %5861 = vmatprep.subr.bf16.mxu0 %v6618_v4 }
 0x998   : > { %v1893_v2 = vpop.f32.mrb[14].mxu0 }
 0x999   : > { %v1894_v3 = vadd.f32 %v3714_v1, %v1893_v2  ;;  %v4970_v5 = vpop.f32.mrb[15].mxu0  ;;  %v3776_v1 = vld [vmem:[%s6929_s9 + $0x918] sm:$0xff] }
 0x99a   : > { %v5862_v2 = vpack.c.bf16 %v3776_v1, %v3775_v63  ;;  %v3822_v63 = vld [vmem:[%s6929_s9 + $0xa60] sm:$0xff]  ;;  %v3823_v1 = vld [vmem:[%s6929_s9 + $0xa68] sm:$0xff] }
 0x99b   : > { %v3715_v6 = vmul.f32 -1.442695, %v1894_v3  ;;  %v1897_v15 = vmax.f32 %v1894_v3, 0.0 }
 0x99c   : > { %5863 = vmatpush3.bf16.msra.mxu0 %v5862_v2  ;;  %v5925_v2 = vpack.c.bf16 %v3823_v1, %v3822_v63  ;;  %v3838_v1 = vld [vmem:[%s6929_s9 + $0xac0] sm:$0xff] }
 0x99d   : > { %6297 = vpow2.f32 %v3715_v6  ;;  %5864 = vmatprep.subr.bf16.mxu0 %v6618_v4  ;;  %v3779_v6 = vld [vmem:[%s6929_s9 + $0x930] sm:$0xff] }
 0x99e   : > { %6299 = vtanh.f32 %v1894_v3  ;;  %v3778_v3 = vld [vmem:[%s6929_s9 + $0x928] sm:$0xff] }
 0x9a7   : > { %v6298_v8 = vpop.eup %6297 }
 0x9a8   : > { %v1902_v29 = vadd.f32 1.0, %v6298_v8  ;;  %v6300_v12 = vpop.eup %6299  ;;  %v3780_v8 = vld [vmem:[%s6929_s9 + $0x938] sm:$0xff] }
 0x9aa   : > { %6301 = vrcp.f32 %v1902_v29  ;;  %v5868_v29 = vpack.c.bf16 %v3780_v8, %v3779_v6  ;;  %v7720_v6 = vld [vmem:[#allocation6] sm:$0xff]  ;;  %v3792_v8 = vld [vmem:[%s6929_s9 + $0x980] sm:$0xff] }
 0x9b4   : > { %v6302_v14 = vpop.eup %6301 }
 0x9b5   : > { %v1905_v16 = vsel %vm7478_vm1, %v6300_v12, %v6302_v14  ;;  %v3783_v12 = vld [vmem:[%s6929_s9 + $0x950] sm:$0xff]  ;;  %v3784_v14 = vld [vmem:[%s6929_s9 + $0x958] sm:$0xff] }
 0x9b6   : > { %v1906_v20 = vsel %vm7482_vm2, %v1897_v15, %v1905_v16  ;;  %v5874_v15 = vpack.c.bf16 %v3784_v14, %v3783_v12  ;;  %v3785_v16 = vld [vmem:[%s6929_s9 + $0x960] sm:$0xff] }
 0x9b7   : > { %v1911_v13 = vsel %vm1910_vm5, %v1906_v20, %v7538_v17  ;;  %v3787_v20 = vld [vmem:[%s6929_s9 + $0x970] sm:$0xff]  ;;  %v3796_v14 = vld [vmem:[%s6929_s9 + $0x9a0] sm:$0xff] }
 0x9b8   : > { %v2100_v25 = vpop.f32.mrb[16].mxu0  ;;  %5004 = vmatmul.mubr.f32.vlgmr.msra.gmra.mrb[14].mxu1 %v1911_v13  ;;  %v5880_v23 = vpack.c.bf16 %v3788_v21, %v3787_v20  ;;  %v3733_v13 = vld [vmem:[%s6938_s18 + $0xf] ss:$0 sm:$0xff]  ;;  %v3800_v21 = vld [vmem:[%s6929_s9 + $0x9c0] sm:$0xff] }
 0x9b9   : > { %v7602_v26 = vadd.f32 %v3751_v19, %v2100_v25  ;;  %v5040_v22 = vpop.f32.mrb[17].mxu0  ;;  %5836 = vmatpush3.bf16.msra.mxu1 %v5835_v18  ;;  %5073 = vmatprep.mubr.msk.f32.mxu1 %vm6619_vm0, %v6620_v7  ;;  %v3786_v18 = vld [vmem:[%s6929_s9 + $0x968] sm:$0xff] }
 0x9ba   : > { %5837 = vmatprep.subr.bf16.mxu1 %v6618_v4  ;;  %v5877_v19 = vpack.c.bf16 %v3786_v18, %v3785_v16  ;;  %v3798_v18 = vld [vmem:[%s6929_s9 + $0x9b0] sm:$0xff] }
 0x9bb   : > { %v3752_v17 = vmul.f32 -1.442695, %v7602_v26  ;;  %v2105_v46 = vmax.f32 %v7602_v26, 0.0 }
 0x9bd   : > { %6303 = vpow2.f32 %v3752_v17  ;;  %5839 = vmatpush3.bf16.msra.mxu1 %v5838_v28  ;;  %v3771_v17 = vld [vmem:[%s6938_s18 + $0x11] ss:$0 sm:$0xff] }
 0x9be   : > { %5840 = vmatprep.subr.bf16.mxu1 %v6618_v4  ;;  %6305 = vtanh.f32 %v7602_v26  ;;  %v2004_v26 = vstv %s1580_s16  ;;  %s2869_s16 = sld [smem:[#allocation4 + %s7927_s17]] }
 0x9c1   : > { %5842 = vmatpush3.bf16.msra.mxu1 %v5841_v31 }
 0x9c2   : > { %5843 = vmatprep.subr.bf16.mxu1 %v6618_v4 }
 0x9c4   : > { %p2966_p9 = scmp.eq.s32.totalorder %s2869_s16, 1  ;;  %p2964_p7 = scmp.eq.s32.totalorder %s2869_s16, 0 }
 0x9c5   : > { %5845 = vmatpush3.bf16.msra.mxu1 %v5844_v34 }
 0x9c6   : > { %5846 = vmatprep.subr.bf16.mxu1 %v6618_v4 }
 0x9c7   : > { %v6304_v39 = vpop.eup %6303 }
 0x9c8   : > { %v2111_v40 = vadd.f32 1.0, %v6304_v39  ;;  %v6306_v57 = vpop.eup %6305 }
 0x9c9   : > { %5848 = vmatpush3.bf16.msra.mxu1 %v5847_v36  ;;  %v2232_v36 = vstv %s2231_s15  ;;  %s2974_s15 = scalar_select %p2966_p9, 1, 0 }
 0x9ca   : > { %6307 = vrcp.f32 %v2111_v40  ;;  %5849 = vmatprep.subr.bf16.mxu1 %v6618_v4  ;;  %vm2233_vm9 = vcmp.eq.s32.totalorder %v2232_v36, 1 }
 0x9cd   : > { %5851 = vmatpush3.bf16.msra.mxu1 %v5850_v41 }
 0x9ce   : > { %5852 = vmatprep.subr.bf16.mxu1 %v6618_v4 }
 0x9d1   : > { %5854 = vmatpush3.bf16.msra.mxu1 %v5853_v43  ;;  %v3812_v43 = vld [vmem:[%s6929_s9 + $0xa10] sm:$0xff] }
 0x9d2   : > { %5855 = vmatprep.subr.bf16.mxu1 %v6618_v4  ;;  %v5910_v49 = vpack.c.bf16 %v3813_v44, %v3812_v43 }
 0x9d4   : > { %v6308_v62 = vpop.eup %6307 }
 0x9d5   : > { %5857 = vmatpush3.bf16.msra.mxu1 %v5856_v52  ;;  %v2117_v59 = vsel %vm7635_vm6, %v6306_v57, %v6308_v62  ;;  %v3815_v52 = vld [vmem:[%s6929_s9 + $0xa28] sm:$0xff]  ;;  %v3816_v57 = vld [vmem:[%s6929_s9 + $0xa30] sm:$0xff]  ;;  %v3817_v62 = vld [vmem:[%s6929_s9 + $0xa38] sm:$0xff] }
 0x9d6   : > { %v2121_v48 = vsel %vm7639_vm7, %v2105_v46, %v2117_v59  ;;  %5882 = vmatprep.subr.bf16.mxu1 %v6618_v4  ;;  %v5913_v53 = vpack.c.bf16 %v3815_v52, %v3814_v50  ;;  %v5916_v46 = vpack.c.bf16 %v3817_v62, %v3816_v57  ;;  %v3818_v59 = vld [vmem:[%s6929_s9 + $0xa40] sm:$0xff]  ;;  %v3827_v50 = vld [vmem:[%s6938_s18 + $0x14] ss:$0 sm:$0xff]  ;;  %v3833_v57 = vld [vmem:[%s6929_s9 + $0xa98] sm:$0xff] }
 0x9d7   : > { %v7650_v0 = vsel %vm2126_vm8, %v2121_v48, %v7331_v54  ;;  %v3777_v54 = vld [vmem:[%s6929_s9 + $0x920] sm:$0xff]  ;;  %v3819_v48 = vld [vmem:[%s6929_s9 + $0xa48] sm:$0xff] }
 0x9d8   : > { %5074 = vmatmul.mubr.f32.vlgmr.msra.gmra.mrb[16].mxu1 %v7650_v0  ;;  %v5865_v5 = vpack.c.bf16 %v3778_v3, %v3777_v54  ;;  %v3824_v54 = vld [vmem:[%s6929_s9 + $0xa70] sm:$0xff]  ;;  %v3825_v3 = vld [vmem:[%s6929_s9 + $0xa78] sm:$0xff] }
 0x9d9   : > { %5143 = vmatprep.mubr.msk.f32.mxu1 %vm6619_vm0, %v6620_v7 }
 0x9da   : > { %5866 = vmatpush3.bf16.msra.mxu0 %v5865_v5  ;;  %v5928_v5 = vpack.c.bf16 %v3825_v3, %v3824_v54  ;;  %v3840_v3 = vld [vmem:[%s6929_s9 + $0xad0] sm:$0xff] }
 0x9db   : > { %5867 = vmatprep.subr.bf16.mxu0 %v6618_v4 }
 0x9de   : > { %5869 = vmatpush3.bf16.msra.mxu0 %v5868_v29  ;;  %v3793_v29 = vld [vmem:[%s6929_s9 + $0x988] sm:$0xff] }
 0x9df   : > { %5870 = vmatprep.subr.bf16.mxu0 %v6618_v4  ;;  %v5883_v9 = vpack.c.bf16 %v3793_v29, %v3792_v8 }
 0x9e1   : > { %5884 = vmatpush3.bf16.msra.mxu1 %v5883_v9 }
 0x9e2   : > { %5872 = vmatpush3.bf16.msra.mxu0 %v5871_v11  ;;  %5885 = vmatprep.subr.bf16.mxu1 %v6618_v4  ;;  %v3795_v11 = vld [vmem:[%s6929_s9 + $0x998] sm:$0xff] }
 0x9e3   : > { %5873 = vmatprep.subr.bf16.mxu0 %v6618_v4  ;;  %v5886_v12 = vpack.c.bf16 %v3795_v11, %v3794_v10  ;;  %v3842_v10 = vld [vmem:[%s6929_s9 + $0xae0] sm:$0xff]  ;;  %v3843_v11 = vld [vmem:[%s6929_s9 + $0xae8] sm:$0xff] }
 0x9e5   : > { %5887 = vmatpush3.bf16.msra.mxu1 %v5886_v12  ;;  %v5949_v12 = vpack.c.bf16 %v3843_v11, %v3842_v10 }
 0x9e6   : > { %5875 = vmatpush3.bf16.msra.mxu0 %v5874_v15  ;;  %5888 = vmatprep.subr.bf16.mxu1 %v6618_v4  ;;  %v3797_v15 = vld [vmem:[%s6929_s9 + $0x9a8] sm:$0xff] }
 0x9e7   : > { %5876 = vmatprep.subr.bf16.mxu0 %v6618_v4  ;;  %v5889_v16 = vpack.c.bf16 %v3797_v15, %v3796_v14  ;;  %v3844_v14 = vld [vmem:[%s6929_s9 + $0xaf0] sm:$0xff]  ;;  %v3845_v15 = vld [vmem:[%s6929_s9 + $0xaf8] sm:$0xff] }
 0x9e9   : > { %5890 = vmatpush3.bf16.msra.mxu1 %v5889_v16  ;;  %v2545_v16 = vstv %s2544_s13  ;;  %s3963_s13 = sshll.u32 %s6593_s7, 7  ;;  %s6621_s7 = smov [#allocation12]  }
 0x9ea   : > { %5878 = vmatpush3.bf16.msra.mxu0 %v5877_v19  ;;  %5891 = vmatprep.subr.bf16.mxu1 %v6618_v4  ;;  %v3799_v19 = vld [vmem:[%s6929_s9 + $0x9b8] sm:$0xff]  ;;  %vm7794_vm11 = vcmp.eq.s32.totalorder %v2545_v16, 1 }
 0x9eb   : > { %5879 = vmatprep.subr.bf16.mxu0 %v6618_v4  ;;  %v5892_v20 = vpack.c.bf16 %v3799_v19, %v3798_v18  ;;  %v2549_v18 = vstv %s2548_s20  ;;  %v5952_v19 = vpack.c.bf16 %v3845_v15, %v3844_v14  ;;  %v3888_v14 = vld [vmem:[%s6929_s9 + $0xc10] sm:$0xff]  ;;  %v3889_v15 = vld [vmem:[%s6929_s9 + $0xc18] sm:$0xff]  ;;  %s3314_s20 = sshll.u32 %s6940_s23, 4  ;;  %s8046_s20 = int_to_ptr.vmem [resolvable:$true] %s3314_s20 }
 0x9ec   : > { %vm7798_vm12 = vcmp.eq.s32.totalorder %v2549_v18, 1  ;;  %v6006_v18 = vpack.c.bf16 %v3889_v15, %v3888_v14 }
 0x9ed   : > { %5893 = vmatpush3.bf16.msra.mxu1 %v5892_v20  ;;  %v2555_v20 = vstv %s2554_s4 }
 0x9ee   : > { %5881 = vmatpush3.bf16.msra.mxu0 %v5880_v23  ;;  %5894 = vmatprep.subr.bf16.mxu1 %v6618_v4  ;;  %v3801_v23 = vld [vmem:[%s6929_s9 + $0x9c8] sm:$0xff]  ;;  %vm2556_vm13 = vcmp.eq.s32.totalorder %v2555_v20, 1 }
 0x9ef   : > { %5906 = vmatprep.subr.bf16.mxu0 %v6618_v4  ;;  %v3891_v20 = vld [vmem:[%s6929_s9 + $0xc28] sm:$0xff] }
 0xa8b   : > { %v2000_v25 = vpop.f32.mrb[14].mxu1 }
 0xa8c   : > { %v2001_v22 = vadd.f32 %v3733_v13, %v2000_v25  ;;  %v5005_v28 = vpop.f32.mrb[15].mxu1  ;;  %v5895_v13 = vpack.c.bf16 %v3801_v23, %v3800_v21  ;;  %v3802_v25 = vld [vmem:[%s6929_s9 + $0x9d0] sm:$0xff] }
 0xa8e   : > { %v2005_v24 = vmul.f32 %v2004_v26, %v2001_v22  ;;  %5896 = vmatpush3.bf16.msra.mxu1 %v5895_v13  ;;  %v3803_v26 = vld [vmem:[%s6929_s9 + $0x9d8] sm:$0xff]  ;;  %v3804_v22 = vld [vmem:[%s6929_s9 + $0x9e0] sm:$0xff] }
 0xa8f   : > { %5897 = vmatprep.subr.bf16.mxu1 %v6618_v4  ;;  %v5898_v28 = vpack.c.bf16 %v3803_v26, %v3802_v25  ;;  %v3910_v13 = vld [vmem:[%s6929_s9 + $0xca0] sm:$0xff] }
 0xa90   : > { %v7682_v30 = vadd.f32 %v2005_v24, %v7525_v47  ;;  %v3805_v24 = vld [vmem:[%s6929_s9 + $0x9e8] sm:$0xff] }
 0xa92   : > { %5899 = vmatpush3.bf16.msra.mxu1 %v5898_v28 }
 0xa93   : > { %5900 = vmatprep.subr.bf16.mxu1 %v6618_v4 }
 0xaab   : > { %v2216_v31 = vpop.f32.mrb[16].mxu1 }
 0xaac   : > { %v2217_v32 = vadd.f32 %v3771_v17, %v2216_v31  ;;  %v5075_v33 = vpop.f32.mrb[17].mxu1  ;;  %v5901_v17 = vpack.c.bf16 %v3805_v24, %v3804_v22  ;;  %v3806_v31 = vld [vmem:[%s6929_s9 + $0x9f0] sm:$0xff] }
 0xaae   : > { %v3772_v34 = vmul.f32 -1.442695, %v2217_v32  ;;  %v2220_v40 = vmax.f32 %v2217_v32, 0.0  ;;  %5902 = vmatpush3.bf16.msra.mxu1 %v5901_v17  ;;  %v3849_v17 = vld [vmem:[%s6929_s9 + $0xb00] sm:$0xff] }
 0xaaf   : > { %5903 = vmatprep.subr.bf16.mxu1 %v6618_v4 }
 0xab0   : > { %6309 = vpow2.f32 %v3772_v34  ;;  %v3790_v34 = vld [vmem:[%s6938_s18 + $0x12] ss:$0 sm:$0xff] }
 0xab1   : > { %6311 = vtanh.f32 %v2217_v32  ;;  %v3807_v32 = vld [vmem:[%s6929_s9 + $0x9f8] sm:$0xff] }
 0xab2   : > { %v5904_v33 = vpack.c.bf16 %v3807_v32, %v3806_v31  ;;  %v3850_v31 = vld [vmem:[%s6929_s9 + $0xb08] sm:$0xff] }
 0xab3   : > { %v5955_v32 = vpack.c.bf16 %v3850_v31, %v3849_v17  ;;  %v3896_v31 = vld [vmem:[%s6929_s9 + $0xc50] sm:$0xff] }
 0xab4   : > { %5905 = vmatpush3.bf16.msra.mxu1 %v5904_v33  ;;  %v3851_v33 = vld [vmem:[%s6929_s9 + $0xb10] sm:$0xff] }
 0xab5   : > { %5930 = vmatprep.subr.bf16.mxu1 %v6618_v4 }
 0xaba   : > { %v6310_v35 = vpop.eup %6309 }
 0xabb   : > { %v2225_v56 = vadd.f32 1.0, %v6310_v35  ;;  %v6312_v47 = vpop.eup %6311 }
 0xabd   : > { %6313 = vrcp.f32 %v2225_v56 }
 0xac7   : > { %v6314_v39 = vpop.eup %6313 }
 0xac8   : > { %v2228_v41 = vsel %vm7635_vm6, %v6312_v47, %v6314_v39  ;;  %v2339_v39 = vstv %s2338_s2  ;;  %s2978_s2 = scalar_select %p2964_p7, 1, 0 }
 0xac9   : > { %v2229_v42 = vsel %vm7639_vm7, %v2220_v40, %v2228_v41  ;;  %v3830_v40 = vld [vmem:[%s6929_s9 + $0xa80] sm:$0xff]  ;;  %v3831_v41 = vld [vmem:[%s6929_s9 + $0xa88] sm:$0xff]  ;;  %vm2340_vm10 = vcmp.eq.s32.totalorder %v2339_v39, 1 }
 0xaca   : > { %v7695_v45 = vsel %vm2233_vm9, %v2229_v42, %v7650_v0  ;;  %v5919_v0 = vpack.c.bf16 %v3819_v48, %v3818_v59 }
 0xacb   : > { %5109 = vmatmul.mubr.f32.vlgmr.msra.gmra.mrb[18].mxu0 %v7695_v45 }
 0xacc   : > { %5908 = vmatpush3.bf16.msra.mxu0 %v5907_v27  ;;  %5178 = vmatprep.mubr.msk.f32.mxu0 %vm6619_vm0, %v6620_v7 }
 0xacd   : > { %5909 = vmatprep.subr.bf16.mxu0 %v6618_v4 }
 0xad0   : > { %5911 = vmatpush3.bf16.msra.mxu0 %v5910_v49  ;;  %v5931_v49 = vpack.c.bf16 %v3831_v41, %v3830_v40  ;;  %v3857_v40 = vld [vmem:[%s6929_s9 + $0xb40] sm:$0xff]  ;;  %v3858_v41 = vld [vmem:[%s6929_s9 + $0xb48] sm:$0xff] }
 0xad1   : > { %5912 = vmatprep.subr.bf16.mxu0 %v6618_v4 }
 0xad4   : > { %5914 = vmatpush3.bf16.msra.mxu0 %v5913_v53  ;;  %v3832_v53 = vld [vmem:[%s6929_s9 + $0xa90] sm:$0xff] }
 0xad5   : > { %5915 = vmatprep.subr.bf16.mxu0 %v6618_v4  ;;  %v5934_v48 = vpack.c.bf16 %v3833_v57, %v3832_v53  ;;  %v3863_v53 = vld [vmem:[%s6929_s9 + $0xb70] sm:$0xff]  ;;  %v3864_v57 = vld [vmem:[%s6929_s9 + $0xb78] sm:$0xff] }
 0xad8   : > { %5917 = vmatpush3.bf16.msra.mxu0 %v5916_v46 }
 0xad9   : > { %5918 = vmatprep.subr.bf16.mxu0 %v6618_v4 }
 0xadc   : > { %5920 = vmatpush3.bf16.msra.mxu0 %v5919_v0  ;;  %v3835_v0 = vld [vmem:[%s6929_s9 + $0xaa8] sm:$0xff] }
 0xadd   : > { %5921 = vmatprep.subr.bf16.mxu0 %v6618_v4  ;;  %v5937_v60 = vpack.c.bf16 %v3835_v0, %v3834_v58 }
 0xae0   : > { %5923 = vmatpush3.bf16.msra.mxu0 %v5922_v61  ;;  %v3837_v61 = vld [vmem:[%s6929_s9 + $0xab8] sm:$0xff] }
 0xae1   : > { %5924 = vmatprep.subr.bf16.mxu0 %v6618_v4  ;;  %v5940_v63 = vpack.c.bf16 %v3837_v61, %v3836_v51 }
 0xae4   : > { %5926 = vmatpush3.bf16.msra.mxu0 %v5925_v2  ;;  %v3839_v2 = vld [vmem:[%s6929_s9 + $0xac8] sm:$0xff] }
 0xae5   : > { %5927 = vmatprep.subr.bf16.mxu0 %v6618_v4  ;;  %v5943_v54 = vpack.c.bf16 %v3839_v2, %v3838_v1 }
 0xae8   : > { %5929 = vmatpush3.bf16.msra.mxu0 %v5928_v5  ;;  %v3841_v5 = vld [vmem:[%s6929_s9 + $0xad8] sm:$0xff] }
 0xae9   : > { %5954 = vmatprep.subr.bf16.mxu0 %v6618_v4  ;;  %v5946_v9 = vpack.c.bf16 %v3841_v5, %v3840_v3  ;;  %v2662_v3 = vstv %s2661_s24  ;;  %v3886_v5 = vld [vmem:[%s6929_s9 + $0xc00] sm:$0xff]  ;;  %s8044_s24 = scalar_lea.hbm %s8113_s6, %s3963_s13 }
 0xaea   : > { %vm2663_vm14 = vcmp.eq.s32.totalorder %v2662_v3, 1 }
 0xaeb   : > { %5179 = vmatmul.mubr.f32.vlgmr.msra.gmra.mrb[20].mxu0 %v7720_v6 }
 0xaec   : > { %5248 = vmatprep.mubr.msk.f32.mxu0 %vm6619_vm0, %v6620_v7  ;;  %5956 = vmatpush3.bf16.msra.mxu0 %v5955_v32  ;;  %v3897_v32 = vld [vmem:[%s6929_s9 + $0xc58] sm:$0xff] }
 0xaed   : > { %5957 = vmatprep.subr.bf16.mxu0 %v6618_v4 }
 0xb9e   : > { %v2323_v35 = vpop.f32.mrb[18].mxu0 }
 0xb9f   : > { %v2324_v56 = vadd.f32 %v3790_v34, %v2323_v35  ;;  %v5110_v36 = vpop.f32.mrb[19].mxu0  ;;  %v3852_v34 = vld [vmem:[%s6929_s9 + $0xb18] sm:$0xff] }
 0xba0   : > { %v5958_v35 = vpack.c.bf16 %v3852_v34, %v3851_v33  ;;  %v3854_v36 = vld [vmem:[%s6929_s9 + $0xb28] sm:$0xff]  ;;  %v6018_v33 = vpack.c.bf16 %v3897_v32, %v3896_v31  ;;  %v3898_v34 = vld [vmem:[%s6929_s9 + $0xc60] sm:$0xff]  ;;  %v3912_v32 = vld [vmem:[%s6929_s9 + $0xcb0] sm:$0xff] }
 0xba1   : > { %v3791_v37 = vmul.f32 -1.442695, %v2324_v56  ;;  %v2327_v43 = vmax.f32 %v2324_v56, 0.0 }
 0xba2   : > { %5959 = vmatpush3.bf16.msra.mxu0 %v5958_v35  ;;  %v3899_v35 = vld [vmem:[%s6929_s9 + $0xc68] sm:$0xff] }
 0xba3   : > { %6315 = vpow2.f32 %v3791_v37  ;;  %5960 = vmatprep.subr.bf16.mxu0 %v6618_v4 }
 0xba4   : > { %6317 = vtanh.f32 %v2324_v56  ;;  %v3853_v56 = vld [vmem:[%s6929_s9 + $0xb20] sm:$0xff] }
 0xba5   : > { %v5961_v37 = vpack.c.bf16 %v3854_v36, %v3853_v56  ;;  %v6021_v56 = vpack.c.bf16 %v3899_v35, %v3898_v34  ;;  %v3900_v36 = vld [vmem:[%s6929_s9 + $0xc70] sm:$0xff]  ;;  %v3914_v35 = vld [vmem:[%s6929_s9 + $0xcc0] sm:$0xff] }
 0xba7   : > { %5962 = vmatpush3.bf16.msra.mxu0 %v5961_v37  ;;  %v3901_v37 = vld [vmem:[%s6929_s9 + $0xc78] sm:$0xff] }
 0xba8   : > { %5963 = vmatprep.subr.bf16.mxu0 %v6618_v4 }
 0xbad   : > { %v6316_v38 = vpop.eup %6315 }
 0xbae   : > { %v2332_v47 = vadd.f32 1.0, %v6316_v38  ;;  %v6318_v27 = vpop.eup %6317  ;;  %v3855_v38 = vld [vmem:[%s6929_s9 + $0xb30] sm:$0xff] }
 0xbb0   : > { %6319 = vrcp.f32 %v2332_v47  ;;  %v3856_v47 = vld [vmem:[%s6929_s9 + $0xb38] sm:$0xff] }
 0xbb1   : > { %v5964_v39 = vpack.c.bf16 %v3856_v47, %v3855_v38  ;;  %v6024_v38 = vpack.c.bf16 %v3901_v37, %v3900_v36  ;;  %v3868_v47 = vld [vmem:[%s6929_s9 + $0xb80] sm:$0xff]  ;;  %v3916_v37 = vld [vmem:[%s6929_s9 + $0xcd0] sm:$0xff] }
 0xbb3   : > { %5965 = vmatpush3.bf16.msra.mxu0 %v5964_v39  ;;  %v3869_v39 = vld [vmem:[%s6929_s9 + $0xb88] sm:$0xff] }
 0xbb4   : > { %5966 = vmatprep.subr.bf16.mxu0 %v6618_v4 }
 0xbba   : > { %v6320_v42 = vpop.eup %6319 }
 0xbbb   : > { %v2335_v44 = vsel %vm7635_vm6, %v6318_v27, %v6320_v42  ;;  %v5967_v27 = vpack.c.bf16 %v3858_v41, %v3857_v40  ;;  %v3859_v42 = vld [vmem:[%s6929_s9 + $0xb50] sm:$0xff]  ;;  %v5979_v40 = vpack.c.bf16 %v3869_v39, %v3868_v47 }
 0xbbc   : > { %v2336_v52 = vsel %vm7639_vm7, %v2327_v43, %v2335_v44  ;;  %v3860_v43 = vld [vmem:[%s6929_s9 + $0xb58] sm:$0xff]  ;;  %v3870_v41 = vld [vmem:[%s6929_s9 + $0xb90] sm:$0xff] }
 0xbbd   : > { %v2341_v62 = vsel %vm2340_vm10, %v2336_v52, %v7695_v45  ;;  %5968 = vmatpush3.bf16.msra.mxu0 %v5967_v27  ;;  %v5970_v44 = vpack.c.bf16 %v3860_v43, %v3859_v42  ;;  %v3871_v27 = vld [vmem:[%s6929_s9 + $0xb98] sm:$0xff]  ;;  %v3872_v43 = vld [vmem:[%s6929_s9 + $0xba0] sm:$0xff] }
 0xbbe   : > { %v2530_v46 = vpop.f32.mrb[20].mxu0  ;;  %5144 = vmatmul.mubr.f32.vlgmr.msra.gmra.mrb[18].mxu1 %v2341_v62  ;;  %5969 = vmatprep.subr.bf16.mxu0 %v6618_v4  ;;  %v5976_v62 = vpack.c.bf16 %v3864_v57, %v3863_v53  ;;  %v5982_v42 = vpack.c.bf16 %v3871_v27, %v3870_v41  ;;  %v3876_v57 = vld [vmem:[%s6929_s9 + $0xbc0] sm:$0xff]  ;;  %v3919_v27 = vld [vmem:[%s6929_s9 + $0xce8] sm:$0xff] }
 0xbbf   : > { %v7761_v59 = vadd.f32 %v3827_v50, %v2530_v46  ;;  %v5180_v55 = vpop.f32.mrb[21].mxu0  ;;  %5932 = vmatpush3.bf16.msra.mxu1 %v5931_v49  ;;  %5213 = vmatprep.mubr.msk.f32.mxu1 %vm6619_vm0, %v6620_v7  ;;  %v3861_v49 = vld [vmem:[%s6929_s9 + $0xb60] sm:$0xff]  ;;  %v3862_v50 = vld [vmem:[%s6929_s9 + $0xb68] sm:$0xff] }
 0xbc0   : > { %5933 = vmatprep.subr.bf16.mxu1 %v6618_v4  ;;  %v5973_v52 = vpack.c.bf16 %v3862_v50, %v3861_v49  ;;  %v3809_v46 = vld [vmem:[%s6938_s18 + $0x13] ss:$0 sm:$0xff]  ;;  %v2434_v55 = vstv %s2010_s12  ;;  %v3918_v41 = vld [vmem:[%s6929_s9 + $0xce0] sm:$0xff] }
 0xbc1   : > { %v3828_v45 = vmul.f32 -1.442695, %v7761_v59  ;;  %v2535_v26 = vmax.f32 %v7761_v59, 0.0  ;;  %5971 = vmatpush3.bf16.msra.mxu0 %v5970_v44  ;;  %v3873_v44 = vld [vmem:[%s6929_s9 + $0xba8] sm:$0xff]  ;;  %v3874_v50 = vld [vmem:[%s6929_s9 + $0xbb0] sm:$0xff] }
 0xbc2   : > { %5972 = vmatprep.subr.bf16.mxu0 %v6618_v4  ;;  %v5985_v49 = vpack.c.bf16 %v3873_v44, %v3872_v43  ;;  %v3920_v43 = vld [vmem:[%s6929_s9 + $0xcf0] sm:$0xff]  ;;  %v3921_v44 = vld [vmem:[%s6929_s9 + $0xcf8] sm:$0xff] }
 0xbc3   : > { %6321 = vpow2.f32 %v3828_v45  ;;  %5935 = vmatpush3.bf16.msra.mxu1 %v5934_v48 }
 0xbc4   : > { %5936 = vmatprep.subr.bf16.mxu1 %v6618_v4  ;;  %6323 = vtanh.f32 %v7761_v59 }
 0xbc5   : > { %5974 = vmatpush3.bf16.msra.mxu0 %v5973_v52  ;;  %v3875_v52 = vld [vmem:[%s6929_s9 + $0xbb8] sm:$0xff] }
 0xbc6   : > { %5975 = vmatprep.subr.bf16.mxu0 %v6618_v4  ;;  %v5988_v53 = vpack.c.bf16 %v3875_v52, %v3874_v50  ;;  %v2979_v50 = vstv %s2978_s2  ;;  %v6048_v52 = vpack.c.bf16 %v3921_v44, %v3920_v43  ;;  %v3947_v43 = vld [vmem:[%s6929_s9 + $0xd98] sm:$0xff] }
 0xbc7   : > { %5938 = vmatpush3.bf16.msra.mxu1 %v5937_v60  ;;  %v3847_v60 = vld [vmem:[%s6938_s18 + $0x15] ss:$0 sm:$0xff]  ;;  %vm7955_vm2 = vcmp.eq.s32.totalorder %v2979_v50, 1  ;;  %v3949_v50 = vld [vmem:[%s6929_s9 + $0xda8] sm:$0xff] }
 0xbc8   : > { %5939 = vmatprep.subr.bf16.mxu1 %v6618_v4 }
 0xbc9   : > { %5977 = vmatpush3.bf16.msra.mxu0 %v5976_v62  ;;  %v3877_v62 = vld [vmem:[%s6929_s9 + $0xbc8] sm:$0xff] }
 0xbca   : > { %6002 = vmatprep.subr.bf16.mxu0 %v6618_v4 }
 0xbcb   : > { %5941 = vmatpush3.bf16.msra.mxu1 %v5940_v63 }
 0xbcc   : > { %5942 = vmatprep.subr.bf16.mxu1 %v6618_v4 }
 0xbcd   : > { %v6322_v8 = vpop.eup %6321 }
 0xbce   : > { %v2541_v29 = vadd.f32 1.0, %v6322_v8  ;;  %v6324_v23 = vpop.eup %6323  ;;  %v3887_v8 = vld [vmem:[%s6929_s9 + $0xc08] sm:$0xff] }
 0xbcf   : > { %5944 = vmatpush3.bf16.msra.mxu1 %v5943_v54  ;;  %v6003_v11 = vpack.c.bf16 %v3887_v8, %v3886_v5 }
 0xbd0   : > { %6325 = vrcp.f32 %v2541_v29  ;;  %5945 = vmatprep.subr.bf16.mxu1 %v6618_v4 }
 0xbd3   : > { %5947 = vmatpush3.bf16.msra.mxu1 %v5946_v9 }
 0xbd4   : > { %5948 = vmatprep.subr.bf16.mxu1 %v6618_v4 }
 0xbd7   : > { %5950 = vmatpush3.bf16.msra.mxu1 %v5949_v12 }
 0xbd8   : > { %5951 = vmatprep.subr.bf16.mxu1 %v6618_v4 }
 0xbda   : > { %v6326_v25 = vpop.eup %6325 }
 0xbdb   : > { %5953 = vmatpush3.bf16.msra.mxu1 %v5952_v19  ;;  %v2547_v22 = vsel %vm7794_vm11, %v6324_v23, %v6326_v25  ;;  %v3890_v19 = vld [vmem:[%s6929_s9 + $0xc20] sm:$0xff]  ;;  %v3892_v25 = vld [vmem:[%s6929_s9 + $0xc30] sm:$0xff] }
 0xbdc   : > { %v2551_v28 = vsel %vm7798_vm12, %v2535_v26, %v2547_v22  ;;  %5978 = vmatprep.subr.bf16.mxu1 %v6618_v4  ;;  %v6009_v23 = vpack.c.bf16 %v3891_v20, %v3890_v19  ;;  %v3893_v26 = vld [vmem:[%s6929_s9 + $0xc38] sm:$0xff] }
 0xbdd   : > { %v7809_v24 = vsel %vm2556_vm13, %v2551_v28, %v7720_v6  ;;  %v6012_v22 = vpack.c.bf16 %v3893_v26, %v3892_v25  ;;  %v3894_v28 = vld [vmem:[%s6929_s9 + $0xc40] sm:$0xff]  ;;  %v3903_v19 = vld [vmem:[%s6938_s18 + $0x18] ss:$0 sm:$0xff] }
 0xbde   : > { %5214 = vmatmul.mubr.f32.vlgmr.msra.gmra.mrb[20].mxu1 %v7809_v24  ;;  %v3909_v25 = vld [vmem:[%s6929_s9 + $0xc98] sm:$0xff] }
 0xbdf   : > { %5283 = vmatprep.mubr.msk.f32.mxu1 %vm6619_vm0, %v6620_v7  ;;  %5980 = vmatpush3.bf16.msra.mxu1 %v5979_v40 }
 0xbe0   : > { %5981 = vmatprep.subr.bf16.mxu1 %v6618_v4 }
 0xbe3   : > { %5983 = vmatpush3.bf16.msra.mxu1 %v5982_v42  ;;  %v6045_v42 = vpack.c.bf16 %v3919_v27, %v3918_v41  ;;  %v3945_v41 = vld [vmem:[%s6929_s9 + $0xd88] sm:$0xff] }
 0xbe4   : > { %5984 = vmatprep.subr.bf16.mxu1 %v6618_v4 }
 0xbe7   : > { %5986 = vmatpush3.bf16.msra.mxu1 %v5985_v49  ;;  %v2975_v49 = vstv %s2974_s15 }
 0xbe8   : > { %5987 = vmatprep.subr.bf16.mxu1 %v6618_v4  ;;  %vm7951_vm1 = vcmp.eq.s32.totalorder %v2975_v49, 1  ;;  %v3948_v49 = vld [vmem:[%s6929_s9 + $0xda0] sm:$0xff] }
 0xbeb   : > { %5989 = vmatpush3.bf16.msra.mxu1 %v5988_v53  ;;  %v2985_v53 = vstv %s2984_s30 }
 0xbec   : > { %5990 = vmatprep.subr.bf16.mxu1 %v6618_v4  ;;  %vm2986_vm3 = vcmp.eq.s32.totalorder %v2985_v53, 1  ;;  %v3950_v53 = vld [vmem:[%s6929_s9 + $0xdb0] sm:$0xff] }
 0xc91   : > { %v2430_v59 = vpop.f32.mrb[18].mxu1 }
 0xc92   : > { %v2431_v48 = vadd.f32 %v3809_v46, %v2430_v59  ;;  %v5145_v58 = vpop.f32.mrb[19].mxu1  ;;  %v5991_v46 = vpack.c.bf16 %v3877_v62, %v3876_v57  ;;  %v3878_v59 = vld [vmem:[%s6929_s9 + $0xbd0] sm:$0xff] }
 0xc94   : > { %v2435_v0 = vmul.f32 %v2434_v55, %v2431_v48  ;;  %5992 = vmatpush3.bf16.msra.mxu1 %v5991_v46  ;;  %v3879_v55 = vld [vmem:[%s6929_s9 + $0xbd8] sm:$0xff]  ;;  %v3880_v48 = vld [vmem:[%s6929_s9 + $0xbe0] sm:$0xff] }
 0xc95   : > { %5993 = vmatprep.subr.bf16.mxu1 %v6618_v4  ;;  %v5994_v58 = vpack.c.bf16 %v3879_v55, %v3878_v59 }
 0xc96   : > { %v7841_v45 = vadd.f32 %v2435_v0, %v7682_v30  ;;  %v3881_v0 = vld [vmem:[%s6929_s9 + $0xbe8] sm:$0xff] }
 0xc98   : > { %5995 = vmatpush3.bf16.msra.mxu1 %v5994_v58 }
 0xc99   : > { %5996 = vmatprep.subr.bf16.mxu1 %v6618_v4 }
 0xcb1   : > { %v2646_v51 = vpop.f32.mrb[20].mxu1 }
 0xcb2   : > { %v2647_v61 = vadd.f32 %v3847_v60, %v2646_v51  ;;  %v5215_v63 = vpop.f32.mrb[21].mxu1  ;;  %v5997_v60 = vpack.c.bf16 %v3881_v0, %v3880_v48  ;;  %v3882_v51 = vld [vmem:[%s6929_s9 + $0xbf0] sm:$0xff] }
 0xcb4   : > { %v3848_v1 = vmul.f32 -1.442695, %v2647_v61  ;;  %v2650_v9 = vmax.f32 %v2647_v61, 0.0  ;;  %5998 = vmatpush3.bf16.msra.mxu1 %v5997_v60  ;;  %v3925_v60 = vld [vmem:[%s6929_s9 + $0xd00] sm:$0xff] }
 0xcb5   : > { %5999 = vmatprep.subr.bf16.mxu1 %v6618_v4 }
 0xcb6   : > { %6327 = vpow2.f32 %v3848_v1  ;;  %v3866_v1 = vld [vmem:[%s6938_s18 + $0x16] ss:$0 sm:$0xff] }
 0xcb7   : > { %6329 = vtanh.f32 %v2647_v61  ;;  %v3883_v61 = vld [vmem:[%s6929_s9 + $0xbf8] sm:$0xff] }
 0xcb8   : > { %v6000_v63 = vpack.c.bf16 %v3883_v61, %v3882_v51  ;;  %v3926_v51 = vld [vmem:[%s6929_s9 + $0xd08] sm:$0xff] }
 0xcb9   : > { %v6051_v61 = vpack.c.bf16 %v3926_v51, %v3925_v60  ;;  %v3955_v60 = vld [vmem:[%s6929_s9 + $0xdd8] sm:$0xff]  ;;  %v3956_v51 = vld [vmem:[%s6929_s9 + $0xde0] sm:$0xff] }
 0xcba   : > { %6001 = vmatpush3.bf16.msra.mxu1 %v6000_v63  ;;  %v3927_v63 = vld [vmem:[%s6929_s9 + $0xd10] sm:$0xff] }
 0xcbb   : > { %6026 = vmatprep.subr.bf16.mxu1 %v6618_v4 }
 0xcc0   : > { %v6328_v2 = vpop.eup %6327 }
 0xcc1   : > { %v2655_v54 = vadd.f32 1.0, %v6328_v2  ;;  %v6330_v30 = vpop.eup %6329 }
 0xcc3   : > { %6331 = vrcp.f32 %v2655_v54 }
 0xccd   : > { %v6332_v29 = vpop.eup %6331 }
 0xcce   : > { %v2658_v10 = vsel %vm7794_vm11, %v6330_v30, %v6332_v29  ;;  %v2769_v29 = vstv %s2768_s22  ;;  %s6477_s22 = scalar_lea.vmem %s8046_s20, 128 }
 0xccf   : > { %v2659_v12 = vsel %vm7798_vm12, %v2650_v9, %v2658_v10  ;;  %v3906_v9 = vld [vmem:[%s6929_s9 + $0xc80] sm:$0xff]  ;;  %v3907_v10 = vld [vmem:[%s6929_s9 + $0xc88] sm:$0xff]  ;;  %vm2770_vm15 = vcmp.eq.s32.totalorder %v2769_v29, 1  ;;  %p6478_p3 = scmp.ne.s32.totalorder %s8046_s20, %s6477_s22 }
 0xcd0   : > { %v7854_v16 = vsel %vm2663_vm14, %v2659_v12, %v7809_v24  ;;  %v3895_v24 = vld [vmem:[%s6929_s9 + $0xc48] sm:$0xff] }
 0xcd1   : > { %5249 = vmatmul.mubr.f32.vlgmr.msra.gmra.mrb[22].mxu0 %v7854_v16  ;;  %v6015_v17 = vpack.c.bf16 %v3895_v24, %v3894_v28  ;;  %v3934_v29 = vld [vmem:[%s6929_s9 + $0xd48] sm:$0xff]  ;;  %p6479_p4 = pnand %p6478_p3, %p8180_p12 }
 0xcd2   : > { %6004 = vmatpush3.bf16.msra.mxu0 %v6003_v11  ;;  %5318 = vmatprep.mubr.msk.f32.mxu0 %vm6619_vm0, %v6620_v7 }
 0xcd3   : > { %6005 = vmatprep.subr.bf16.mxu0 %v6618_v4  ;;  %p6480_p8 = pneg %p6479_p4 }
 0xcd6   : > { %6007 = vmatpush3.bf16.msra.mxu0 %v6006_v18  ;;  %v6027_v18 = vpack.c.bf16 %v3907_v10, %v3906_v9  ;;  %v3935_v10 = vld [vmem:[%s6929_s9 + $0xd50] sm:$0xff] }
 0xcd7   : > { %6008 = vmatprep.subr.bf16.mxu0 %v6618_v4 }
 0xcda   : > { %6010 = vmatpush3.bf16.msra.mxu0 %v6009_v23  ;;  %v3908_v23 = vld [vmem:[%s6929_s9 + $0xc90] sm:$0xff] }
 0xcdb   : > { %6011 = vmatprep.subr.bf16.mxu0 %v6618_v4  ;;  %v6030_v24 = vpack.c.bf16 %v3909_v25, %v3908_v23  ;;  %v3885_v25 = vld [vmem:[%s6938_s18 + $0x17] ss:$0 sm:$0xff] }
 0xcde   : > { %6013 = vmatpush3.bf16.msra.mxu0 %v6012_v22 }
 0xcdf   : > { %6014 = vmatprep.subr.bf16.mxu0 %v6618_v4 }
 0xce2   : > { %6016 = vmatpush3.bf16.msra.mxu0 %v6015_v17  ;;  %v3911_v17 = vld [vmem:[%s6929_s9 + $0xca8] sm:$0xff] }
 0xce3   : > { %6017 = vmatprep.subr.bf16.mxu0 %v6618_v4  ;;  %v6033_v31 = vpack.c.bf16 %v3911_v17, %v3910_v13  ;;  %v3923_v17 = vld [vmem:[%s6938_s18 + $0x19] ss:$0 sm:$0xff] }
 0xce6   : > { %6019 = vmatpush3.bf16.msra.mxu0 %v6018_v33  ;;  %v3913_v33 = vld [vmem:[%s6929_s9 + $0xcb8] sm:$0xff] }
 0xce7   : > { %6020 = vmatprep.subr.bf16.mxu0 %v6618_v4  ;;  %v6036_v34 = vpack.c.bf16 %v3913_v33, %v3912_v32 }
 0xcea   : > { %6022 = vmatpush3.bf16.msra.mxu0 %v6021_v56  ;;  %v3915_v56 = vld [vmem:[%s6929_s9 + $0xcc8] sm:$0xff] }
 0xceb   : > { %6023 = vmatprep.subr.bf16.mxu0 %v6618_v4  ;;  %v6039_v36 = vpack.c.bf16 %v3915_v56, %v3914_v35  ;;  %v3092_v56 = vstv %s3091_s11 }
 0xcee   : > { %6025 = vmatpush3.bf16.msra.mxu0 %v6024_v38  ;;  %v3917_v38 = vld [vmem:[%s6929_s9 + $0xcd8] sm:$0xff] }
 0xcef   : > { %6050 = vmatprep.subr.bf16.mxu0 %v6618_v4  ;;  %v6042_v40 = vpack.c.bf16 %v3917_v38, %v3916_v37 }
 0xcf1   : > { %5319 = vmatmul.mubr.f32.vlgmr.msra.gmra.mrb[24].mxu0 %v7720_v6 }
 0xcf2   : > { %5388 = vmatprep.mubr.msk.f32.mxu0 %vm6619_vm0, %v6620_v7  ;;  %6052 = vmatpush3.bf16.msra.mxu0 %v6051_v61 }
 0xcf3   : > { %6053 = vmatprep.subr.bf16.mxu0 %v6618_v4 }
 0xda4   : > { %v2753_v2 = vpop.f32.mrb[22].mxu0 }
 0xda5   : > { %v2754_v54 = vadd.f32 %v3866_v1, %v2753_v2  ;;  %v5250_v3 = vpop.f32.mrb[23].mxu0  ;;  %v3928_v1 = vld [vmem:[%s6929_s9 + $0xd18] sm:$0xff] }
 0xda6   : > { %v6054_v2 = vpack.c.bf16 %v3928_v1, %v3927_v63  ;;  %v3931_v3 = vld [vmem:[%s6929_s9 + $0xd30] sm:$0xff]  ;;  %v3957_v63 = vld [vmem:[%s6929_s9 + $0xde8] sm:$0xff] }
 0xda7   : > { %v3867_v5 = vmul.f32 -1.442695, %v2754_v54  ;;  %v2757_v14 = vmax.f32 %v2754_v54, 0.0  ;;  %v6093_v1 = vpack.c.bf16 %v3957_v63, %v3956_v51 }
 0xda8   : > { %6055 = vmatpush3.bf16.msra.mxu0 %v6054_v2  ;;  %v3958_v2 = vld [vmem:[%s6929_s9 + $0xdf0] sm:$0xff] }
 0xda9   : > { %6333 = vpow2.f32 %v3867_v5  ;;  %6056 = vmatprep.subr.bf16.mxu0 %v6618_v4  ;;  %v3932_v5 = vld [vmem:[%s6929_s9 + $0xd38] sm:$0xff] }
 0xdaa   : > { %6335 = vtanh.f32 %v2754_v54 }
 0xdb3   : > { %v6334_v8 = vpop.eup %6333 }
 0xdb4   : > { %v2762_v30 = vadd.f32 1.0, %v6334_v8  ;;  %v6336_v11 = vpop.eup %6335  ;;  %v6060_v8 = vpack.c.bf16 %v3932_v5, %v3931_v3 }
 0xdb6   : > { %6337 = vrcp.f32 %v2762_v30  ;;  %v3933_v30 = vld [vmem:[%s6929_s9 + $0xd40] sm:$0xff] }
 0xdb7   : > { %v6063_v9 = vpack.c.bf16 %v3934_v29, %v3933_v30 }
 0xdc0   : > { %v6338_v12 = vpop.eup %6337 }
 0xdc1   : > { %v2765_v15 = vsel %vm7794_vm11, %v6336_v11, %v6338_v12  ;;  %v3936_v11 = vld [vmem:[%s6929_s9 + $0xd58] sm:$0xff]  ;;  %v3937_v12 = vld [vmem:[%s6929_s9 + $0xd60] sm:$0xff] }
 0xdc2   : > { %v2766_v20 = vsel %vm7798_vm12, %v2757_v14, %v2765_v15  ;;  %v6066_v14 = vpack.c.bf16 %v3936_v11, %v3935_v10  ;;  %v3938_v15 = vld [vmem:[%s6929_s9 + $0xd68] sm:$0xff]  ;;  %v3199_v10 = vstv %s3198_s8 }
 0xdc3   : > { %v2771_v26 = vsel %vm2770_vm15, %v2766_v20, %v7854_v16  ;;  %v3940_v20 = vld [vmem:[%s6929_s9 + $0xd78] sm:$0xff]  ;;  %vm3200_vm4 = vcmp.eq.s32.totalorder %v3199_v10, 1 }
 0xdc4   : > { %v2960_v22 = vpop.f32.mrb[24].mxu0  ;;  %5284 = vmatmul.mubr.f32.vlgmr.msra.gmra.mrb[22].mxu1 %v2771_v26 }
 0xdc5   : > { %v7918_v28 = vadd.f32 %v3903_v19, %v2960_v22  ;;  %v5320_v21 = vpop.f32.mrb[25].mxu0  ;;  %6028 = vmatpush3.bf16.msra.mxu1 %v6027_v18  ;;  %5353 = vmatprep.mubr.msk.f32.mxu1 %vm6619_vm0, %v6620_v7  ;;  %v6069_v18 = vpack.c.bf16 %v3938_v15, %v3937_v12  ;;  %v3939_v19 = vld [vmem:[%s6929_s9 + $0xd70] sm:$0xff]  ;;  %v2864_v22 = vstv %s2440_s0 }
 0xdc6   : > { %6029 = vmatprep.subr.bf16.mxu1 %v6618_v4  ;;  %v6072_v23 = vpack.c.bf16 %v3940_v20, %v3939_v19  ;;  %v3961_v19 = vld [vmem:[%s6938_s18 + $0x1b] ss:$0 sm:$0xff] }
 0xdc7   : > { %v3904_v16 = vmul.f32 -1.442695, %v7918_v28  ;;  %v2965_v55 = vmax.f32 %v7918_v28, 0.0 }
 0xdc9   : > { %6339 = vpow2.f32 %v3904_v16  ;;  %6031 = vmatpush3.bf16.msra.mxu1 %v6030_v24 }
 0xdca   : > { %6032 = vmatprep.subr.bf16.mxu1 %v6618_v4  ;;  %6341 = vtanh.f32 %v7918_v28 }
 0xdcd   : > { %6034 = vmatpush3.bf16.msra.mxu1 %v6033_v31 }
 0xdce   : > { %6035 = vmatprep.subr.bf16.mxu1 %v6618_v4 }
 0xdd1   : > { %6037 = vmatpush3.bf16.msra.mxu1 %v6036_v34 }
 0xdd2   : > { %6038 = vmatprep.subr.bf16.mxu1 %v6618_v4 }
 0xdd3   : > { %v6340_v47 = vpop.eup %6339 }
 0xdd4   : > { %v2971_v39 = vadd.f32 1.0, %v6340_v47  ;;  %v6342_v62 = vpop.eup %6341 }
 0xdd5   : > { %6040 = vmatpush3.bf16.msra.mxu1 %v6039_v36 }
 0xdd6   : > { %6343 = vrcp.f32 %v2971_v39  ;;  %6041 = vmatprep.subr.bf16.mxu1 %v6618_v4 }
 0xdd9   : > { %6043 = vmatpush3.bf16.msra.mxu1 %v6042_v40  ;;  %v3944_v40 = vld [vmem:[%s6929_s9 + $0xd80] sm:$0xff] }
 0xdda   : > { %6044 = vmatprep.subr.bf16.mxu1 %v6618_v4  ;;  %v6075_v27 = vpack.c.bf16 %v3945_v41, %v3944_v40 }
 0xddd   : > { %6046 = vmatpush3.bf16.msra.mxu1 %v6045_v42  ;;  %v3946_v42 = vld [vmem:[%s6929_s9 + $0xd90] sm:$0xff] }
 0xdde   : > { %6047 = vmatprep.subr.bf16.mxu1 %v6618_v4  ;;  %v6078_v44 = vpack.c.bf16 %v3947_v43, %v3946_v42 }
 0xde0   : > { %v6344_v59 = vpop.eup %6343 }
 0xde1   : > { %6049 = vmatpush3.bf16.msra.mxu1 %v6048_v52  ;;  %v2977_v48 = vsel %vm7951_vm1, %v6342_v62, %v6344_v59  ;;  %v6081_v52 = vpack.c.bf16 %v3949_v50, %v3948_v49  ;;  %v3951_v62 = vld [vmem:[%s6929_s9 + $0xdb8] sm:$0xff] }
 0xde2   : > { %v2981_v58 = vsel %vm7955_vm2, %v2965_v55, %v2977_v48  ;;  %6074 = vmatprep.subr.bf16.mxu1 %v6618_v4  ;;  %v6084_v59 = vpack.c.bf16 %v3951_v62, %v3950_v53  ;;  %v3952_v55 = vld [vmem:[%s6929_s9 + $0xdc0] sm:$0xff]  ;;  %v3953_v48 = vld [vmem:[%s6929_s9 + $0xdc8] sm:$0xff] }
 0xde3   : > { %v7966_v0 = vsel %vm2986_vm3, %v2981_v58, %v7720_v6  ;;  %v3929_v6 = vld [vmem:[%s6929_s9 + $0xd20] sm:$0xff]  ;;  %v6087_v58 = vpack.c.bf16 %v3953_v48, %v3952_v55 }
 0xde4   : > { %5354 = vmatmul.mubr.f32.vlgmr.msra.gmra.mrb[24].mxu1 %v7966_v0 }
 0xde5   : > { %5423 = vmatprep.mubr.msk.f32.mxu1 %vm6619_vm0, %v6620_v7  ;;  %v3930_v7 = vld [vmem:[%s6929_s9 + $0xd28] sm:$0xff]  ;;  %vm3093_vm0 = vcmp.eq.s32.totalorder %v3092_v56, 1  ;;  %6076 = vmatpush3.bf16.msra.mxu1 %v6075_v27 }
 0xde6   : > { %v6057_v54 = vpack.c.bf16 %v3930_v7, %v3929_v6  ;;  %6077 = vmatprep.subr.bf16.mxu1 %v6618_v4  ;;  %v3959_v6 = vld [vmem:[%s6929_s9 + $0xdf8] sm:$0xff] }
 0xde7   : > { %v6096_v7 = vpack.c.bf16 %v3959_v6, %v3958_v2 }
 0xde8   : > { %6058 = vmatpush3.bf16.msra.mxu0 %v6057_v54  ;;  %v3942_v54 = vld [vmem:[%s6938_s18 + $0x1a] ss:$0 sm:$0xff]  ;;  %s3301_s18 = scalar_lea.sflag [#allocation8], %s272_s25 }
 0xde9   : > { %6059 = vmatprep.subr.bf16.mxu0 %v6618_v4  ;;  %6079 = vmatpush3.bf16.msra.mxu1 %v6078_v44 }
 0xdea   : > { %6080 = vmatprep.subr.bf16.mxu1 %v6618_v4 }
 0xdec   : > { %6061 = vmatpush3.bf16.msra.mxu0 %v6060_v8 }
 0xded   : > { %6062 = vmatprep.subr.bf16.mxu0 %v6618_v4  ;;  %6082 = vmatpush3.bf16.msra.mxu1 %v6081_v52 }
 0xdee   : > { %6083 = vmatprep.subr.bf16.mxu1 %v6618_v4 }
 0xdf0   : > { %6064 = vmatpush3.bf16.msra.mxu0 %v6063_v9 }
 0xdf1   : > { %6065 = vmatprep.subr.bf16.mxu0 %v6618_v4  ;;  %6085 = vmatpush3.bf16.msra.mxu1 %v6084_v59 }
 0xdf2   : > { %6086 = vmatprep.subr.bf16.mxu1 %v6618_v4 }
 0xdf4   : > { %6067 = vmatpush3.bf16.msra.mxu0 %v6066_v14 }
 0xdf5   : > { %6068 = vmatprep.subr.bf16.mxu0 %v6618_v4  ;;  %6088 = vmatpush3.bf16.msra.mxu1 %v6087_v58 }
 0xdf6   : > { %6089 = vmatprep.subr.bf16.mxu1 %v6618_v4 }
 0xdf8   : > { %6070 = vmatpush3.bf16.msra.mxu0 %v6069_v18 }
 0xdf9   : > { %6071 = vmatprep.subr.bf16.mxu0 %v6618_v4 }
 0xdfc   : > { %6073 = vmatpush3.bf16.msra.mxu0 %v6072_v23 }
 0xe97   : > { %v2860_v26 = vpop.f32.mrb[22].mxu1 }
 0xe98   : > { %v2861_v28 = vadd.f32 %v3885_v25, %v2860_v26  ;;  %v5285_v21 = vpop.f32.mrb[23].mxu1 }
 0xe9a   : > { %v2865_v24 = vmul.f32 %v2864_v22, %v2861_v28  ;;  %v3297_v28 = vld [vmem:[%s6940_s23] sm:$0xff] }
 0xe9c   : > { %v7997_v13 = vadd.f32 %v2865_v24, %v7841_v45 }
 0xeb7   : > { %v3076_v16 = vpop.f32.mrb[24].mxu1 }
 0xeb8   : > { %v3077_v31 = vadd.f32 %v3923_v17, %v3076_v16  ;;  %v5355_v32 = vpop.f32.mrb[25].mxu1 }
 0xeba   : > { %v3924_v33 = vmul.f32 -1.442695, %v3077_v31  ;;  %v3080_v37 = vmax.f32 %v3077_v31, 0.0 }
 0xebc   : > { %6345 = vpow2.f32 %v3924_v33 }
 0xebd   : > { %6347 = vtanh.f32 %v3077_v31 }
 0xec6   : > { %v6346_v34 = vpop.eup %6345 }
 0xec7   : > { %v3085_v35 = vadd.f32 1.0, %v6346_v34  ;;  %v6348_v36 = vpop.eup %6347 }
 0xec9   : > { %6349 = vrcp.f32 %v3085_v35 }
 0xed3   : > { %v6350_v45 = vpop.eup %6349 }
 0xed4   : > { %v3088_v38 = vsel %vm7951_vm1, %v6348_v36, %v6350_v45 }
 0xed5   : > { %v3089_v47 = vsel %vm7955_vm2, %v3080_v37, %v3088_v38 }
 0xed6   : > { %v3094_v39 = vsel %vm3093_vm0, %v3089_v47, %v7966_v0  ;;  %v3954_v0 = vld [vmem:[%s6929_s9 + $0xdd0] sm:$0xff]  ;;  %s2870_s9 = sld [smem:[#allocation5 + %s7927_s17]]  ;;  %s6481_s17 = sshll.u32 %s6621_s7, 4  ;;  %s6482_s17 = int_to_ptr.vmem [resolvable:$false] %s6481_s17 }
 0xed7   : > { %5389 = vmatmul.mubr.f32.vlgmr.msra.gmra.mrb[26].mxu0 %v3094_v39  ;;  %v6090_v61 = vpack.c.bf16 %v3955_v60, %v3954_v0  ;;  %s6483_s19 = scalar_lea.vmem %s6482_s17, 256  ;;  %p6484_p10 = scmp.lt.s32.totalorder %s8046_s20, %s6482_s17 }
 0xed8   : > { %p6485_p1 = scmp.lt.s32.totalorder %s6483_s19, %s6477_s22 }
 0xed9   : > { %6091 = vmatpush3.bf16.msra.mxu1 %v6090_v61 }
 0xeda   : > { %6092 = vmatprep.subr.bf16.mxu1 %v6618_v4  ;;  %p6486_p11 = por %p6485_p1, %p6484_p10 }
 0xedc   : > { %v3294_v23 = vstv %s2870_s9  ;;  %p6487_p6 = pnand %p6486_p11, %p6480_p8 }
 0xedd   : > { %6094 = vmatpush3.bf16.msra.mxu1 %v6093_v1 }
 0xede   : > { %6095 = vmatprep.subr.bf16.mxu1 %v6618_v4 }
 0xee1   : > { %6097 = vmatpush3.bf16.msra.mxu1 %v6096_v7 }
 0xfaa   : > { %v3183_v3 = vpop.f32.mrb[26].mxu0 }
 0xfab   : > { %v3184_v5 = vadd.f32 %v3942_v54, %v3183_v3  ;;  %v5390_v8 = vpop.f32.mrb[27].mxu0 }
 0xfad   : > { %v3943_v30 = vmul.f32 -1.442695, %v3184_v5  ;;  %v3187_v12 = vmax.f32 %v3184_v5, 0.0 }
 0xfaf   : > { %6351 = vpow2.f32 %v3943_v30 }
 0xfb0   : > { %6353 = vtanh.f32 %v3184_v5 }
 0xfb9   : > { %v6352_v29 = vpop.eup %6351 }
 0xfba   : > { %v3192_v9 = vadd.f32 1.0, %v6352_v29  ;;  %v6354_v11 = vpop.eup %6353 }
 0xfbc   : > { %6355 = vrcp.f32 %v3192_v9 }
 0xfc6   : > { %v6356_v4 = vpop.eup %6355 }
 0xfc7   : > { %v3195_v14 = vsel %vm7951_vm1, %v6354_v11, %v6356_v4 }
 0xfc8   : > { %v3196_v15 = vsel %vm7955_vm2, %v3187_v12, %v3195_v14 }
 0xfc9   : > { %v3201_v18 = vsel %vm3200_vm4, %v3196_v15, %v3094_v39 }
 0xfca   : > { %5424 = vmatmul.mubr.f32.vlgmr.msra.gmra.mrb[26].mxu1 %v3201_v18 }
0x109d   : > { %v3290_v20 = vpop.f32.mrb[26].mxu1 }
0x109e   : > { %v3291_v25 = vadd.f32 %v3961_v19, %v3290_v20  ;;  %v5425_v26 = vpop.f32.mrb[27].mxu1 }
0x10a0   : > { %v3295_v22 = vmul.f32 %v3294_v23, %v3291_v25 }
0x10a2   : > { %v3296_v57 = vadd.f32 %v3295_v22, %v7997_v13 }
0x10a4   : > { %v3298_v21 = vadd.f32 %v3297_v28, %v3296_v57 }
0x10a6   : > { %3299 = vst [vmem:[%s6940_s23] sm:$0xff] %v3298_v21 }
0x10a7   : > { %6490 = shalt.err (!%p6487_p6)
}
0x10a8   : > { %s6491_s25 = scalar_lea.hbm %s8044_s24, 128  ;;  %s6495_s14 = scalar_lea.hbm %s8113_s6, 256 }
0x10a9   : > { %p6492_p13 = scmp.ne.s32.totalorder %s8044_s24, %s6491_s25  ;;  %p6496_p0 = scmp.lt.u32.totalorder %s8044_s24, %s8113_s6 }
0x10aa   : > { %p6497_p5 = scmp.lt.u32.totalorder %s6495_s14, %s6491_s25  ;;  %p6499_p3 = scmp.lt.u32.totalorder %s6491_s25, %s8044_s24 }
0x10ab   : > { %p6493_p9 = pnand %p6492_p13, %p8180_p12 }
0x10ac   : > { %p6498_p2 = por %p6497_p5, %p6496_p0 }
0x10ad   : > { %p6494_p7 = pneg %p6493_p9 }
0x10ae   : > { %p6500_p4 = por %p6499_p3, %p6498_p2 }
0x10b0   : > { %p6501_p8 = pnand %p6500_p4, %p6494_p7 }
0x10b2   : > { %6504 = shalt.err (!%p6501_p8)
}
0x10b3   : > { %6110 = dma.vmem_to_hbm [thread:$0]  (%p8180_p12), %s8046_s20, 128, %s8044_s24, %s3301_s18  }
0x10b4 PF: > { %p6130_p10 = scmp.ge.s32.totalorder %s6605_s10, 2  ;;  %s3326_s30 = sand.u32 1, %s6565_s1  }
0x10b5   : > { %p8181_p1 = scmp.ne.s32.totalorder %s8142_s21, 0  ;;  %s3327_s0 = scalar_lea.sflag [#allocation8], %s3326_s30 }
0x10b7   : > { %p6124_p11 = pnand %p6130_p10, %p8181_p1 }
0x10b9   : > { %6560 = dma.done.wait (!%p6124_p11), %s3327_s0, 128  }
0x10ba   : > { %6562 = vsyncadd (!%p6124_p11), %s3327_s0, 4294967168  ;;  %s31_s10 = sadd.s32 1, %s6605_s10   ;;  %s8182_s28 = sld [smem:[#allocation23_spill]] }
0x10bb   : > { %p28_p6 = scmp.ge.s32.totalorder %s31_s10, 6   ;;  %s8183_s11 = sld [smem:[#allocation17_spill]] }
0x10bc   : > { %s8184_s30 = sld [smem:[#allocation22_spill]]  ;;  %s8185_s2 = sld [smem:[#allocation18_spill]] }
0x10bd   : > { %s8186_s7 = sld [smem:[#allocation19_spill]]  ;;  %s8187_s8 = sld [smem:[#allocation20_spill]] }
0x10be   : > { %s8188_s9 = sld [smem:[#allocation21_spill]]  ;;  %s8189_s1 = smov %s6569_s26 }
0x10bf   : > { %s8190_s26 = smov %s6573_s27  ;;  %30 = sbr.rel (!%p28_p6) target bundleno = 36 (0x24), region = 130 }
0x10c0   : > { %s8191_s27 = smov %s8182_s28  ;;  %s8192_s28 = smov %s6581_s29 }
0x10c1   : > { %s8193_s29 = smov %s8183_s11 }
0x10c6   :  { %3332 = vsyncpa [#allocation7], 1 }
0x10c7   :  { %3334 = vsyncpa [#allocation7 + $0x1], 1 }
0x10c8   :  { %3335 = vsyncpa [#allocation10], 1 }
0x10c9   :  { %3337 = vsyncpa [#allocation10 + $0x1], 1 }
0x10ca   :  { %3338 = vsyncpa [#allocation8], 1 }
0x10cb   :  { %3340 = vsyncpa [#allocation8 + $0x1], 1 }

</bundles_post_ra>
